<compile_context>
chip_gen: v6e
topology: v6e:2x2x1
jax: 0.10.0
libtpu: 0.0.40
codegen_flags: <defaults>
</compile_context>

<pallas_src>
import functools

import numpy as np

import jax
import jax.numpy as jnp
from jax.experimental import pallas as pl
from jax.experimental.pallas import tpu as pltpu

_BN_EPS = 1e-5


# ---------------------------------------------------------------------------
# Pallas kernel: one full Bottleneck block for one batch element (NHWC).
# ref order: x, w1, b1, w2, b2, w3, b3, [pool_mat], [wd, bd], out
# ---------------------------------------------------------------------------
def _bottleneck_kernel(*refs, H, W, P, Cexp, stride, has_downsample):
    it = iter(refs)
    x_ref = next(it)
    w1_ref, b1_ref = next(it), next(it)
    w2_ref, b2_ref = next(it), next(it)
    w3_ref, b3_ref = next(it), next(it)
    pool_ref = next(it) if stride > 1 else None
    if has_downsample:
        wd_ref, bd_ref = next(it), next(it)
    o_ref = next(it)

    x = x_ref[0]                                   # (H, W, Cin)
    Cin = x.shape[-1]
    x2d = x.reshape(H * W, Cin).astype(jnp.float32)

    # ---- conv1 (1x1) + bn1 (folded) + relu -------------------------------
    y1 = jnp.dot(x2d, w1_ref[...], preferred_element_type=jnp.float32)
    y1 = jnp.maximum(y1 + b1_ref[...], 0.0)        # (H*W, P)

    # ---- conv2 (3x3, padding=1) + bn2 (folded) + relu --------------------
    # zero-pad spatially by 1 on each side, then accumulate 9 shifted matmuls
    y1_3d = y1.reshape(H, W, P)
    zrow = jnp.zeros((1, W, P), jnp.float32)
    ypad = jnp.concatenate([zrow, y1_3d, zrow], axis=0)        # (H+2, W, P)
    zcol = jnp.zeros((H + 2, 1, P), jnp.float32)
    ypad = jnp.concatenate([zcol, ypad, zcol], axis=1)         # (H+2, W+2, P)

    acc = jnp.zeros((H * W, P), jnp.float32)
    for ky in range(3):
        for kx in range(3):
            tap = ypad[ky:ky + H, kx:kx + W, :].reshape(H * W, P)
            acc = acc + jnp.dot(tap, w2_ref[ky * 3 + kx],
                                preferred_element_type=jnp.float32)
    y2 = jnp.maximum(acc + b2_ref[...], 0.0)       # (H*W, P)

    # ---- AvgPool2d(stride) as a constant pooling-matrix matmul -----------
    if stride > 1:
        y2 = jnp.dot(pool_ref[...], y2, preferred_element_type=jnp.float32)

    # ---- conv3 (1x1) + bn3 (folded, no relu yet) --------------------------
    y3 = jnp.dot(y2, w3_ref[...], preferred_element_type=jnp.float32) + b3_ref[...]

    # ---- identity / downsample path ---------------------------------------
    if has_downsample:
        idn = x2d
        if stride > 1:
            idn = jnp.dot(pool_ref[...], idn, preferred_element_type=jnp.float32)
        idn = jnp.dot(idn, wd_ref[...],
                      preferred_element_type=jnp.float32) + bd_ref[...]
    else:
        idn = x2d                                  # Cin == Cexp, stride == 1

    out = jnp.maximum(y3 + idn, 0.0)               # (Hp*Wp, Cexp)
    Hp, Wp = H // stride, W // stride
    o_ref[0] = out.reshape(Hp, Wp, Cexp).astype(o_ref.dtype)


# ---------------------------------------------------------------------------
# Parameter folding / pooling matrix helpers (wrapper side, plain JAX)
# ---------------------------------------------------------------------------
def _fold_1x1(w, bn):
    """(Cout, Cin, 1, 1) conv + BN(eval) -> ready-to-multiply (Cin, Cout), (1, Cout)."""
    g, b, m, v = bn
    s = g / jnp.sqrt(v + _BN_EPS)
    wk = (w[:, :, 0, 0].T * s[None, :]).astype(jnp.float32)
    bk = ((b - m * s)[None, :]).astype(jnp.float32)
    return wk, bk


def _fold_3x3(w, bn):
    """(Cout, Cin, 3, 3) conv + BN(eval) -> (9, Cin, Cout) taps, (1, Cout) bias."""
    g, b, m, v = bn
    s = g / jnp.sqrt(v + _BN_EPS)
    cout, cin = w.shape[0], w.shape[1]
    wk = (jnp.transpose(w, (2, 3, 1, 0)).reshape(9, cin, cout)
          * s[None, None, :]).astype(jnp.float32)
    bk = ((b - m * s)[None, :]).astype(jnp.float32)
    return wk, bk


def _make_pool_matrix(H, W, s):
    """Row-major (Hp*Wp, H*W) matrix implementing AvgPool2d(kernel=s, stride=s)."""
    Hp, Wp = H // s, W // s
    m = np.zeros((Hp * Wp, H * W), np.float32)
    inv = 1.0 / (s * s)
    for oy in range(Hp):
        for ox in range(Wp):
            o = oy * Wp + ox
            for dy in range(s):
                for dx in range(s):
                    m[o, (oy * s + dy) * W + (ox * s + dx)] = inv
    return jnp.asarray(m)


def _const_spec(p):
    n = p.ndim
    return pl.BlockSpec(p.shape, lambda b, _n=n: (0,) * _n)


# ---------------------------------------------------------------------------
# Bottleneck forward (NCHW in / NCHW out), one fused Pallas kernel over batch
# ---------------------------------------------------------------------------
def bottleneck_apply(x_nchw, params, stride):
    B, Cin, H, W = x_nchw.shape
    planes = params["w1"].shape[0]
    Cexp = params["w3"].shape[0]
    has_downsample = "wd" in params
    Hp, Wp = H // stride, W // stride

    x_nhwc = jnp.transpose(x_nchw, (0, 2, 3, 1))

    w1k, b1k = _fold_1x1(params["w1"], params["bn1"])
    w2k, b2k = _fold_3x3(params["w2"], params["bn2"])
    w3k, b3k = _fold_1x1(params["w3"], params["bn3"])

    inputs = [x_nhwc, w1k, b1k, w2k, b2k, w3k, b3k]
    in_specs = [pl.BlockSpec((1, H, W, Cin), lambda b: (b, 0, 0, 0))]
    in_specs += [_const_spec(p) for p in (w1k, b1k, w2k, b2k, w3k, b3k)]

    if stride > 1:
        pool = _make_pool_matrix(H, W, stride)
        inputs.append(pool)
        in_specs.append(_const_spec(pool))
    if has_downsample:
        wdk, bdk = _fold_1x1(params["wd"], params["bnd"])
        inputs += [wdk, bdk]
        in_specs += [_const_spec(wdk), _const_spec(bdk)]

    kernel = functools.partial(
        _bottleneck_kernel, H=H, W=W, P=planes, Cexp=Cexp,
        stride=stride, has_downsample=has_downsample)

    out_nhwc = pl.pallas_call(
        kernel,
        out_shape=jax.ShapeDtypeStruct((B, Hp, Wp, Cexp), x_nchw.dtype),
        grid=(B,),
        in_specs=in_specs,
        out_specs=pl.BlockSpec((1, Hp, Wp, Cexp), lambda b: (b, 0, 0, 0)),
        compiler_params=pltpu.CompilerParams(
            dimension_semantics=("parallel",),
            vmem_limit_bytes=32 * 1024 * 1024),
    )(*inputs)

    return jnp.transpose(out_nhwc, (0, 3, 1, 2))   # back to NCHW


# ---------------------------------------------------------------------------
# Pure-JAX reference (lax.conv, eval-mode BN) for correctness checking
# ---------------------------------------------------------------------------
def _ref_bn(y, bn):
    g, b, m, v = bn
    s = g / jnp.sqrt(v + _BN_EPS)
    return y * s[None, :, None, None] + (b - m * s)[None, :, None, None]


def _ref_conv(y, w, padding):
    return jax.lax.conv_general_dilated(
        y, w, (1, 1), padding, dimension_numbers=("NCHW", "OIHW", "NCHW"))


def _ref_avgpool(y, s):
    B, C, H, W = y.shape
    return y.reshape(B, C, H // s, s, W // s, s).mean(axis=(3, 5))


def _ref_bottleneck(x, p, stride):
    out = jax.nn.relu(_ref_bn(_ref_conv(x, p["w1"], "VALID"), p["bn1"]))
    out = jax.nn.relu(_ref_bn(_ref_conv(out, p["w2"], [(1, 1), (1, 1)]), p["bn2"]))
    if stride > 1:
        out = _ref_avgpool(out, stride)
    out = _ref_bn(_ref_conv(out, p["w3"], "VALID"), p["bn3"])
    if "wd" in p:
        idn = _ref_avgpool(x, stride) if stride > 1 else x
        idn = _ref_bn(_ref_conv(idn, p["wd"], "VALID"), p["bnd"])
    else:
        idn = x
    return jax.nn.relu(out + idn)


# ---------------------------------------------------------------------------
# Deterministic parameter construction
# ---------------------------------------------------------------------------
def _make_bn(key, c):
    k1, k2, k3, k4 = jax.random.split(key, 4)
    gamma = 1.0 + 0.1 * jax.random.normal(k1, (c,), jnp.float32)
    beta = 0.1 * jax.random.normal(k2, (c,), jnp.float32)
    mean = 0.1 * jax.random.normal(k3, (c,), jnp.float32)
    var = 0.5 + jax.random.uniform(k4, (c,), jnp.float32)        # > 0
    return (gamma, beta, mean, var)


def make_bottleneck_params(key, inplanes, planes, stride):
    cexp = planes * 4
    has_ds = (stride > 1) or (inplanes != cexp)
    ks = jax.random.split(key, 8)
    p = {
        "w1": 0.1 * jax.random.normal(ks[0], (planes, inplanes, 1, 1), jnp.float32),
        "bn1": _make_bn(ks[1], planes),
        "w2": 0.1 * jax.random.normal(ks[2], (planes, planes, 3, 3), jnp.float32),
        "bn2": _make_bn(ks[3], planes),
        "w3": 0.1 * jax.random.normal(ks[4], (cexp, planes, 1, 1), jnp.float32),
        "bn3": _make_bn(ks[5], cexp),
    }
    if has_ds:
        p["wd"] = 0.1 * jax.random.normal(ks[6], (cexp, inplanes, 1, 1), jnp.float32)
        p["bnd"] = _make_bn(ks[7], cexp)
    return p


if __name__ == "__main__":
    root = jax.random.PRNGKey(0)
    k_a_x, k_a_p, k_b_x, k_b_p = jax.random.split(root, 4)

    # Config A: stride=2, channel expansion -> downsample branch active
    B, H, Wd = 2, 16, 16
    inplanes_a, planes_a, stride_a = 16, 8, 2
    x_a = jax.random.normal(k_a_x, (B, inplanes_a, H, Wd), jnp.float32)
    p_a = make_bottleneck_params(k_a_p, inplanes_a, planes_a, stride_a)
    out_a = bottleneck_apply(x_a, p_a, stride_a)
    jax.block_until_ready(out_a)
    ref_a = _ref_bottleneck(x_a, p_a, stride_a)
    assert out_a.shape == ref_a.shape == (B, planes_a * 4, H // 2, Wd // 2)
    assert jnp.allclose(out_a, ref_a, atol=1e-3, rtol=1e-3)

    # Config B: stride=1, inplanes == planes*4 -> pure identity residual
    inplanes_b, planes_b, stride_b = 32, 8, 1
    x_b = jax.random.normal(k_b_x, (B, inplanes_b, H, Wd), jnp.float32)
    p_b = make_bottleneck_params(k_b_p, inplanes_b, planes_b, stride_b)
    out_b = bottleneck_apply(x_b, p_b, stride_b)
    jax.block_until_ready(out_b)
    ref_b = _ref_bottleneck(x_b, p_b, stride_b)
    assert out_b.shape == ref_b.shape == (B, planes_b * 4, H, Wd)
    assert jnp.allclose(out_b, ref_b, atol=1e-3, rtol=1e-3)

    print("KERNEL_OK")
</pallas_src>

<mosaic_0001>
module attributes {stable_mosaic.version = 11 : i64} {
  func.func @_bottleneck_kernel(%arg0: i32, %arg1: memref<1x16x16x16xf32, #tpu.memory_space<vmem>>, %arg2: memref<16x8xf32, #tpu.memory_space<vmem>>, %arg3: memref<1x8xf32, #tpu.memory_space<vmem>>, %arg4: memref<9x8x8xf32, #tpu.memory_space<vmem>>, %arg5: memref<1x8xf32, #tpu.memory_space<vmem>>, %arg6: memref<8x32xf32, #tpu.memory_space<vmem>>, %arg7: memref<1x32xf32, #tpu.memory_space<vmem>>, %arg8: memref<64x256xf32, #tpu.memory_space<vmem>>, %arg9: memref<16x32xf32, #tpu.memory_space<vmem>>, %arg10: memref<1x32xf32, #tpu.memory_space<vmem>>, %arg11: memref<1x8x8x32xf32, #tpu.memory_space<vmem>>) attributes {dimension_semantics = [#tpu.dimension_semantics<parallel>], iteration_bounds = array<i64: 2>, scalar_prefetch = 0 : i64, scratch_operands = 0 : i64, tpu.core_type = #tpu.core_type<tc>, window_params = [{transform_indices = @transform_0, window_bounds = array<i64: 1, 16, 16, 16>}, {pipeline_mode = #tpu.pipeline_mode<synchronous>, transform_indices = @transform_1, window_bounds = array<i64: 16, 8>}, {pipeline_mode = #tpu.pipeline_mode<synchronous>, transform_indices = @transform_2, window_bounds = array<i64: 1, 8>}, {pipeline_mode = #tpu.pipeline_mode<synchronous>, transform_indices = @transform_3, window_bounds = array<i64: 9, 8, 8>}, {pipeline_mode = #tpu.pipeline_mode<synchronous>, transform_indices = @transform_4, window_bounds = array<i64: 1, 8>}, {pipeline_mode = #tpu.pipeline_mode<synchronous>, transform_indices = @transform_5, window_bounds = array<i64: 8, 32>}, {pipeline_mode = #tpu.pipeline_mode<synchronous>, transform_indices = @transform_6, window_bounds = array<i64: 1, 32>}, {pipeline_mode = #tpu.pipeline_mode<synchronous>, transform_indices = @transform_7, window_bounds = array<i64: 64, 256>}, {pipeline_mode = #tpu.pipeline_mode<synchronous>, transform_indices = @transform_8, window_bounds = array<i64: 16, 32>}, {pipeline_mode = #tpu.pipeline_mode<synchronous>, transform_indices = @transform_9, window_bounds = array<i64: 1, 32>}, {transform_indices = @transform_10, window_bounds = array<i64: 1, 8, 8, 32>}]} {
    %c0 = arith.constant 0 : index
    %c0_0 = arith.constant 0 : index
    %c0_1 = arith.constant 0 : index
    %c0_2 = arith.constant 0 : index
    %0 = vector.load %arg1[%c0, %c0_0, %c0_1, %c0_2] : memref<1x16x16x16xf32, #tpu.memory_space<vmem>>, vector<1x16x16x16xf32>
    %1 = vector.shape_cast %0 : vector<1x16x16x16xf32> to vector<16x16x16xf32>
    %2 = vector.shape_cast %1 : vector<16x16x16xf32> to vector<256x16xf32>
    %c0_3 = arith.constant 0 : index
    %c0_4 = arith.constant 0 : index
    %3 = vector.load %arg2[%c0_3, %c0_4] : memref<16x8xf32, #tpu.memory_space<vmem>>, vector<16x8xf32>
    %cst = arith.constant dense<0.000000e+00> : vector<256x8xf32>
    %4 = tpu.matmul %2, %3, %cst {dimension_numbers = #tpu.dot_dimension_numbers<[1], [0], [0], [1], [0, 0, 1, 1], [], []>} : vector<256x16xf32>, vector<16x8xf32>, vector<256x8xf32> -> vector<256x8xf32>
    %c0_5 = arith.constant 0 : index
    %c0_6 = arith.constant 0 : index
    %5 = vector.load %arg3[%c0_5, %c0_6] : memref<1x8xf32, #tpu.memory_space<vmem>>, vector<1x8xf32>
    %6 = vector.broadcast %5 : vector<1x8xf32> to vector<256x8xf32>
    %7 = arith.addf %4, %6 : vector<256x8xf32>
    %cst_7 = arith.constant 0.000000e+00 : f32
    %8 = vector.broadcast %cst_7 : f32 to vector<256x8xf32>
    %9 = arith.maximumf %7, %8 : vector<256x8xf32>
    %10 = vector.shape_cast %9 : vector<256x8xf32> to vector<16x16x8xf32>
    %cst_8 = arith.constant 0.000000e+00 : f32
    %11 = vector.broadcast %cst_8 : f32 to vector<1x16x8xf32>
    %12 = tpu.concatenate %11, %10, %11 in 0 : vector<1x16x8xf32>, vector<16x16x8xf32>, vector<1x16x8xf32> -> vector<18x16x8xf32>
    %cst_9 = arith.constant 0.000000e+00 : f32
    %13 = vector.broadcast %cst_9 : f32 to vector<18x1x8xf32>
    %14 = tpu.concatenate %13, %12, %13 in 1 : vector<18x1x8xf32>, vector<18x16x8xf32>, vector<18x1x8xf32> -> vector<18x18x8xf32>
    %cst_10 = arith.constant 0.000000e+00 : f32
    %15 = vector.broadcast %cst_10 : f32 to vector<256x8xf32>
    %16 = vector.extract_strided_slice %14 {offsets = [0, 0, 0], sizes = [16, 16, 8], strides = [1, 1, 1]} : vector<18x18x8xf32> to vector<16x16x8xf32>
    %17 = vector.shape_cast %16 : vector<16x16x8xf32> to vector<256x8xf32>
    %c0_11 = arith.constant 0 : index
    %c0_12 = arith.constant 0 : index
    %c0_13 = arith.constant 0 : index
    %18 = vector.load %arg4[%c0_11, %c0_12, %c0_13] : memref<9x8x8xf32, #tpu.memory_space<vmem>>, vector<1x8x8xf32>
    %19 = vector.shape_cast %18 : vector<1x8x8xf32> to vector<8x8xf32>
    %cst_14 = arith.constant dense<0.000000e+00> : vector<256x8xf32>
    %20 = tpu.matmul %17, %19, %cst_14 {dimension_numbers = #tpu.dot_dimension_numbers<[1], [0], [0], [1], [0, 0, 1, 1], [], []>} : vector<256x8xf32>, vector<8x8xf32>, vector<256x8xf32> -> vector<256x8xf32>
    %21 = arith.addf %15, %20 : vector<256x8xf32>
    %22 = vector.extract_strided_slice %14 {offsets = [0, 1, 0], sizes = [16, 16, 8], strides = [1, 1, 1]} : vector<18x18x8xf32> to vector<16x16x8xf32>
    %23 = vector.shape_cast %22 : vector<16x16x8xf32> to vector<256x8xf32>
    %c1 = arith.constant 1 : index
    %c0_15 = arith.constant 0 : index
    %c0_16 = arith.constant 0 : index
    %24 = vector.load %arg4[%c1, %c0_15, %c0_16] : memref<9x8x8xf32, #tpu.memory_space<vmem>>, vector<1x8x8xf32>
    %25 = vector.shape_cast %24 : vector<1x8x8xf32> to vector<8x8xf32>
    %cst_17 = arith.constant dense<0.000000e+00> : vector<256x8xf32>
    %26 = tpu.matmul %23, %25, %cst_17 {dimension_numbers = #tpu.dot_dimension_numbers<[1], [0], [0], [1], [0, 0, 1, 1], [], []>} : vector<256x8xf32>, vector<8x8xf32>, vector<256x8xf32> -> vector<256x8xf32>
    %27 = arith.addf %21, %26 : vector<256x8xf32>
    %28 = vector.extract_strided_slice %14 {offsets = [0, 2, 0], sizes = [16, 16, 8], strides = [1, 1, 1]} : vector<18x18x8xf32> to vector<16x16x8xf32>
    %29 = vector.shape_cast %28 : vector<16x16x8xf32> to vector<256x8xf32>
    %c2 = arith.constant 2 : index
    %c0_18 = arith.constant 0 : index
    %c0_19 = arith.constant 0 : index
    %30 = vector.load %arg4[%c2, %c0_18, %c0_19] : memref<9x8x8xf32, #tpu.memory_space<vmem>>, vector<1x8x8xf32>
    %31 = vector.shape_cast %30 : vector<1x8x8xf32> to vector<8x8xf32>
    %cst_20 = arith.constant dense<0.000000e+00> : vector<256x8xf32>
    %32 = tpu.matmul %29, %31, %cst_20 {dimension_numbers = #tpu.dot_dimension_numbers<[1], [0], [0], [1], [0, 0, 1, 1], [], []>} : vector<256x8xf32>, vector<8x8xf32>, vector<256x8xf32> -> vector<256x8xf32>
    %33 = arith.addf %27, %32 : vector<256x8xf32>
    %34 = vector.extract_strided_slice %14 {offsets = [1, 0, 0], sizes = [16, 16, 8], strides = [1, 1, 1]} : vector<18x18x8xf32> to vector<16x16x8xf32>
    %35 = vector.shape_cast %34 : vector<16x16x8xf32> to vector<256x8xf32>
    %c3 = arith.constant 3 : index
    %c0_21 = arith.constant 0 : index
    %c0_22 = arith.constant 0 : index
    %36 = vector.load %arg4[%c3, %c0_21, %c0_22] : memref<9x8x8xf32, #tpu.memory_space<vmem>>, vector<1x8x8xf32>
    %37 = vector.shape_cast %36 : vector<1x8x8xf32> to vector<8x8xf32>
    %cst_23 = arith.constant dense<0.000000e+00> : vector<256x8xf32>
    %38 = tpu.matmul %35, %37, %cst_23 {dimension_numbers = #tpu.dot_dimension_numbers<[1], [0], [0], [1], [0, 0, 1, 1], [], []>} : vector<256x8xf32>, vector<8x8xf32>, vector<256x8xf32> -> vector<256x8xf32>
    %39 = arith.addf %33, %38 : vector<256x8xf32>
    %40 = vector.extract_strided_slice %14 {offsets = [1, 1, 0], sizes = [16, 16, 8], strides = [1, 1, 1]} : vector<18x18x8xf32> to vector<16x16x8xf32>
    %41 = vector.shape_cast %40 : vector<16x16x8xf32> to vector<256x8xf32>
    %c4 = arith.constant 4 : index
    %c0_24 = arith.constant 0 : index
    %c0_25 = arith.constant 0 : index
    %42 = vector.load %arg4[%c4, %c0_24, %c0_25] : memref<9x8x8xf32, #tpu.memory_space<vmem>>, vector<1x8x8xf32>
    %43 = vector.shape_cast %42 : vector<1x8x8xf32> to vector<8x8xf32>
    %cst_26 = arith.constant dense<0.000000e+00> : vector<256x8xf32>
    %44 = tpu.matmul %41, %43, %cst_26 {dimension_numbers = #tpu.dot_dimension_numbers<[1], [0], [0], [1], [0, 0, 1, 1], [], []>} : vector<256x8xf32>, vector<8x8xf32>, vector<256x8xf32> -> vector<256x8xf32>
    %45 = arith.addf %39, %44 : vector<256x8xf32>
    %46 = vector.extract_strided_slice %14 {offsets = [1, 2, 0], sizes = [16, 16, 8], strides = [1, 1, 1]} : vector<18x18x8xf32> to vector<16x16x8xf32>
    %47 = vector.shape_cast %46 : vector<16x16x8xf32> to vector<256x8xf32>
    %c5 = arith.constant 5 : index
    %c0_27 = arith.constant 0 : index
    %c0_28 = arith.constant 0 : index
    %48 = vector.load %arg4[%c5, %c0_27, %c0_28] : memref<9x8x8xf32, #tpu.memory_space<vmem>>, vector<1x8x8xf32>
    %49 = vector.shape_cast %48 : vector<1x8x8xf32> to vector<8x8xf32>
    %cst_29 = arith.constant dense<0.000000e+00> : vector<256x8xf32>
    %50 = tpu.matmul %47, %49, %cst_29 {dimension_numbers = #tpu.dot_dimension_numbers<[1], [0], [0], [1], [0, 0, 1, 1], [], []>} : vector<256x8xf32>, vector<8x8xf32>, vector<256x8xf32> -> vector<256x8xf32>
    %51 = arith.addf %45, %50 : vector<256x8xf32>
    %52 = vector.extract_strided_slice %14 {offsets = [2, 0, 0], sizes = [16, 16, 8], strides = [1, 1, 1]} : vector<18x18x8xf32> to vector<16x16x8xf32>
    %53 = vector.shape_cast %52 : vector<16x16x8xf32> to vector<256x8xf32>
    %c6 = arith.constant 6 : index
    %c0_30 = arith.constant 0 : index
    %c0_31 = arith.constant 0 : index
    %54 = vector.load %arg4[%c6, %c0_30, %c0_31] : memref<9x8x8xf32, #tpu.memory_space<vmem>>, vector<1x8x8xf32>
    %55 = vector.shape_cast %54 : vector<1x8x8xf32> to vector<8x8xf32>
    %cst_32 = arith.constant dense<0.000000e+00> : vector<256x8xf32>
    %56 = tpu.matmul %53, %55, %cst_32 {dimension_numbers = #tpu.dot_dimension_numbers<[1], [0], [0], [1], [0, 0, 1, 1], [], []>} : vector<256x8xf32>, vector<8x8xf32>, vector<256x8xf32> -> vector<256x8xf32>
    %57 = arith.addf %51, %56 : vector<256x8xf32>
    %58 = vector.extract_strided_slice %14 {offsets = [2, 1, 0], sizes = [16, 16, 8], strides = [1, 1, 1]} : vector<18x18x8xf32> to vector<16x16x8xf32>
    %59 = vector.shape_cast %58 : vector<16x16x8xf32> to vector<256x8xf32>
    %c7 = arith.constant 7 : index
    %c0_33 = arith.constant 0 : index
    %c0_34 = arith.constant 0 : index
    %60 = vector.load %arg4[%c7, %c0_33, %c0_34] : memref<9x8x8xf32, #tpu.memory_space<vmem>>, vector<1x8x8xf32>
    %61 = vector.shape_cast %60 : vector<1x8x8xf32> to vector<8x8xf32>
    %cst_35 = arith.constant dense<0.000000e+00> : vector<256x8xf32>
    %62 = tpu.matmul %59, %61, %cst_35 {dimension_numbers = #tpu.dot_dimension_numbers<[1], [0], [0], [1], [0, 0, 1, 1], [], []>} : vector<256x8xf32>, vector<8x8xf32>, vector<256x8xf32> -> vector<256x8xf32>
    %63 = arith.addf %57, %62 : vector<256x8xf32>
    %64 = vector.extract_strided_slice %14 {offsets = [2, 2, 0], sizes = [16, 16, 8], strides = [1, 1, 1]} : vector<18x18x8xf32> to vector<16x16x8xf32>
    %65 = vector.shape_cast %64 : vector<16x16x8xf32> to vector<256x8xf32>
    %c8 = arith.constant 8 : index
    %c0_36 = arith.constant 0 : index
    %c0_37 = arith.constant 0 : index
    %66 = vector.load %arg4[%c8, %c0_36, %c0_37] : memref<9x8x8xf32, #tpu.memory_space<vmem>>, vector<1x8x8xf32>
    %67 = vector.shape_cast %66 : vector<1x8x8xf32> to vector<8x8xf32>
    %cst_38 = arith.constant dense<0.000000e+00> : vector<256x8xf32>
    %68 = tpu.matmul %65, %67, %cst_38 {dimension_numbers = #tpu.dot_dimension_numbers<[1], [0], [0], [1], [0, 0, 1, 1], [], []>} : vector<256x8xf32>, vector<8x8xf32>, vector<256x8xf32> -> vector<256x8xf32>
    %69 = arith.addf %63, %68 : vector<256x8xf32>
    %c0_39 = arith.constant 0 : index
    %c0_40 = arith.constant 0 : index
    %70 = vector.load %arg5[%c0_39, %c0_40] : memref<1x8xf32, #tpu.memory_space<vmem>>, vector<1x8xf32>
    %71 = vector.broadcast %70 : vector<1x8xf32> to vector<256x8xf32>
    %72 = arith.addf %69, %71 : vector<256x8xf32>
    %cst_41 = arith.constant 0.000000e+00 : f32
    %73 = vector.broadcast %cst_41 : f32 to vector<256x8xf32>
    %74 = arith.maximumf %72, %73 : vector<256x8xf32>
    %c0_42 = arith.constant 0 : index
    %c0_43 = arith.constant 0 : index
    %75 = vector.load %arg8[%c0_42, %c0_43] : memref<64x256xf32, #tpu.memory_space<vmem>>, vector<64x256xf32>
    %cst_44 = arith.constant dense<0.000000e+00> : vector<64x8xf32>
    %76 = tpu.matmul %75, %74, %cst_44 {dimension_numbers = #tpu.dot_dimension_numbers<[1], [0], [0], [1], [0, 0, 1, 1], [], []>} : vector<64x256xf32>, vector<256x8xf32>, vector<64x8xf32> -> vector<64x8xf32>
    %c0_45 = arith.constant 0 : index
    %c0_46 = arith.constant 0 : index
    %77 = vector.load %arg6[%c0_45, %c0_46] : memref<8x32xf32, #tpu.memory_space<vmem>>, vector<8x32xf32>
    %cst_47 = arith.constant dense<0.000000e+00> : vector<64x32xf32>
    %78 = tpu.matmul %76, %77, %cst_47 {dimension_numbers = #tpu.dot_dimension_numbers<[1], [0], [0], [1], [0, 0, 1, 1], [], []>} : vector<64x8xf32>, vector<8x32xf32>, vector<64x32xf32> -> vector<64x32xf32>
    %c0_48 = arith.constant 0 : index
    %c0_49 = arith.constant 0 : index
    %79 = vector.load %arg7[%c0_48, %c0_49] : memref<1x32xf32, #tpu.memory_space<vmem>>, vector<1x32xf32>
    %80 = vector.broadcast %79 : vector<1x32xf32> to vector<64x32xf32>
    %81 = arith.addf %78, %80 : vector<64x32xf32>
    %c0_50 = arith.constant 0 : index
    %c0_51 = arith.constant 0 : index
    %82 = vector.load %arg8[%c0_50, %c0_51] : memref<64x256xf32, #tpu.memory_space<vmem>>, vector<64x256xf32>
    %cst_52 = arith.constant dense<0.000000e+00> : vector<64x16xf32>
    %83 = tpu.matmul %82, %2, %cst_52 {dimension_numbers = #tpu.dot_dimension_numbers<[1], [0], [0], [1], [0, 0, 1, 1], [], []>} : vector<64x256xf32>, vector<256x16xf32>, vector<64x16xf32> -> vector<64x16xf32>
    %c0_53 = arith.constant 0 : index
    %c0_54 = arith.constant 0 : index
    %84 = vector.load %arg9[%c0_53, %c0_54] : memref<16x32xf32, #tpu.memory_space<vmem>>, vector<16x32xf32>
    %cst_55 = arith.constant dense<0.000000e+00> : vector<64x32xf32>
    %85 = tpu.matmul %83, %84, %cst_55 {dimension_numbers = #tpu.dot_dimension_numbers<[1], [0], [0], [1], [0, 0, 1, 1], [], []>} : vector<64x16xf32>, vector<16x32xf32>, vector<64x32xf32> -> vector<64x32xf32>
    %c0_56 = arith.constant 0 : index
    %c0_57 = arith.constant 0 : index
    %86 = vector.load %arg10[%c0_56, %c0_57] : memref<1x32xf32, #tpu.memory_space<vmem>>, vector<1x32xf32>
    %87 = vector.broadcast %86 : vector<1x32xf32> to vector<64x32xf32>
    %88 = arith.addf %85, %87 : vector<64x32xf32>
    %89 = arith.addf %81, %88 : vector<64x32xf32>
    %cst_58 = arith.constant 0.000000e+00 : f32
    %90 = vector.broadcast %cst_58 : f32 to vector<64x32xf32>
    %91 = arith.maximumf %89, %90 : vector<64x32xf32>
    %92 = vector.shape_cast %91 : vector<64x32xf32> to vector<8x8x32xf32>
    %c0_59 = arith.constant 0 : index
    %c0_60 = arith.constant 0 : index
    %c0_61 = arith.constant 0 : index
    %c0_62 = arith.constant 0 : index
    %93 = vector.load %arg11[%c0_59, %c0_60, %c0_61, %c0_62] : memref<1x8x8x32xf32, #tpu.memory_space<vmem>>, vector<1x8x8x32xf32>
    %94 = vector.shape_cast %93 : vector<1x8x8x32xf32> to vector<8x8x32xf32>
    %95 = vector.shape_cast %92 : vector<8x8x32xf32> to vector<1x8x8x32xf32>
    tpu.vector_store %arg11[%c0_59, %c0_60, %c0_61, %c0_62], %95 {strides = array<i32>} : memref<1x8x8x32xf32, #tpu.memory_space<vmem>>, vector<1x8x8x32xf32>,
    return
  }
  func.func @transform_0(%arg0: i32) -> (i32, i32, i32, i32) {
    %c0_i32 = arith.constant 0 : i32
    %c0_i32_0 = arith.constant 0 : i32
    %c0_i32_1 = arith.constant 0 : i32
    %c0_i32_2 = arith.constant 0 : i32
    return %arg0, %c0_i32, %c0_i32_0, %c0_i32_1 : i32, i32, i32, i32
  }
  func.func @transform_1(%arg0: i32) -> (i32, i32) {
    %c0_i32 = arith.constant 0 : i32
    %c0_i32_0 = arith.constant 0 : i32
    %c0_i32_1 = arith.constant 0 : i32
    return %c0_i32, %c0_i32_0 : i32, i32
  }
  func.func @transform_2(%arg0: i32) -> (i32, i32) {
    %c0_i32 = arith.constant 0 : i32
    %c0_i32_0 = arith.constant 0 : i32
    %c0_i32_1 = arith.constant 0 : i32
    return %c0_i32, %c0_i32_0 : i32, i32
  }
  func.func @transform_3(%arg0: i32) -> (i32, i32, i32) {
    %c0_i32 = arith.constant 0 : i32
    %c0_i32_0 = arith.constant 0 : i32
    %c0_i32_1 = arith.constant 0 : i32
    %c0_i32_2 = arith.constant 0 : i32
    return %c0_i32, %c0_i32_0, %c0_i32_1 : i32, i32, i32
  }
  func.func @transform_4(%arg0: i32) -> (i32, i32) {
    %c0_i32 = arith.constant 0 : i32
    %c0_i32_0 = arith.constant 0 : i32
    %c0_i32_1 = arith.constant 0 : i32
    return %c0_i32, %c0_i32_0 : i32, i32
  }
  func.func @transform_5(%arg0: i32) -> (i32, i32) {
    %c0_i32 = arith.constant 0 : i32
    %c0_i32_0 = arith.constant 0 : i32
    %c0_i32_1 = arith.constant 0 : i32
    return %c0_i32, %c0_i32_0 : i32, i32
  }
  func.func @transform_6(%arg0: i32) -> (i32, i32) {
    %c0_i32 = arith.constant 0 : i32
    %c0_i32_0 = arith.constant 0 : i32
    %c0_i32_1 = arith.constant 0 : i32
    return %c0_i32, %c0_i32_0 : i32, i32
  }
  func.func @transform_7(%arg0: i32) -> (i32, i32) {
    %c0_i32 = arith.constant 0 : i32
    %c0_i32_0 = arith.constant 0 : i32
    %c0_i32_1 = arith.constant 0 : i32
    return %c0_i32, %c0_i32_0 : i32, i32
  }
  func.func @transform_8(%arg0: i32) -> (i32, i32) {
    %c0_i32 = arith.constant 0 : i32
    %c0_i32_0 = arith.constant 0 : i32
    %c0_i32_1 = arith.constant 0 : i32
    return %c0_i32, %c0_i32_0 : i32, i32
  }
  func.func @transform_9(%arg0: i32) -> (i32, i32) {
    %c0_i32 = arith.constant 0 : i32
    %c0_i32_0 = arith.constant 0 : i32
    %c0_i32_1 = arith.constant 0 : i32
    return %c0_i32, %c0_i32_0 : i32, i32
  }
  func.func @transform_10(%arg0: i32) -> (i32, i32, i32, i32) {
    %c0_i32 = arith.constant 0 : i32
    %c0_i32_0 = arith.constant 0 : i32
    %c0_i32_1 = arith.constant 0 : i32
    %c0_i32_2 = arith.constant 0 : i32
    return %arg0, %c0_i32, %c0_i32_0, %c0_i32_1 : i32, i32, i32, i32
  }
}

</mosaic_0001>

<bundles_post_ra>
// kernel: tpu_custom_call.1
= control target key start
LH: loop header
LB: loop body
LE: loop exit
PB: predicated region body
PF: predicated region fallthrough
CT: control target
= control target key end

     0   :  { %15 = vsyncpa [#allocation3], 0  ;;  %s8240_s0 = inlined_call_operand.hbm [shape: f32[2,16,16,16], index: 0, kind: input, shape index: {}]   ;;  %s8241_s1 = inlined_call_operand.vmem [shape: f32[16,8], index: 1, kind: input, shape index: {}]   ;;  %s8242_s2 = inlined_call_operand.vmem [shape: f32[1,8], index: 2, kind: input, shape index: {}]   ;;  %s8243_s3 = inlined_call_operand.vmem [shape: f32[9,8,8], index: 3, kind: input, shape index: {}]   ;;  %s8244_s4 = inlined_call_operand.vmem [shape: f32[1,8], index: 4, kind: input, shape index: {}]   ;;  %s8245_s5 = inlined_call_operand.vmem [shape: f32[8,32], index: 5, kind: input, shape index: {}]   ;;  %s8246_s6 = inlined_call_operand.vmem [shape: f32[1,32], index: 6, kind: input, shape index: {}]   ;;  %s8247_s7 = inlined_call_operand.vmem [shape: f32[64,256], index: 7, kind: input, shape index: {}]   ;;  %s8248_s8 = inlined_call_operand.vmem [shape: f32[16,32], index: 8, kind: input, shape index: {}]   ;;  %s8249_s9 = inlined_call_operand.vmem [shape: f32[1,32], index: 9, kind: input, shape index: {}]   ;;  %s8250_s10 = inlined_call_operand.hbm [shape: f32[2,8,8,32], index: 10, kind: output, shape index: {}]  }
   0x1   :  { %17 = vsyncpa [#allocation3 + $0x1], 0 }
   0x2   :  { %18 = vsyncpa [#allocation4], 0 }
   0x3   :  { %20 = vsyncpa [#allocation4 + $0x1], 0  ;;  %s5884_s13 = smov 0   ;;  %s5886_s14 = smov 0  }
   0x4   :  { %s5888_s15 = smov 0   ;;  %s5890_s16 = smov 0  }
   0x5 LB: > { %8344 = sst [smem:[#allocation8_spill]] %s5816_s15  ;;  %s5905_s17 = sadd.s32 4294967295, %s5820_s16   ;;  %s5820_s16 = sphi %s5890_s16, %s8602_s16   ;;  %s5816_s15 = sphi %s5888_s15, %s8604_s15   ;;  %s5812_s14 = sphi %s5886_s14, %s8606_s14   ;;  %s5808_s13 = sphi %s5884_s13, %s8605_s13  }
   0x6   : > { %s4285_s18 = sadd.s32 4294967294, %s5820_s16   ;;  %s5909_s19 = sadd.s32 1, %s5820_s16  }
   0x7   : > { %8345 = sst [smem:[#allocation9_spill]] %s5909_s19  ;;  %s33_s20 = sadd.s32 1, %s5816_s15 }
   0x8   : > { %s30_s21 = ssub.s32 %s5820_s16, %s5909_s19  ;;  %p40_p0 = scmp.ne.s32.totalorder %s5816_s15, %s5812_s14 }
   0x9   : > { %p31_p1 = scmp.eq.s32.totalorder %s30_s21, 0  ;;  %p41_p2 = scmp.eq.s32.totalorder %s5820_s16, 0 }
   0xa   : > { %p46_p3 = scmp.ne.s32.totalorder %s5812_s14, %s5808_s13  ;;  %p47_p4 = scmp.eq.s32.totalorder %s5905_s17, 0 }
   0xb   : > { %s5921_s22 = scalar_select %p31_p1, %s5816_s15, %s33_s20  }
   0xc   : > { %p5923_p5 = por %p41_p2, %p40_p0  ;;  %p5927_p6 = por %p47_p4, %p46_p3 }
   0xd   : > { %8346 = sst [smem:[#allocation10_spill]] %s5921_s22  ;;  %p259_p7 = scmp.eq.s32.totalorder %s5905_s17, 1 }
   0xe   : > { %s8348_s24 = scalar_select %p5927_p6, 1, 0 }
   0xf   : > { %p265_p8 = scmp.eq.s32.totalorder %s4285_s18, 1  ;;  %p5657_p10 = scmp.lt.s32.totalorder %s5820_s16, 2 }
  0x10   : > { %p5934_p11 = por %p259_p7, %p40_p0  ;;  %s312_s27 = sand.u32 1, %s5816_s15  }
  0x11   : > { %p5938_p12 = por %p265_p8, %p46_p3  ;;  %s4647_s28 = sshll.u32 %s5820_s16, 12 }
  0x12   : > { %s8349_s25 = scalar_select %p5934_p11, 1, 0 }
  0x13   : > { %s8350_s26 = scalar_select %p5938_p12, 1, 0 }
  0x14   : > { %s4288_s29 = sshll.u32 %s312_s27, 8  ;;  %s5947_s12 = scalar_lea.hbm %s8240_s0, %s4647_s28 }
  0x15   : > { %s316_s18 = scalar_lea.vmem [#allocation2], %s4288_s29  ;;  %p5951_p13 = pnand %p5657_p10, %p5923_p5 }
  0x16   : > { %s323_s20 = sshll.u32 %s316_s18, 4  ;;  %s5957_s22 = scalar_lea.sflag [#allocation3], %s312_s27  ;;  %s5955_s20 = int_to_ptr.vmem [resolvable:$true] %s323_s20 }
  0x17   : > { %s5728_s15 = scalar_lea.hbm %s5947_s12, 4096  ;;  %p5730_p1 = pneg %p5951_p13 }
  0x18   : > { %p5729_p0 = scmp.ne.s32.totalorder %s5947_s12, %s5728_s15  ;;  %s5733_s29 = scalar_lea.hbm %s8240_s0, 8192 }
  0x19   : > { %p5734_p4 = scmp.lt.s32.totalorder %s5947_s12, %s8240_s0  ;;  %p5735_p5 = scmp.lt.s32.totalorder %s5733_s29, %s5728_s15 }
  0x1a   : > { %p5731_p2 = pnand %p5730_p1, %p5729_p0 }
  0x1b   : > { %p5736_p7 = por %p5735_p5, %p5734_p4 }
  0x1c   : > { %p5732_p3 = pneg %p5731_p2 }
  0x1e   : > { %p5737_p8 = pnand %p5736_p7, %p5732_p3 }
  0x20   : > { %5740 = shalt.err (!%p5737_p8)
}
  0x21   : > { %s5741_s27 = scalar_lea.vmem %s5955_s20, 4096  ;;  %s5822_s18 = smov [#allocation2]  }
  0x22   : > { %p5742_p10 = scmp.ne.s32.totalorder %s5955_s20, %s5741_s27  ;;  %s5746_s19 = sshll.u32 %s5822_s18, 4  ;;  %s5747_s19 = int_to_ptr.vmem [resolvable:$false] %s5746_s19 }
  0x23   : > { %s5748_s28 = scalar_lea.vmem %s5747_s19, 8192  ;;  %p5749_p2 = scmp.lt.s32.totalorder %s5955_s20, %s5747_s19 }
  0x24   : > { %p5744_p9 = pnand %p5742_p10, %p5730_p1  ;;  %p5750_p12 = scmp.lt.s32.totalorder %s5748_s28, %s5741_s27 }
  0x26   : > { %p5745_p0 = pneg %p5744_p9  ;;  %p5751_p11 = por %p5750_p12, %p5749_p2 }
  0x28   : > { %p5752_p6 = pnand %p5751_p11, %p5745_p0 }
  0x2a   : > { %5755 = shalt.err (!%p5752_p6)
}
  0x2b   : > { %s5823_s15 = smov 128   ;;  %s5824_s30 = smov 8  }
  0x2c   : > { %5652 = dma.hbm_to_vmem [thread:$0]  (!%p5951_p13), %s5947_s12, 4096, %s5955_s20, %s5957_s22, %s5823_s15, %s5823_s15, %s5824_s30  }
  0x2d   : > { %p4291_p9 = scmp.ge.s32.totalorder %s5820_s16, 1  ;;  %p331_p1 = scmp.lt.s32.totalorder %s5820_s16, 3 }
  0x2f   : > { %p332_p3 = pnand %p4291_p9, %p331_p1 }
  0x31   : > { %335 = sbr.rel (%p332_p3) target bundleno = 1293 (0x50d), region = 60 }
  0x36   : > { %s5981_s19 = sand.u32 1, %s5812_s14   ;;  %p8352_p6 = scmp.ne.s32.totalorder %s8348_s24, 0 }
  0x37   : > { %s4292_s29 = sshll.u32 %s5981_s19, 8  ;;  %s338_s23 = scalar_lea.sflag [#allocation3], %s5981_s19 }
  0x38   : > { %s5985_s11 = scalar_lea.vmem [#allocation2], %s4292_s29 }
  0x39   : > { %5799 = dma.done.wait (%p8352_p6), %s338_s23, 4096  }
  0x3a   : > { %5801 = vsyncadd (%p8352_p6), %s338_s23, 4294963200  ;;  %vm419_vm0 = vcmask 130048   ;;  %v411_v0 = vld [vmem:[%s8241_s1 + $0x8] sm:$0xff]  ;;  %v410_v1 = vld [vmem:[%s8241_s1] sm:$0xff]  ;;  %vm806_vm1 = vcmask 1040384   ;;  %v5825_v34 = vmov 0.0  }
  0x3b   : > { %v378_v2 = vld [vmem:[%s5985_s11] sm:$0xff]  ;;  %5111 = vmatprep.subr.mxu0 %v411_v0  ;;  %v379_v3 = vld [vmem:[%s5985_s11 + $0x8] sm:$0xff]  ;;  %v380_v4 = vld [vmem:[%s5985_s11 + $0x10] sm:$0xff]  ;;  %v6061_v35 = vrot.slane %v5825_v34, 7  ;;  %vm957_vm2 = vcmask 1046528   ;;  %vm1040_vm3 = vcmask 64512  }
  0x3c   : > { %5115 = vmatprep.mubr.msk.f32.mxu0 %vm419_vm0, %v378_v2  ;;  %5112 = vmatpush3.msra.mxu0 %v411_v0  ;;  %v381_v5 = vld [vmem:[%s5985_s11 + $0x18] sm:$0xff]  ;;  %v382_v6 = vld [vmem:[%s5985_s11 + $0x20] sm:$0xff]  ;;  %v383_v7 = vld [vmem:[%s5985_s11 + $0x28] sm:$0xff]  ;;  %vm1619_vm4 = vcmask 1045504   ;;  %s4293_s28 = sshll.u32 %s5981_s19, 6  ;;  %vm4189_vm5 = vcmask 261120  }
  0x3d   : > { %5113 = vmatprep.subr.mxu0 %v410_v1  ;;  %v384_v8 = vld [vmem:[%s5985_s11 + $0x30] sm:$0xff]  ;;  %v385_v9 = vld [vmem:[%s5985_s11 + $0x38] sm:$0xff]  ;;  %v386_v10 = vld [vmem:[%s5985_s11 + $0x40] sm:$0xff]  ;;  %v6065_v36 = vsel %vm806_vm1, 0.0, %v6061_v35  ;;  %v959_v38 = vrot.slane %v6061_v35, 1  ;;  %v6071_v39 = vsel %vm806_vm1, %v6061_v35, 0.0 }
  0x3e   : > { %5114 = vmatpush3.msra.mxu0 %v410_v1  ;;  %v387_v11 = vld [vmem:[%s5985_s11 + $0x48] sm:$0xff]  ;;  %v388_v12 = vld [vmem:[%s5985_s11 + $0x50] sm:$0xff]  ;;  %v389_v13 = vld [vmem:[%s5985_s11 + $0x58] sm:$0xff]  ;;  %v958_v37 = vrot.slane %v6065_v36, 1  ;;  %v961_v41 = vrot.slane %v6071_v39, 1  ;;  %v1620_v63 = vrot.slane %v6065_v36, 2 }
  0x3f   : > { %5116 = vmatmul.mubr.msk.f32.vlgmr.msra.gmra.mxu0 %vm419_vm0, %v379_v3  ;;  %v390_v14 = vld [vmem:[%s5985_s11 + $0x60] sm:$0xff]  ;;  %v391_v15 = vld [vmem:[%s5985_s11 + $0x68] sm:$0xff]  ;;  %v392_v16 = vld [vmem:[%s5985_s11 + $0x70] sm:$0xff]  ;;  %v1621_v0 = vrot.slane %v6061_v35, 2  ;;  %s8172_s15 = scalar_lea.vmem [#allocation5], %s4293_s28  ;;  %s4648_s30 = sshll.u32 %s5905_s17, 10 }
  0x40   : > { %5118 = vmatprep.mubr.msk.f32.mxu0 %vm419_vm0, %v380_v4  ;;  %v393_v17 = vld [vmem:[%s5985_s11 + $0x78] sm:$0xff]  ;;  %v394_v18 = vld [vmem:[%s5985_s11 + $0x80] sm:$0xff]  ;;  %v395_v19 = vld [vmem:[%s5985_s11 + $0x88] sm:$0xff]  ;;  %v6078_v42 = vsel %vm957_vm2, %v958_v37, %v959_v38  ;;  %v6083_v43 = vsel %vm957_vm2, %v959_v38, %v961_v41  ;;  %s8191_s22 = scalar_lea.hbm %s8250_s10, %s4648_s30  ;;  %s4199_s12 = scalar_lea.sflag [#allocation4], %s5981_s19 }
  0x41   : > { %v396_v20 = vld [vmem:[%s5985_s11 + $0x90] sm:$0xff]  ;;  %v397_v21 = vld [vmem:[%s5985_s11 + $0x98] sm:$0xff]  ;;  %v398_v22 = vld [vmem:[%s5985_s11 + $0xa0] sm:$0xff]  ;;  %8353 = vst [vmem:[#allocation11_spill] sm:$0xff] %v6078_v42  ;;  %v6161_v37 = vsel %vm1619_vm4, %v1620_v63, %v1621_v0  ;;  %p8599_p12 = scmp.ne.s32.totalorder %s8349_s25, 0  ;;  %s5826_s20 = smov [#allocation5]  }
  0x42   : > { %v399_v23 = vld [vmem:[%s5985_s11 + $0xa8] sm:$0xff]  ;;  %v400_v24 = vld [vmem:[%s5985_s11 + $0xb0] sm:$0xff]  ;;  %v401_v25 = vld [vmem:[%s5985_s11 + $0xb8] sm:$0xff]  ;;  %8354 = vst [vmem:[#allocation12_spill] sm:$0xff] %v6083_v43  ;;  %s5760_s21 = sshll.u32 %s5826_s20, 4  ;;  %s5761_s21 = int_to_ptr.vmem [resolvable:$false] %s5760_s21 }
  0x43   : > { %5119 = vmatmul.mubr.msk.f32.gmra.mxu0 %vm419_vm0, %v381_v5  ;;  %v402_v26 = vld [vmem:[%s5985_s11 + $0xc0] sm:$0xff]  ;;  %v403_v27 = vld [vmem:[%s5985_s11 + $0xc8] sm:$0xff]  ;;  %v404_v28 = vld [vmem:[%s5985_s11 + $0xd0] sm:$0xff]  ;;  %8355 = vst [vmem:[#allocation13_spill] sm:$0xff] %v6161_v37  ;;  %s5762_s24 = scalar_lea.vmem %s5761_s21, 2048 }
  0x44   : > { %5121 = vmatprep.mubr.msk.f32.mxu0 %vm419_vm0, %v382_v6  ;;  %v405_v29 = vld [vmem:[%s5985_s11 + $0xd8] sm:$0xff]  ;;  %v406_v30 = vld [vmem:[%s5985_s11 + $0xe0] sm:$0xff]  ;;  %v407_v31 = vld [vmem:[%s5985_s11 + $0xe8] sm:$0xff] }
  0x45   : > { %v408_v32 = vld [vmem:[%s5985_s11 + $0xf0] sm:$0xff]  ;;  %v409_v33 = vld [vmem:[%s5985_s11 + $0xf8] sm:$0xff]  ;;  %v4327_v40 = vld [vmem:[%s8243_s3 + $0x8] sm:$0xff] }
  0x46   : > { %5163 = vmatprep.subr.mxu0 %v4327_v40  ;;  %5643 = vmatprep.subr.mxu1 %v4327_v40  ;;  %v4392_v44 = vld [vmem:[%s8243_s3 + $0x10] sm:$0xff]  ;;  %v6093_v45 = vld [vmem:[%s8243_s3] sm:$0xff] }
  0x47   : > { %5122 = vmatmul.mubr.msk.f32.gmra.mxu0 %vm419_vm0, %v383_v7  ;;  %5644 = vmatpush3.msra.mxu1 %v4327_v40  ;;  %v6099_v46 = vld [vmem:[%s8243_s3 + $0x20] sm:$0xff] }
  0x48   : > { %5124 = vmatprep.mubr.msk.f32.mxu0 %vm419_vm0, %v384_v8  ;;  %5164 = vmatpush3.msra.mxu0 %v4327_v40  ;;  %v6105_v47 = vld [vmem:[%s8242_s2] ss:$0 sm:$0xff] }
  0x49   : > { %5263 = vmatprep.subr.mxu0 %v4392_v44  ;;  %5213 = vmatprep.subr.mxu1 %v6093_v45 }
  0x4b   : > { %5125 = vmatmul.mubr.msk.f32.gmra.mxu0 %vm419_vm0, %v385_v9  ;;  %v1623_v9 = vrot.slane %v6071_v39, 2 }
  0x4c   : > { %5127 = vmatprep.mubr.msk.f32.mxu0 %vm419_vm0, %v386_v10 }
  0x4d   : > { %v6164_v38 = vsel %vm1619_vm4, %v1621_v0, %v1623_v9 }
  0x4e   : > { %8356 = vst [vmem:[#allocation14_spill] sm:$0xff] %v6164_v38 }
  0x4f   : > { %5128 = vmatmul.mubr.msk.f32.gmra.mxu0 %vm419_vm0, %v387_v11 }
  0x50   : > { %5130 = vmatprep.mubr.msk.f32.mxu0 %vm419_vm0, %v388_v12 }
  0x53   : > { %5131 = vmatmul.mubr.msk.f32.gmra.mxu0 %vm419_vm0, %v389_v13 }
  0x54   : > { %5133 = vmatprep.mubr.msk.f32.mxu0 %vm419_vm0, %v390_v14 }
  0x57   : > { %5134 = vmatmul.mubr.msk.f32.gmra.mxu0 %vm419_vm0, %v391_v15 }
  0x58   : > { %5136 = vmatprep.mubr.msk.f32.mxu0 %vm419_vm0, %v392_v16 }
  0x5b   : > { %5137 = vmatmul.mubr.msk.f32.gmra.mxu0 %vm419_vm0, %v393_v17 }
  0x5c   : > { %5139 = vmatprep.mubr.msk.f32.mxu0 %vm419_vm0, %v394_v18 }
  0x5f   : > { %5140 = vmatmul.mubr.msk.f32.gmra.mxu0 %vm419_vm0, %v395_v19 }
  0x60   : > { %5142 = vmatprep.mubr.msk.f32.mxu0 %vm419_vm0, %v396_v20 }
  0x63   : > { %5143 = vmatmul.mubr.msk.f32.gmra.mxu0 %vm419_vm0, %v397_v21 }
  0x64   : > { %5145 = vmatprep.mubr.msk.f32.mxu0 %vm419_vm0, %v398_v22 }
  0x67   : > { %5146 = vmatmul.mubr.msk.f32.gmra.mxu0 %vm419_vm0, %v399_v23 }
  0x68   : > { %5148 = vmatprep.mubr.msk.f32.mxu0 %vm419_vm0, %v400_v24 }
  0x6b   : > { %5149 = vmatmul.mubr.msk.f32.gmra.mxu0 %vm419_vm0, %v401_v25 }
  0x6c   : > { %5151 = vmatprep.mubr.msk.f32.mxu0 %vm419_vm0, %v402_v26 }
  0x6f   : > { %5152 = vmatmul.mubr.msk.f32.gmra.mxu0 %vm419_vm0, %v403_v27 }
  0x70   : > { %5154 = vmatprep.mubr.msk.f32.mxu0 %vm419_vm0, %v404_v28 }
  0x73   : > { %5155 = vmatmul.mubr.msk.f32.gmra.mxu0 %vm419_vm0, %v405_v29 }
  0x74   : > { %5157 = vmatprep.mubr.msk.f32.mxu0 %vm419_vm0, %v406_v30 }
  0x77   : > { %5158 = vmatmul.mubr.msk.f32.gmra.mxu0 %vm419_vm0, %v407_v31 }
  0x78   : > { %5160 = vmatprep.mubr.msk.f32.mxu0 %vm419_vm0, %v408_v32 }
  0x7b   : > { %5161 = vmatmul.mubr.msk.f32.gmra.mxu0 %vm419_vm0, %v409_v33 }
  0x7c   : > { %5165 = vmatprep.mubr.msk.f32.mxu0 %vm1040_vm3, %v6078_v42 }
  0x7f   : > { %5166 = vmatmul.mubr.msk.f32.vlgmr.msra.gmra.mxu0 %vm1040_vm3, %v6083_v43 }
  0x80   : > { %5264 = vmatpush3.msra.mxu0 %v4392_v44 }
  0x81   : > { %5363 = vmatprep.subr.mxu0 %v6099_v46 }
  0xff   : > { %v5117_v48 = vpop.f32.mrf.mxu0 }
 0x100   : > { %v588_v49 = vadd.f32 %v5117_v48, %v6105_v47 }
 0x101   : > { %v582_v50 = vpop.f32.mrf.mxu0 }
 0x102   : > { %v742_v51 = vmax.f32 %v588_v49, 0.0  ;;  %v583_v52 = vadd.f32 %v6105_v47, %v582_v50 }
 0x103   : > { %v5120_v53 = vpop.f32.mrf.mxu0 }
 0x104   : > { %v810_v54 = vrot.slane %v742_v51, 7  ;;  %v741_v55 = vmax.f32 %v583_v52, 0.0  ;;  %v598_v56 = vadd.f32 %v5120_v53, %v6105_v47 }
 0x105   : > { %v592_v57 = vpop.f32.mrf.mxu0 }
 0x106   : > { %v809_v58 = vrot.slane %v741_v55, 7  ;;  %v744_v59 = vmax.f32 %v598_v56, 0.0  ;;  %v593_v60 = vadd.f32 %v6105_v47, %v592_v57  ;;  %v6112_v61 = vsel %vm806_vm1, %v810_v54, 0.0 }
 0x107   : > { %v5123_v62 = vpop.f32.mrf.mxu0  ;;  %v966_v10 = vrot.slane %v6112_v61, 1  ;;  %v1628_v39 = vrot.slane %v6112_v61, 2 }
 0x108   : > { %v6117_v1 = vsel %vm806_vm1, %v809_v58, %v810_v54  ;;  %v6120_v2 = vsel %vm806_vm1, 0.0, %v809_v58  ;;  %v813_v3 = vrot.slane %v744_v59, 7  ;;  %v743_v4 = vmax.f32 %v593_v60, 0.0 }
 0x109   : > { %v608_v5 = vadd.f32 %v5123_v62, %v6105_v47  ;;  %v602_v6 = vpop.f32.mrf.mxu0  ;;  %v963_v7 = vrot.slane %v6120_v2, 1  ;;  %v964_v8 = vrot.slane %v6117_v1, 1  ;;  %v1625_v18 = vrot.slane %v6120_v2, 2 }
 0x10a   : > { %v6128_v11 = vsel %vm806_vm1, %v813_v3, 0.0  ;;  %v812_v12 = vrot.slane %v743_v4, 7  ;;  %v603_v13 = vadd.f32 %v6105_v47, %v602_v6  ;;  %v1626_v31 = vrot.slane %v6117_v1, 2 }
 0x10b   : > { %v971_v14 = vrot.slane %v6128_v11, 1  ;;  %v746_v15 = vmax.f32 %v608_v5, 0.0  ;;  %v5126_v16 = vpop.f32.mrf.mxu0  ;;  %v6133_v17 = vsel %vm957_vm2, %v963_v7, %v964_v8  ;;  %v6146_v25 = vsel %vm957_vm2, %v964_v8, %v966_v10 }
 0x10c   : > { %v6137_v19 = vsel %vm806_vm1, %v812_v12, %v813_v3  ;;  %v6140_v20 = vsel %vm806_vm1, 0.0, %v812_v12  ;;  %v745_v21 = vmax.f32 %v603_v13, 0.0  ;;  %v618_v22 = vadd.f32 %v5126_v16, %v6105_v47  ;;  %5168 = vmatprep.mubr.msk.f32.mxu0 %vm1040_vm3, %v6133_v17 }
 0x10d   : > { %v816_v23 = vrot.slane %v746_v15, 7  ;;  %v612_v24 = vpop.f32.mrf.mxu0  ;;  %v968_v26 = vrot.slane %v6140_v20, 1  ;;  %v969_v27 = vrot.slane %v6137_v19, 1  ;;  %5169 = vmatmul.mubr.msk.f32.gmra.mxu0 %vm1040_vm3, %v6146_v25  ;;  %v1633_v53 = vrot.slane %v6128_v11, 2 }
 0x10e   : > { %v815_v28 = vrot.slane %v745_v21, 7  ;;  %v748_v29 = vmax.f32 %v618_v22, 0.0  ;;  %v613_v30 = vadd.f32 %v6105_v47, %v612_v24  ;;  %v6186_v56 = vsel %vm1619_vm4, %v1625_v18, %v1626_v31 }
 0x10f   : > { %v5129_v32 = vpop.f32.mrf.mxu0  ;;  %v6155_v33 = vsel %vm957_vm2, %v968_v26, %v969_v27  ;;  %v6158_v34 = vsel %vm957_vm2, %v969_v27, %v971_v14  ;;  %v6168_v40 = vsel %vm806_vm1, %v816_v23, 0.0  ;;  %8357 = vst [vmem:[#allocation15_spill] sm:$0xff] %v6186_v56  ;;  %v1630_v61 = vrot.slane %v6140_v20, 2  ;;  %v6217_v14 = vld [vmem:[%s8243_s3 + $0x18] sm:$0xff] }
 0x110   : > { %v6171_v41 = vsel %vm806_vm1, %v815_v28, %v816_v23  ;;  %v6174_v44 = vsel %vm806_vm1, 0.0, %v815_v28  ;;  %5171 = vmatprep.mubr.msk.f32.mxu0 %vm1040_vm3, %v6155_v33  ;;  %v819_v48 = vrot.slane %v748_v29, 7  ;;  %v747_v49 = vmax.f32 %v613_v30, 0.0 }
 0x111   : > { %v628_v50 = vadd.f32 %v5129_v32, %v6105_v47  ;;  %v622_v51 = vpop.f32.mrf.mxu0  ;;  %v973_v52 = vrot.slane %v6174_v44, 1  ;;  %5172 = vmatmul.mubr.msk.f32.gmra.mxu0 %vm1040_vm3, %v6158_v34  ;;  %v974_v55 = vrot.slane %v6171_v41, 1  ;;  %v976_v57 = vrot.slane %v6168_v40, 1 }
 0x112   : > { %v623_v54 = vadd.f32 %v6105_v47, %v622_v51  ;;  %v818_v58 = vrot.slane %v747_v49, 7  ;;  %5265 = vmatprep.mubr.msk.f32.mxu0 %vm1040_vm3, %v6161_v37  ;;  %v6193_v62 = vsel %vm806_vm1, %v819_v48, 0.0  ;;  %v1631_v3 = vrot.slane %v6137_v19, 2 }
 0x113   : > { %v750_v59 = vmax.f32 %v628_v50, 0.0  ;;  %v5132_v60 = vpop.f32.mrf.mxu0  ;;  %v6204_v7 = vsel %vm957_vm2, %v973_v52, %v974_v55  ;;  %v6210_v13 = vsel %vm957_vm2, %v974_v55, %v976_v57  ;;  %v981_v15 = vrot.slane %v6193_v62, 1  ;;  %v6267_v55 = vld [vmem:[%s8243_s3 + $0x30] sm:$0xff] }
 0x114   : > { %v749_v63 = vmax.f32 %v623_v54, 0.0  ;;  %v638_v0 = vadd.f32 %v5132_v60, %v6105_v47  ;;  %v6198_v4 = vsel %vm806_vm1, %v818_v58, %v819_v48  ;;  %v6201_v5 = vsel %vm806_vm1, 0.0, %v818_v58  ;;  %5174 = vmatprep.mubr.msk.f32.mxu1 %vm1040_vm3, %v6204_v7 }
 0x115   : > { %v822_v6 = vrot.slane %v750_v59, 7  ;;  %v632_v8 = vpop.f32.mrf.mxu0  ;;  %5266 = vmatmul.mubr.msk.f32.vlgmr.msra.gmra.mxu0 %vm1040_vm3, %v6164_v38  ;;  %5175 = vmatmul.mubr.msk.f32.vlgmr.msra.gmra.mxu1 %vm1040_vm3, %v6210_v13  ;;  %v978_v18 = vrot.slane %v6201_v5, 1  ;;  %v979_v21 = vrot.slane %v6198_v4, 1  ;;  %v6227_v22 = vsel %vm1619_vm4, %v1626_v31, %v1628_v39 }
 0x116   : > { %v821_v9 = vrot.slane %v749_v63, 7  ;;  %v752_v10 = vmax.f32 %v638_v0, 0.0  ;;  %v633_v12 = vadd.f32 %v6105_v47, %v632_v8  ;;  %5268 = vmatprep.mubr.msk.f32.mxu0 %vm1040_vm3, %v6186_v56  ;;  %8358 = vst [vmem:[#allocation16_spill] sm:$0xff] %v6227_v22  ;;  %v6239_v27 = vsel %vm1619_vm4, %v1630_v61, %v1631_v3  ;;  %5214 = vmatpush3.msra.mxu1 %v6093_v45 }
 0x117   : > { %v5135_v16 = vpop.f32.mrf.mxu0  ;;  %v6230_v23 = vsel %vm806_vm1, %v822_v6, 0.0  ;;  %8359 = vst [vmem:[#allocation17_spill] sm:$0xff] %v6239_v27  ;;  %5364 = vmatpush3.msra.mxu0 %v6099_v46  ;;  %v6245_v31 = vsel %vm957_vm2, %v978_v18, %v979_v21  ;;  %5313 = vmatprep.subr.mxu1 %v6217_v14  ;;  %v6252_v48 = vsel %vm957_vm2, %v979_v21, %v981_v15  ;;  %v1635_v54 = vrot.slane %v6174_v44, 2 }
 0x118   : > { %v6233_v24 = vsel %vm806_vm1, %v821_v9, %v822_v6  ;;  %v6236_v26 = vsel %vm806_vm1, 0.0, %v821_v9  ;;  %v825_v28 = vrot.slane %v752_v10, 7  ;;  %v751_v29 = vmax.f32 %v633_v12, 0.0  ;;  %5177 = vmatprep.mubr.msk.f32.mxu1 %vm1040_vm3, %v6245_v31  ;;  %5463 = vmatprep.subr.mxu0 %v6267_v55 }
 0x119   : > { %v648_v30 = vadd.f32 %v5135_v16, %v6105_v47  ;;  %v642_v32 = vpop.f32.mrf.mxu0  ;;  %5269 = vmatmul.mubr.msk.f32.gmra.mxu0 %vm1040_vm3, %v6227_v22  ;;  %v983_v45 = vrot.slane %v6236_v26, 1  ;;  %v984_v46 = vrot.slane %v6233_v24, 1  ;;  %v986_v49 = vrot.slane %v6230_v23, 1  ;;  %5178 = vmatmul.mubr.msk.f32.gmra.mxu1 %vm1040_vm3, %v6252_v48 }
 0x11a   : > { %v643_v39 = vadd.f32 %v6105_v47, %v642_v32  ;;  %v824_v50 = vrot.slane %v751_v29, 7  ;;  %5271 = vmatprep.mubr.msk.f32.mxu0 %vm1040_vm3, %v6239_v27  ;;  %v6270_v57 = vsel %vm806_vm1, %v825_v28, 0.0  ;;  %v6276_v60 = vsel %vm1619_vm4, %v1631_v3, %v1633_v53 }
 0x11b   : > { %v754_v51 = vmax.f32 %v648_v30, 0.0  ;;  %v5138_v52 = vpop.f32.mrf.mxu0  ;;  %8360 = vst [vmem:[#allocation18_spill] sm:$0xff] %v6276_v60  ;;  %v6286_v6 = vsel %vm957_vm2, %v983_v45, %v984_v46  ;;  %v6292_v53 = vsel %vm957_vm2, %v984_v46, %v986_v49  ;;  %v1636_v3 = vrot.slane %v6171_v41, 2 }
 0x11c   : > { %v753_v58 = vmax.f32 %v643_v39, 0.0  ;;  %v658_v59 = vadd.f32 %v5138_v52, %v6105_v47  ;;  %v6280_v61 = vsel %vm806_vm1, %v824_v50, %v825_v28  ;;  %v6283_v63 = vsel %vm806_vm1, 0.0, %v824_v50  ;;  %5180 = vmatprep.mubr.msk.f32.mxu1 %vm1040_vm3, %v6286_v6  ;;  %8361 = vst [vmem:[#allocation19_spill] sm:$0xff] %v6292_v53 }
 0x11d   : > { %v828_v0 = vrot.slane %v754_v51, 7  ;;  %v652_v8 = vpop.f32.mrf.mxu0  ;;  %5272 = vmatmul.mubr.msk.f32.gmra.mxu0 %vm1040_vm3, %v6276_v60  ;;  %5181 = vmatmul.mubr.msk.f32.gmra.mxu1 %vm1040_vm3, %v6292_v53  ;;  %v988_v15 = vrot.slane %v6283_v63, 1  ;;  %v989_v16 = vrot.slane %v6280_v61, 1  ;;  %v1638_v18 = vrot.slane %v6168_v40, 2 }
 0x11e   : > { %v827_v9 = vrot.slane %v753_v58, 7  ;;  %v756_v10 = vmax.f32 %v658_v59, 0.0  ;;  %v653_v11 = vadd.f32 %v6105_v47, %v652_v8  ;;  %v991_v21 = vrot.slane %v6270_v57, 1 }
 0x11f   : > { %v5141_v12 = vpop.f32.mrf.mxu0  ;;  %v6304_v28 = vsel %vm806_vm1, %v828_v0, 0.0  ;;  %v6310_v39 = vsel %vm1619_vm4, %v1635_v54, %v1636_v3  ;;  %v6316_v40 = vsel %vm957_vm2, %v988_v15, %v989_v16  ;;  %v6323_v51 = vsel %vm1619_vm4, %v1636_v3, %v1638_v18 }
 0x120   : > { %v6307_v29 = vsel %vm806_vm1, %v827_v9, %v828_v0  ;;  %v831_v30 = vrot.slane %v756_v10, 7  ;;  %v755_v32 = vmax.f32 %v653_v11, 0.0  ;;  %8362 = vst [vmem:[#allocation20_spill] sm:$0xff] %v6310_v39  ;;  %v668_v45 = vadd.f32 %v5141_v12, %v6105_v47  ;;  %5274 = vmatprep.mubr.msk.f32.mxu0 %vm1040_vm3, %v6310_v39  ;;  %8363 = vst [vmem:[#allocation21_spill] sm:$0xff] %v6316_v40 }
 0x121   : > { %v662_v46 = vpop.f32.mrf.mxu0  ;;  %v6320_v50 = vsel %vm957_vm2, %v989_v16, %v991_v21  ;;  %8365 = vst [vmem:[#allocation23_spill] sm:$0xff] %v6323_v51  ;;  %v6326_v52 = vsel %vm806_vm1, 0.0, %v827_v9  ;;  %5183 = vmatprep.mubr.msk.f32.mxu1 %vm1040_vm3, %v6316_v40  ;;  %5275 = vmatmul.mubr.msk.f32.gmra.mxu0 %vm1040_vm3, %v6323_v51  ;;  %v1640_v59 = vrot.slane %v6201_v5, 2  ;;  %v1643_v8 = vrot.slane %v6193_v62, 2 }
 0x122   : > { %v663_v49 = vadd.f32 %v6105_v47, %v662_v46  ;;  %8364 = vst [vmem:[#allocation22_spill] sm:$0xff] %v6320_v50  ;;  %v830_v54 = vrot.slane %v755_v32, 7  ;;  %v758_v58 = vmax.f32 %v668_v45, 0.0  ;;  %v1648_v10 = vrot.slane %v6230_v23, 2  ;;  %5184 = vmatmul.mubr.msk.f32.gmra.mxu1 %vm1040_vm3, %v6320_v50 }
 0x123   : > { %v5144_v0 = vpop.f32.mrf.mxu0  ;;  %v1641_v9 = vrot.slane %v6198_v4, 2  ;;  %v996_v12 = vrot.slane %v6304_v28, 1  ;;  %v6341_v15 = vsel %vm806_vm1, %v831_v30, 0.0  ;;  %v993_v21 = vrot.slane %v6326_v52, 1 }
 0x124   : > { %v757_v11 = vmax.f32 %v663_v49, 0.0  ;;  %v678_v16 = vadd.f32 %v5144_v0, %v6105_v47  ;;  %v6345_v62 = vsel %vm806_vm1, 0.0, %v830_v54  ;;  %v994_v32 = vrot.slane %v6307_v29, 1 }
 0x125   : > { %v672_v18 = vpop.f32.mrf.mxu0  ;;  %v6348_v23 = vsel %vm1619_vm4, %v1640_v59, %v1641_v9  ;;  %v834_v45 = vrot.slane %v758_v58, 7  ;;  %v6356_v0 = vsel %vm1619_vm4, %v1641_v9, %v1643_v8  ;;  %v1001_v59 = vrot.slane %v6341_v15, 1 }
 0x126   : > { %8366 = vst [vmem:[#allocation24_spill] sm:$0xff] %v6348_v23  ;;  %5277 = vmatprep.mubr.msk.f32.mxu0 %vm1040_vm3, %v6348_v23  ;;  %v760_v46 = vmax.f32 %v678_v16, 0.0  ;;  %v673_v49 = vadd.f32 %v6105_v47, %v672_v18  ;;  %8367 = vst [vmem:[#allocation25_spill] sm:$0xff] %v6356_v0  ;;  %v6361_v42 = vsel %vm806_vm1, %v830_v54, %v831_v30  ;;  %v833_v38 = vrot.slane %v757_v11, 7 }
 0x127   : > { %v5147_v3 = vpop.f32.mrf.mxu0  ;;  %8368 = vst [vmem:[#allocation26_spill] sm:$0xff] %v6361_v42  ;;  %5278 = vmatmul.mubr.msk.f32.gmra.mxu0 %vm1040_vm3, %v6356_v0  ;;  %v6366_v16 = vsel %vm957_vm2, %v993_v21, %v994_v32  ;;  %v6369_v8 = vsel %vm957_vm2, %v994_v32, %v996_v12  ;;  %v1645_v43 = vrot.slane %v6236_v26, 2  ;;  %v1646_v30 = vrot.slane %v6233_v24, 2 }
 0x128   : > { %v837_v58 = vrot.slane %v760_v46, 7  ;;  %8369 = vst [vmem:[#allocation27_spill] sm:$0xff] %v6366_v16  ;;  %v759_v18 = vmax.f32 %v673_v49, 0.0  ;;  %8370 = vst [vmem:[#allocation28_spill] sm:$0xff] %v6369_v8  ;;  %5186 = vmatprep.mubr.msk.f32.mxu1 %vm1040_vm3, %v6366_v16  ;;  %v688_v54 = vadd.f32 %v5147_v3, %v6105_v47  ;;  %v998_v11 = vrot.slane %v6345_v62, 1 }
 0x129   : > { %v682_v9 = vpop.f32.mrf.mxu0  ;;  %v6379_v21 = vsel %vm806_vm1, %v834_v45, 0.0  ;;  %5187 = vmatmul.mubr.msk.f32.gmra.mxu1 %vm1040_vm3, %v6369_v8  ;;  %v999_v12 = vrot.slane %v6361_v42, 1  ;;  %v6386_v37 = vsel %vm806_vm1, %v833_v38, %v834_v45  ;;  %v6389_v3 = vsel %vm806_vm1, 0.0, %v833_v38 }
 0x12a   : > { %v683_v32 = vadd.f32 %v6105_v47, %v682_v9  ;;  %8371 = vst [vmem:[#allocation29_spill] sm:$0xff] %v6386_v37  ;;  %v836_v0 = vrot.slane %v759_v18, 7  ;;  %v6392_v46 = vsel %vm1619_vm4, %v1645_v43, %v1646_v30  ;;  %v6395_v23 = vsel %vm806_vm1, %v837_v58, 0.0 }
 0x12b   : > { %v5150_v49 = vpop.f32.mrf.mxu0  ;;  %8372 = vst [vmem:[#allocation30_spill] sm:$0xff] %v6392_v46  ;;  %5280 = vmatprep.mubr.msk.f32.mxu0 %vm1040_vm3, %v6392_v46  ;;  %v762_v51 = vmax.f32 %v688_v54, 0.0  ;;  %v6400_v9 = vsel %vm957_vm2, %v998_v11, %v999_v12  ;;  %v1006_v60 = vrot.slane %v6379_v21, 1  ;;  %v6406_v43 = vsel %vm957_vm2, %v999_v12, %v1001_v59 }
 0x12c   : > { %8373 = vst [vmem:[#allocation31_spill] sm:$0xff] %v6400_v9  ;;  %v761_v39 = vmax.f32 %v683_v32, 0.0  ;;  %5189 = vmatprep.mubr.msk.f32.mxu1 %vm1040_vm3, %v6400_v9  ;;  %8374 = vst [vmem:[#allocation32_spill] sm:$0xff] %v6406_v43  ;;  %v6409_v38 = vsel %vm1619_vm4, %v1646_v30, %v1648_v10  ;;  %v1650_v18 = vrot.slane %v6283_v63, 2  ;;  %v1651_v11 = vrot.slane %v6280_v61, 2 }
 0x12d   : > { %v692_v45 = vpop.f32.mrf.mxu0  ;;  %8375 = vst [vmem:[#allocation33_spill] sm:$0xff] %v6409_v38  ;;  %5190 = vmatmul.mubr.msk.f32.gmra.mxu1 %vm1040_vm3, %v6406_v43  ;;  %5281 = vmatmul.mubr.msk.f32.gmra.mxu0 %vm1040_vm3, %v6409_v38  ;;  %v698_v32 = vadd.f32 %v5150_v49, %v6105_v47  ;;  %v1003_v59 = vrot.slane %v6389_v3, 1  ;;  %v1011_v10 = vrot.slane %v6395_v23, 1  ;;  %v6422_v30 = vsel %vm806_vm1, %v836_v0, %v837_v58 }
 0x12e   : > { %v1004_v54 = vrot.slane %v6386_v37, 1  ;;  %v693_v46 = vadd.f32 %v6105_v47, %v692_v45  ;;  %v6427_v27 = vsel %vm806_vm1, 0.0, %v836_v0  ;;  %v840_v38 = vrot.slane %v762_v51, 7 }
 0x12f   : > { %v5153_v12 = vpop.f32.mrf.mxu0  ;;  %v839_v22 = vrot.slane %v761_v39, 7  ;;  %v1655_v56 = vrot.slane %v6326_v52, 2  ;;  %v6431_v43 = vsel %vm1619_vm4, %v1650_v18, %v1651_v11  ;;  %v764_v9 = vmax.f32 %v698_v32, 0.0 }
 0x130   : > { %8376 = vst [vmem:[#allocation34_spill] sm:$0xff] %v6431_v43  ;;  %v6434_v8 = vsel %vm957_vm2, %v1003_v59, %v1004_v54  ;;  %v763_v58 = vmax.f32 %v693_v46, 0.0  ;;  %5283 = vmatprep.mubr.msk.f32.mxu0 %vm1040_vm3, %v6431_v43  ;;  %v6441_v51 = vsel %vm957_vm2, %v1004_v54, %v1006_v60  ;;  %v8379_v39 = vrot.slane %v6270_v57, 2 }
 0x131   : > { %v702_v49 = vpop.f32.mrf.mxu0  ;;  %8377 = vst [vmem:[#allocation35_spill] sm:$0xff] %v6434_v8  ;;  %5192 = vmatprep.mubr.msk.f32.mxu1 %vm1040_vm3, %v6434_v8  ;;  %8378 = vst [vmem:[#allocation36_spill] sm:$0xff] %v6441_v51  ;;  %v1656_v45 = vrot.slane %v6307_v29, 2  ;;  %v708_v18 = vadd.f32 %v5153_v12, %v6105_v47  ;;  %v843_v59 = vrot.slane %v764_v9, 7  ;;  %v1008_v60 = vrot.slane %v6427_v27, 1 }
 0x132   : > { %v6446_v0 = vsel %vm1619_vm4, %v1651_v11, %v8379_v39  ;;  %5193 = vmatmul.mubr.msk.f32.gmra.mxu1 %vm1040_vm3, %v6441_v51  ;;  %v1009_v57 = vrot.slane %v6422_v30, 1  ;;  %v842_v54 = vrot.slane %v763_v58, 7  ;;  %v703_v12 = vadd.f32 %v6105_v47, %v702_v49 }
 0x133   : > { %8380 = vst [vmem:[#allocation37_spill] sm:$0xff] %v6446_v0  ;;  %v5156_v32 = vpop.f32.mrf.mxu0  ;;  %5284 = vmatmul.mubr.msk.f32.gmra.mxu0 %vm1040_vm3, %v6446_v0  ;;  %v6458_v11 = vsel %vm1619_vm4, %v1655_v56, %v1656_v45  ;;  %v766_v39 = vmax.f32 %v708_v18, 0.0  ;;  %v6462_v9 = vsel %vm806_vm1, %v840_v38, 0.0  ;;  %v6465_v46 = vsel %vm806_vm1, %v839_v22, %v840_v38 }
 0x134   : > { %8381 = vst [vmem:[#allocation38_spill] sm:$0xff] %v6458_v11  ;;  %v6468_v0 = vsel %vm806_vm1, 0.0, %v839_v22  ;;  %5286 = vmatprep.mubr.msk.f32.mxu0 %vm1040_vm3, %v6458_v11  ;;  %v6473_v58 = vsel %vm957_vm2, %v1008_v60, %v1009_v57  ;;  %v6476_v56 = vsel %vm806_vm1, %v843_v59, 0.0  ;;  %v765_v18 = vmax.f32 %v703_v12, 0.0 }
 0x135   : > { %v712_v43 = vpop.f32.mrf.mxu0  ;;  %8382 = vst [vmem:[#allocation39_spill] sm:$0xff] %v6473_v58  ;;  %v846_v49 = vrot.slane %v766_v39, 7  ;;  %5195 = vmatprep.mubr.msk.f32.mxu1 %vm1040_vm3, %v6473_v58  ;;  %v8383_v38 = vrot.slane %v6304_v28, 2  ;;  %v6486_v8 = vsel %vm957_vm2, %v1009_v57, %v1011_v10  ;;  %v1660_v60 = vrot.slane %v6345_v62, 2 }
 0x136   : > { %8385 = vst [vmem:[#allocation41_spill] sm:$0xff] %v6486_v8  ;;  %v1661_v39 = vrot.slane %v6361_v42, 2  ;;  %v718_v11 = vadd.f32 %v5156_v32, %v6105_v47  ;;  %v1016_v12 = vrot.slane %v6462_v9, 1  ;;  %v6495_v28 = vsel %vm806_vm1, %v842_v54, %v843_v59  ;;  %5196 = vmatmul.mubr.msk.f32.gmra.mxu1 %vm1040_vm3, %v6486_v8 }
 0x137   : > { %v6483_v51 = vsel %vm1619_vm4, %v1656_v45, %v8383_v38  ;;  %v5159_v22 = vpop.f32.mrf.mxu0  ;;  %v1013_v10 = vrot.slane %v6468_v0, 1  ;;  %v1014_v45 = vrot.slane %v6465_v46, 1  ;;  %v6502_v57 = vsel %vm806_vm1, 0.0, %v842_v54 }
 0x138   : > { %8384 = vst [vmem:[#allocation40_spill] sm:$0xff] %v6483_v51  ;;  %5287 = vmatmul.mubr.msk.f32.gmra.mxu0 %vm1040_vm3, %v6483_v51  ;;  %v845_v38 = vrot.slane %v765_v18, 7  ;;  %v6505_v51 = vsel %vm1619_vm4, %v1660_v60, %v1661_v39  ;;  %v768_v32 = vmax.f32 %v718_v11, 0.0  ;;  %v1021_v58 = vrot.slane %v6476_v56, 1 }
 0x139   : > { %8386 = vst [vmem:[#allocation42_spill] sm:$0xff] %v6505_v51  ;;  %v6509_v59 = vsel %vm806_vm1, %v846_v49, 0.0  ;;  %5289 = vmatprep.mubr.msk.f32.mxu0 %vm1040_vm3, %v6505_v51  ;;  %v6514_v8 = vsel %vm957_vm2, %v1013_v10, %v1014_v45  ;;  %v713_v16 = vadd.f32 %v6105_v47, %v712_v43  ;;  %v722_v54 = vpop.f32.mrf.mxu0  ;;  %v6520_v11 = vsel %vm957_vm2, %v1014_v45, %v1016_v12 }
 0x13a   : > { %8387 = vst [vmem:[#allocation43_spill] sm:$0xff] %v6514_v8  ;;  %v849_v50 = vrot.slane %v768_v32, 7  ;;  %5198 = vmatprep.mubr.msk.f32.mxu1 %vm1040_vm3, %v6514_v8  ;;  %8388 = vst [vmem:[#allocation44_spill] sm:$0xff] %v6520_v11  ;;  %v8389_v18 = vrot.slane %v6341_v15, 2  ;;  %v1665_v51 = vrot.slane %v6389_v3, 2  ;;  %v1666_v43 = vrot.slane %v6386_v37, 2 }
 0x13b   : > { %v767_v42 = vmax.f32 %v713_v16, 0.0  ;;  %5199 = vmatmul.mubr.msk.f32.gmra.mxu1 %vm1040_vm3, %v6520_v11  ;;  %v728_v10 = vadd.f32 %v5159_v22, %v6105_v47  ;;  %v1018_v12 = vrot.slane %v6502_v57, 1  ;;  %v1026_v15 = vrot.slane %v6509_v59, 1 }
 0x13c   : > { %v6525_v60 = vsel %vm1619_vm4, %v1661_v39, %v8389_v18  ;;  %v6537_v39 = vsel %vm806_vm1, %v845_v38, %v846_v49  ;;  %v1019_v45 = vrot.slane %v6495_v28, 1  ;;  %v723_v16 = vadd.f32 %v6105_v47, %v722_v54 }
 0x13d   : > { %8390 = vst [vmem:[#allocation45_spill] sm:$0xff] %v6525_v60  ;;  %5290 = vmatmul.mubr.msk.f32.gmra.mxu0 %vm1040_vm3, %v6525_v60  ;;  %v6542_v32 = vsel %vm806_vm1, 0.0, %v845_v38  ;;  %v848_v18 = vrot.slane %v767_v42, 7  ;;  %v6545_v60 = vsel %vm1619_vm4, %v1665_v51, %v1666_v43  ;;  %v1670_v22 = vrot.slane %v6427_v27, 2 }
 0x13e   : > { %8391 = vst [vmem:[#allocation46_spill] sm:$0xff] %v6545_v60  ;;  %5292 = vmatprep.mubr.msk.f32.mxu0 %vm1040_vm3, %v6545_v60  ;;  %v770_v11 = vmax.f32 %v728_v10, 0.0  ;;  %v6551_v49 = vsel %vm957_vm2, %v1018_v12, %v1019_v45  ;;  %v769_v8 = vmax.f32 %v723_v16, 0.0  ;;  %v6554_v37 = vsel %vm957_vm2, %v1019_v45, %v1021_v58 }
 0x13f   : > { %8392 = vst [vmem:[#allocation47_spill] sm:$0xff] %v6551_v49  ;;  %8393 = vst [vmem:[#allocation48_spill] sm:$0xff] %v6554_v37  ;;  %v6557_v38 = vsel %vm806_vm1, %v849_v50, 0.0  ;;  %v6560_v42 = vsel %vm806_vm1, %v848_v18, %v849_v50  ;;  %5201 = vmatprep.mubr.msk.f32.mxu1 %vm1040_vm3, %v6551_v49  ;;  %v8394_v51 = vrot.slane %v6379_v21, 2  ;;  %v1671_v10 = vrot.slane %v6422_v30, 2 }
 0x140   : > { %v852_v12 = vrot.slane %v770_v11, 7  ;;  %v851_v16 = vrot.slane %v769_v8, 7  ;;  %5202 = vmatmul.mubr.msk.f32.gmra.mxu1 %vm1040_vm3, %v6554_v37  ;;  %v1023_v50 = vrot.slane %v6542_v32, 1  ;;  %v1024_v58 = vrot.slane %v6537_v39, 1 }
 0x141   : > { %v6567_v54 = vsel %vm1619_vm4, %v1666_v43, %v8394_v51  ;;  %v6577_v45 = vsel %vm806_vm1, 0.0, %v848_v18  ;;  %v6580_v21 = vsel %vm1619_vm4, %v1670_v22, %v1671_v10  ;;  %v1675_v43 = vrot.slane %v6468_v0, 2 }
 0x142   : > { %8395 = vst [vmem:[#allocation49_spill] sm:$0xff] %v6567_v54  ;;  %5293 = vmatmul.mubr.msk.f32.gmra.mxu0 %vm1040_vm3, %v6567_v54  ;;  %8396 = vst [vmem:[#allocation50_spill] sm:$0xff] %v6580_v21  ;;  %v1676_v8 = vrot.slane %v6465_v46, 2  ;;  %v6585_v11 = vsel %vm806_vm1, %v851_v16, %v852_v12  ;;  %v6588_v51 = vsel %vm806_vm1, 0.0, %v851_v16  ;;  %v6593_v54 = vsel %vm957_vm2, %v1023_v50, %v1024_v58 }
 0x143   : > { %5295 = vmatprep.mubr.msk.f32.mxu0 %vm1040_vm3, %v6580_v21  ;;  %8397 = vst [vmem:[#allocation51_spill] sm:$0xff] %v6593_v54  ;;  %v1031_v18 = vrot.slane %v6557_v38, 1  ;;  %v922_v22 = vsel %vm806_vm1, %v852_v12, 0.0  ;;  %5204 = vmatprep.mubr.msk.f32.mxu1 %vm1040_vm3, %v6593_v54  ;;  %v6600_v60 = vsel %vm957_vm2, %v1024_v58, %v1026_v15  ;;  %v8399_v37 = vrot.slane %v6395_v23, 2 }
 0x144   : > { %8398 = vst [vmem:[#allocation52_spill] sm:$0xff] %v6600_v60  ;;  %5205 = vmatmul.mubr.msk.f32.gmra.mxu1 %vm1040_vm3, %v6600_v60  ;;  %v6612_v50 = vsel %vm1619_vm4, %v1675_v43, %v1676_v8  ;;  %v1028_v12 = vrot.slane %v6577_v45, 1  ;;  %v1029_v21 = vrot.slane %v6560_v42, 1  ;;  %v1680_v15 = vrot.slane %v6502_v57, 2 }
 0x145   : > { %v6605_v16 = vsel %vm1619_vm4, %v1671_v10, %v8399_v37  ;;  %8401 = vst [vmem:[#allocation54_spill] sm:$0xff] %v6612_v50  ;;  %v1678_v23 = vrot.slane %v6462_v9, 2  ;;  %v1681_v37 = vrot.slane %v6495_v28, 2  ;;  %v1033_v10 = vrot.slane %v6588_v51, 1 }
 0x146   : > { %8400 = vst [vmem:[#allocation53_spill] sm:$0xff] %v6605_v16  ;;  %5296 = vmatmul.mubr.msk.f32.gmra.mxu0 %vm1040_vm3, %v6605_v16  ;;  %v1034_v58 = vrot.slane %v6585_v11, 1  ;;  %v6624_v43 = vsel %vm957_vm2, %v1028_v12, %v1029_v21  ;;  %v6627_v16 = vsel %vm957_vm2, %v1029_v21, %v1031_v18  ;;  %v1036_v60 = vrot.slane %v922_v22, 1 }
 0x147   : > { %5298 = vmatprep.mubr.msk.f32.mxu0 %vm1040_vm3, %v6612_v50  ;;  %8402 = vst [vmem:[#allocation55_spill] sm:$0xff] %v6624_v43  ;;  %8403 = vst [vmem:[#allocation56_spill] sm:$0xff] %v6627_v16  ;;  %5207 = vmatprep.mubr.msk.f32.mxu1 %vm1040_vm3, %v6624_v43  ;;  %v6632_v9 = vsel %vm1619_vm4, %v1676_v8, %v1678_v23  ;;  %v6642_v12 = vsel %vm1619_vm4, %v1680_v15, %v1681_v37  ;;  %v1685_v21 = vrot.slane %v6542_v32, 2 }
 0x148   : > { %v6635_v50 = vsel %vm957_vm2, %v1033_v10, %v1034_v58  ;;  %5208 = vmatmul.mubr.msk.f32.gmra.mxu1 %vm1040_vm3, %v6627_v16  ;;  %8405 = vst [vmem:[#allocation58_spill] sm:$0xff] %v6642_v12  ;;  %v1686_v18 = vrot.slane %v6537_v39, 2  ;;  %v1683_v43 = vrot.slane %v6476_v56, 2  ;;  %v6652_v8 = vsel %vm957_vm2, %v1034_v58, %v1036_v60 }
 0x149   : > { %8404 = vst [vmem:[#allocation57_spill] sm:$0xff] %v6635_v50  ;;  %5210 = vmatprep.mubr.msk.f32.mxu1 %vm1040_vm3, %v6635_v50  ;;  %8406 = vst [vmem:[#allocation59_spill] sm:$0xff] %v6652_v8  ;;  %v1690_v15 = vrot.slane %v6577_v45, 2  ;;  %v1691_v10 = vrot.slane %v6560_v42, 2  ;;  %v1696_v58 = vrot.slane %v6585_v11, 2 }
 0x14a   : > { %5299 = vmatmul.mubr.msk.f32.gmra.mxu0 %vm1040_vm3, %v6632_v9  ;;  %v6655_v23 = vsel %vm1619_vm4, %v1681_v37, %v1683_v43  ;;  %v6662_v56 = vsel %vm1619_vm4, %v1685_v21, %v1686_v18  ;;  %v6686_v43 = vld [vmem:[%s8243_s3 + $0x28] sm:$0xff] }
 0x14b   : > { %5301 = vmatprep.mubr.msk.f32.mxu0 %vm1040_vm3, %v6642_v12  ;;  %v1688_v12 = vrot.slane %v6509_v59, 2  ;;  %v6679_v37 = vsel %vm1619_vm4, %v1690_v15, %v1691_v10  ;;  %v1695_v59 = vrot.slane %v6588_v51, 2  ;;  %v8410_v15 = vld [vmem:[#allocation29_spill] sm:$0xff] }
 0x14c   : > { %5211 = vmatmul.mubr.msk.f32.gmra.mxu1 %vm1040_vm3, %v6652_v8 }
 0x14d   : > { %5215 = vmatprep.mubr.msk.f32.mxu1 %vm1040_vm3, %v6065_v36  ;;  %v6672_v60 = vsel %vm1619_vm4, %v1686_v18, %v1688_v12  ;;  %v1693_v12 = vrot.slane %v6557_v38, 2  ;;  %v6703_v38 = vsel %vm1619_vm4, %v1695_v59, %v1696_v58  ;;  %v1698_v18 = vrot.slane %v922_v22, 2  ;;  %v6727_v22 = vld [vmem:[%s8243_s3 + $0x40] sm:$0xff] }
 0x14e   : > { %5302 = vmatmul.mubr.msk.f32.gmra.mxu0 %vm1040_vm3, %v6655_v23  ;;  %v8412_v59 = vld [vmem:[#allocation31_spill] sm:$0xff] }
 0x14f   : > { %5304 = vmatprep.mubr.msk.f32.mxu0 %vm1040_vm3, %v6662_v56  ;;  %v6695_v21 = vsel %vm1619_vm4, %v1691_v10, %v1693_v12  ;;  %v8411_v10 = vld [vmem:[#allocation28_spill] sm:$0xff]  ;;  %v5162_v12 = vpop.f32.mrf.mxu0 }
 0x150   : > { %5216 = vmatmul.mubr.msk.f32.vlgmr.msra.gmra.mxu1 %vm1040_vm3, %v6061_v35 }
 0x151   : > { %5218 = vmatprep.mubr.msk.f32.mxu1 %vm1040_vm3, %v6120_v2  ;;  %5314 = vmatpush3.msra.mxu1 %v6217_v14  ;;  %v6710_v14 = vsel %vm1619_vm4, %v1696_v58, %v1698_v18  ;;  %v8413_v58 = vld [vmem:[#allocation32_spill] sm:$0xff]  ;;  %v8414_v18 = vld [vmem:[#allocation35_spill] sm:$0xff] }
 0x152   : > { %5305 = vmatmul.mubr.msk.f32.gmra.mxu0 %vm1040_vm3, %v6672_v60  ;;  %5413 = vmatprep.subr.mxu1 %v6686_v43 }
 0x153   : > { %5307 = vmatprep.mubr.msk.f32.mxu0 %vm1040_vm3, %v6679_v37 }
 0x154   : > { %5219 = vmatmul.mubr.msk.f32.gmra.mxu1 %vm1040_vm3, %v6117_v1 }
 0x155   : > { %5221 = vmatprep.mubr.msk.f32.mxu1 %vm1040_vm3, %v6140_v20 }
 0x156   : > { %5308 = vmatmul.mubr.msk.f32.gmra.mxu0 %vm1040_vm3, %v6695_v21 }
 0x157   : > { %5310 = vmatprep.mubr.msk.f32.mxu0 %vm1040_vm3, %v6703_v38 }
 0x158   : > { %5222 = vmatmul.mubr.msk.f32.gmra.mxu1 %vm1040_vm3, %v6137_v19 }
 0x159   : > { %5224 = vmatprep.mubr.msk.f32.mxu1 %vm1040_vm3, %v6174_v44 }
 0x15a   : > { %5311 = vmatmul.mubr.msk.f32.gmra.mxu0 %vm1040_vm3, %v6710_v14 }
 0x15b   : > { %5365 = vmatprep.mubr.msk.f32.mxu0 %vm1040_vm3, %v6133_v17  ;;  %v8407_v17 = vld [vmem:[#allocation26_spill] sm:$0xff] }
 0x15c   : > { %5225 = vmatmul.mubr.msk.f32.gmra.mxu1 %vm1040_vm3, %v6171_v41 }
 0x15d   : > { %5227 = vmatprep.mubr.msk.f32.mxu1 %vm1040_vm3, %v6201_v5 }
 0x15e   : > { %5366 = vmatmul.mubr.msk.f32.vlgmr.msra.gmra.mxu0 %vm1040_vm3, %v6146_v25  ;;  %v8408_v25 = vld [vmem:[#allocation22_spill] sm:$0xff] }
 0x15f   : > { %5368 = vmatprep.mubr.msk.f32.mxu0 %vm1040_vm3, %v6155_v33  ;;  %5464 = vmatpush3.msra.mxu0 %v6267_v55  ;;  %v8409_v55 = vld [vmem:[#allocation27_spill] sm:$0xff] }
 0x160   : > { %5563 = vmatprep.subr.mxu0 %v6727_v22  ;;  %5228 = vmatmul.mubr.msk.f32.gmra.mxu1 %vm1040_vm3, %v6198_v4 }
 0x161   : > { %5230 = vmatprep.mubr.msk.f32.mxu1 %vm1040_vm3, %v6236_v26 }
 0x162   : > { %5369 = vmatmul.mubr.msk.f32.gmra.mxu0 %vm1040_vm3, %v6158_v34 }
 0x163   : > { %5371 = vmatprep.mubr.msk.f32.mxu0 %vm1040_vm3, %v6204_v7 }
 0x164   : > { %5231 = vmatmul.mubr.msk.f32.gmra.mxu1 %vm1040_vm3, %v6233_v24 }
 0x165   : > { %5233 = vmatprep.mubr.msk.f32.mxu1 %vm1040_vm3, %v6283_v63 }
 0x166   : > { %5372 = vmatmul.mubr.msk.f32.gmra.mxu0 %vm1040_vm3, %v6210_v13 }
 0x167   : > { %5374 = vmatprep.mubr.msk.f32.mxu0 %vm1040_vm3, %v6245_v31 }
 0x168   : > { %5234 = vmatmul.mubr.msk.f32.gmra.mxu1 %vm1040_vm3, %v6280_v61 }
 0x169   : > { %5236 = vmatprep.mubr.msk.f32.mxu1 %vm1040_vm3, %v6326_v52 }
 0x16a   : > { %5375 = vmatmul.mubr.msk.f32.gmra.mxu0 %vm1040_vm3, %v6252_v48 }
 0x16b   : > { %5377 = vmatprep.mubr.msk.f32.mxu0 %vm1040_vm3, %v6286_v6 }
 0x16c   : > { %5237 = vmatmul.mubr.msk.f32.gmra.mxu1 %vm1040_vm3, %v6307_v29 }
 0x16d   : > { %5239 = vmatprep.mubr.msk.f32.mxu1 %vm1040_vm3, %v6345_v62 }
 0x16e   : > { %5378 = vmatmul.mubr.msk.f32.gmra.mxu0 %vm1040_vm3, %v6292_v53 }
 0x16f   : > { %5380 = vmatprep.mubr.msk.f32.mxu0 %vm1040_vm3, %v6316_v40 }
 0x170   : > { %5240 = vmatmul.mubr.msk.f32.gmra.mxu1 %vm1040_vm3, %v8407_v17 }
 0x171   : > { %5242 = vmatprep.mubr.msk.f32.mxu1 %vm1040_vm3, %v6389_v3 }
 0x172   : > { %5381 = vmatmul.mubr.msk.f32.gmra.mxu0 %vm1040_vm3, %v8408_v25 }
 0x173   : > { %5383 = vmatprep.mubr.msk.f32.mxu0 %vm1040_vm3, %v8409_v55  ;;  %v8416_v55 = vld [vmem:[#allocation39_spill] sm:$0xff] }
 0x174   : > { %5243 = vmatmul.mubr.msk.f32.gmra.mxu1 %vm1040_vm3, %v8410_v15 }
 0x175   : > { %5245 = vmatprep.mubr.msk.f32.mxu1 %vm1040_vm3, %v6427_v27 }
 0x176   : > { %5384 = vmatmul.mubr.msk.f32.gmra.mxu0 %vm1040_vm3, %v8411_v10  ;;  %v8415_v10 = vld [vmem:[#allocation36_spill] sm:$0xff] }
 0x177   : > { %5386 = vmatprep.mubr.msk.f32.mxu0 %vm1040_vm3, %v8412_v59  ;;  %v732_v59 = vpop.f32.mrf.mxu0 }
 0x178   : > { %5246 = vmatmul.mubr.msk.f32.gmra.mxu1 %vm1040_vm3, %v6422_v30  ;;  %v733_v25 = vadd.f32 %v6105_v47, %v732_v59 }
 0x179   : > { %5248 = vmatprep.mubr.msk.f32.mxu1 %vm1040_vm3, %v6468_v0 }
 0x17a   : > { %5387 = vmatmul.mubr.msk.f32.gmra.mxu0 %vm1040_vm3, %v8413_v58  ;;  %v738_v58 = vadd.f32 %v5162_v12, %v6105_v47  ;;  %v771_v53 = vmax.f32 %v733_v25, 0.0  ;;  %v8419_v12 = vld [vmem:[#allocation44_spill] sm:$0xff] }
 0x17b   : > { %5389 = vmatprep.mubr.msk.f32.mxu0 %vm1040_vm3, %v8414_v18  ;;  %v8417_v18 = vld [vmem:[#allocation41_spill] sm:$0xff] }
 0x17c   : > { %5249 = vmatmul.mubr.msk.f32.gmra.mxu1 %vm1040_vm3, %v6465_v46  ;;  %v772_v40 = vmax.f32 %v738_v58, 0.0  ;;  %v854_v59 = vrot.slane %v771_v53, 7  ;;  %v8421_v53 = vld [vmem:[#allocation52_spill] sm:$0xff] }
 0x17d   : > { %5251 = vmatprep.mubr.msk.f32.mxu1 %vm1040_vm3, %v6502_v57 }
 0x17e   : > { %5390 = vmatmul.mubr.msk.f32.gmra.mxu0 %vm1040_vm3, %v8415_v10  ;;  %v8418_v10 = vld [vmem:[#allocation43_spill] sm:$0xff]  ;;  %v855_v47 = vrot.slane %v772_v40, 7  ;;  %v6829_v58 = vsel %vm806_vm1, 0.0, %v854_v59 }
 0x17f   : > { %5392 = vmatprep.mubr.msk.f32.mxu0 %vm1040_vm3, %v8416_v55  ;;  %v8422_v40 = vld [vmem:[#allocation55_spill] sm:$0xff] }
 0x180   : > { %5252 = vmatmul.mubr.msk.f32.gmra.mxu1 %vm1040_vm3, %v6495_v28  ;;  %v6826_v25 = vsel %vm806_vm1, %v854_v59, %v855_v47 }
 0x181   : > { %5254 = vmatprep.mubr.msk.f32.mxu1 %vm1040_vm3, %v6542_v32  ;;  %v2289_v59 = vrot.slane %v6826_v25, 1 }
 0x182   : > { %5393 = vmatmul.mubr.msk.f32.gmra.mxu0 %vm1040_vm3, %v8417_v18 }
 0x183   : > { %5395 = vmatprep.mubr.msk.f32.mxu0 %vm1040_vm3, %v8418_v10  ;;  %v8420_v10 = vld [vmem:[#allocation48_spill] sm:$0xff] }
 0x184   : > { %5255 = vmatmul.mubr.msk.f32.gmra.mxu1 %vm1040_vm3, %v6537_v39 }
 0x185   : > { %5257 = vmatprep.mubr.msk.f32.mxu1 %vm1040_vm3, %v6577_v45 }
 0x186   : > { %5396 = vmatmul.mubr.msk.f32.gmra.mxu0 %vm1040_vm3, %v8419_v12 }
 0x187   : > { %5398 = vmatprep.mubr.msk.f32.mxu0 %vm1040_vm3, %v6551_v49 }
 0x188   : > { %5258 = vmatmul.mubr.msk.f32.gmra.mxu1 %vm1040_vm3, %v6560_v42 }
 0x189   : > { %5260 = vmatprep.mubr.msk.f32.mxu1 %vm1040_vm3, %v6588_v51 }
 0x18a   : > { %5399 = vmatmul.mubr.msk.f32.gmra.mxu0 %vm1040_vm3, %v8420_v10  ;;  %v2288_v10 = vrot.slane %v6829_v58, 1 }
 0x18b   : > { %5401 = vmatprep.mubr.msk.f32.mxu0 %vm1040_vm3, %v6593_v54  ;;  %v6840_v54 = vsel %vm806_vm1, %v855_v47, 0.0 }
 0x18c   : > { %5261 = vmatmul.mubr.msk.f32.gmra.mxu1 %vm1040_vm3, %v6585_v11  ;;  %v6859_v47 = vsel %vm957_vm2, %v2288_v10, %v2289_v59  ;;  %v8436_v10 = vld [vmem:[#allocation37_spill] sm:$0xff] }
 0x18d   : > { %5315 = vmatprep.mubr.msk.f32.mxu1 %vm1040_vm3, %v6120_v2  ;;  %v6851_v2 = vld [vmem:[%s8243_s3 + $0x38] sm:$0xff]  ;;  %8423 = vst [vmem:[#allocation26_spill] sm:$0xff] %v6859_v47 }
 0x18e   : > { %5402 = vmatmul.mubr.msk.f32.gmra.mxu0 %vm1040_vm3, %v8421_v53 }
 0x18f   : > { %5404 = vmatprep.mubr.msk.f32.mxu0 %vm1040_vm3, %v8422_v40  ;;  %v2291_v40 = vrot.slane %v6840_v54, 1 }
 0x190   : > { %5316 = vmatmul.mubr.msk.f32.vlgmr.msra.gmra.mxu1 %vm1040_vm3, %v6117_v1 }
 0x191   : > { %5318 = vmatprep.mubr.msk.f32.mxu1 %vm1040_vm3, %v6140_v20  ;;  %5414 = vmatpush3.msra.mxu1 %v6686_v43  ;;  %v6872_v1 = vsel %vm957_vm2, %v2289_v59, %v2291_v40  ;;  %v8435_v43 = vld [vmem:[#allocation34_spill] sm:$0xff] }
 0x192   : > { %5405 = vmatmul.mubr.msk.f32.gmra.mxu0 %vm1040_vm3, %v6627_v16  ;;  %5513 = vmatprep.subr.mxu1 %v6851_v2  ;;  %8424 = vst [vmem:[#allocation29_spill] sm:$0xff] %v6872_v1  ;;  %v8437_v40 = vld [vmem:[#allocation38_spill] sm:$0xff] }
 0x193   : > { %5407 = vmatprep.mubr.msk.f32.mxu0 %vm1040_vm3, %v6635_v50 }
 0x194   : > { %5319 = vmatmul.mubr.msk.f32.gmra.mxu1 %vm1040_vm3, %v6137_v19 }
 0x195   : > { %5321 = vmatprep.mubr.msk.f32.mxu1 %vm1040_vm3, %v6174_v44 }
 0x196   : > { %5408 = vmatmul.mubr.msk.f32.gmra.mxu0 %vm1040_vm3, %v6652_v8  ;;  %v8445_v8 = vld [vmem:[#allocation53_spill] sm:$0xff] }
 0x197   : > { %5410 = vmatprep.mubr.msk.f32.mxu0 %vm1040_vm3, %v6859_v47 }
 0x198   : > { %5322 = vmatmul.mubr.msk.f32.gmra.mxu1 %vm1040_vm3, %v6171_v41 }
 0x199   : > { %5324 = vmatprep.mubr.msk.f32.mxu1 %vm1040_vm3, %v6201_v5 }
 0x19a   : > { %5411 = vmatmul.mubr.msk.f32.gmra.mxu0 %vm1040_vm3, %v6872_v1  ;;  %v8443_v1 = vld [vmem:[#allocation49_spill] sm:$0xff] }
 0x19b   : > { %5465 = vmatprep.mubr.msk.f32.mxu0 %vm1040_vm3, %v6140_v20 }
 0x19c   : > { %5325 = vmatmul.mubr.msk.f32.gmra.mxu1 %vm1040_vm3, %v6198_v4 }
 0x19d   : > { %5327 = vmatprep.mubr.msk.f32.mxu1 %vm1040_vm3, %v6236_v26 }
 0x19e   : > { %5466 = vmatmul.mubr.msk.f32.vlgmr.msra.gmra.mxu0 %vm1040_vm3, %v6137_v19  ;;  %v6967_v19 = vpop.f32.mrf.mxu0 }
 0x19f   : > { %5468 = vmatprep.mubr.msk.f32.mxu0 %vm1040_vm3, %v6174_v44  ;;  %5564 = vmatpush3.msra.mxu0 %v6727_v22  ;;  %v8425_v44 = vld [vmem:[#allocation15_spill] sm:$0xff] }
 0x1a0   : > { %5328 = vmatmul.mubr.msk.f32.gmra.mxu1 %vm1040_vm3, %v6233_v24  ;;  %v6977_v20 = vpop.f32.mrf.mxu0 }
 0x1a1   : > { %5330 = vmatprep.mubr.msk.f32.mxu1 %vm1040_vm3, %v6283_v63 }
 0x1a2   : > { %5469 = vmatmul.mubr.msk.f32.gmra.mxu0 %vm1040_vm3, %v6171_v41 }
 0x1a3   : > { %5471 = vmatprep.mubr.msk.f32.mxu0 %vm1040_vm3, %v6201_v5  ;;  %v8426_v5 = vld [vmem:[#allocation16_spill] sm:$0xff] }
 0x1a4   : > { %5331 = vmatmul.mubr.msk.f32.gmra.mxu1 %vm1040_vm3, %v6280_v61 }
 0x1a5   : > { %5333 = vmatprep.mubr.msk.f32.mxu1 %vm1040_vm3, %v6326_v52 }
 0x1a6   : > { %5472 = vmatmul.mubr.msk.f32.gmra.mxu0 %vm1040_vm3, %v6198_v4 }
 0x1a7   : > { %5474 = vmatprep.mubr.msk.f32.mxu0 %vm1040_vm3, %v6236_v26  ;;  %v8427_v26 = vld [vmem:[#allocation17_spill] sm:$0xff] }
 0x1a8   : > { %5334 = vmatmul.mubr.msk.f32.gmra.mxu1 %vm1040_vm3, %v6307_v29 }
 0x1a9   : > { %5336 = vmatprep.mubr.msk.f32.mxu1 %vm1040_vm3, %v6345_v62 }
 0x1aa   : > { %5475 = vmatmul.mubr.msk.f32.gmra.mxu0 %vm1040_vm3, %v6233_v24 }
 0x1ab   : > { %5477 = vmatprep.mubr.msk.f32.mxu0 %vm1040_vm3, %v6283_v63 }
 0x1ac   : > { %5337 = vmatmul.mubr.msk.f32.gmra.mxu1 %vm1040_vm3, %v8407_v17 }
 0x1ad   : > { %5339 = vmatprep.mubr.msk.f32.mxu1 %vm1040_vm3, %v6389_v3 }
 0x1ae   : > { %5478 = vmatmul.mubr.msk.f32.gmra.mxu0 %vm1040_vm3, %v6280_v61  ;;  %v8428_v61 = vld [vmem:[#allocation18_spill] sm:$0xff] }
 0x1af   : > { %5480 = vmatprep.mubr.msk.f32.mxu0 %vm1040_vm3, %v6326_v52 }
 0x1b0   : > { %5340 = vmatmul.mubr.msk.f32.gmra.mxu1 %vm1040_vm3, %v8410_v15 }
 0x1b1   : > { %5342 = vmatprep.mubr.msk.f32.mxu1 %vm1040_vm3, %v6427_v27 }
 0x1b2   : > { %5481 = vmatmul.mubr.msk.f32.gmra.mxu0 %vm1040_vm3, %v6307_v29  ;;  %v8429_v29 = vld [vmem:[#allocation20_spill] sm:$0xff] }
 0x1b3   : > { %5483 = vmatprep.mubr.msk.f32.mxu0 %vm1040_vm3, %v6345_v62 }
 0x1b4   : > { %5343 = vmatmul.mubr.msk.f32.gmra.mxu1 %vm1040_vm3, %v6422_v30 }
 0x1b5   : > { %5345 = vmatprep.mubr.msk.f32.mxu1 %vm1040_vm3, %v6468_v0 }
 0x1b6   : > { %5484 = vmatmul.mubr.msk.f32.gmra.mxu0 %vm1040_vm3, %v8407_v17 }
 0x1b7   : > { %5486 = vmatprep.mubr.msk.f32.mxu0 %vm1040_vm3, %v6389_v3 }
 0x1b8   : > { %5346 = vmatmul.mubr.msk.f32.gmra.mxu1 %vm1040_vm3, %v6465_v46 }
 0x1b9   : > { %5348 = vmatprep.mubr.msk.f32.mxu1 %vm1040_vm3, %v6502_v57 }
 0x1ba   : > { %5487 = vmatmul.mubr.msk.f32.gmra.mxu0 %vm1040_vm3, %v8410_v15 }
 0x1bb   : > { %5489 = vmatprep.mubr.msk.f32.mxu0 %vm1040_vm3, %v6427_v27 }
 0x1bc   : > { %5349 = vmatmul.mubr.msk.f32.gmra.mxu1 %vm1040_vm3, %v6495_v28 }
 0x1bd   : > { %5351 = vmatprep.mubr.msk.f32.mxu1 %vm1040_vm3, %v6542_v32 }
 0x1be   : > { %5490 = vmatmul.mubr.msk.f32.gmra.mxu0 %vm1040_vm3, %v6422_v30  ;;  %v8430_v30 = vld [vmem:[#allocation23_spill] sm:$0xff] }
 0x1bf   : > { %5492 = vmatprep.mubr.msk.f32.mxu0 %vm1040_vm3, %v6468_v0 }
 0x1c0   : > { %5352 = vmatmul.mubr.msk.f32.gmra.mxu1 %vm1040_vm3, %v6537_v39 }
 0x1c1   : > { %5354 = vmatprep.mubr.msk.f32.mxu1 %vm1040_vm3, %v6577_v45 }
 0x1c2   : > { %5493 = vmatmul.mubr.msk.f32.gmra.mxu0 %vm1040_vm3, %v6465_v46  ;;  %v8431_v46 = vld [vmem:[#allocation24_spill] sm:$0xff] }
 0x1c3   : > { %5495 = vmatprep.mubr.msk.f32.mxu0 %vm1040_vm3, %v6502_v57 }
 0x1c4   : > { %5355 = vmatmul.mubr.msk.f32.gmra.mxu1 %vm1040_vm3, %v6560_v42 }
 0x1c5   : > { %5357 = vmatprep.mubr.msk.f32.mxu1 %vm1040_vm3, %v6588_v51 }
 0x1c6   : > { %5496 = vmatmul.mubr.msk.f32.gmra.mxu0 %vm1040_vm3, %v6495_v28 }
 0x1c7   : > { %5498 = vmatprep.mubr.msk.f32.mxu0 %vm1040_vm3, %v6542_v32  ;;  %v8433_v32 = vld [vmem:[#allocation30_spill] sm:$0xff] }
 0x1c8   : > { %5358 = vmatmul.mubr.msk.f32.gmra.mxu1 %vm1040_vm3, %v6585_v11 }
 0x1c9   : > { %5360 = vmatprep.mubr.msk.f32.mxu1 %vm1040_vm3, %v6829_v58 }
 0x1ca   : > { %5499 = vmatmul.mubr.msk.f32.gmra.mxu0 %vm1040_vm3, %v6537_v39  ;;  %v8432_v39 = vld [vmem:[#allocation25_spill] sm:$0xff] }
 0x1cb   : > { %5501 = vmatprep.mubr.msk.f32.mxu0 %vm1040_vm3, %v6577_v45 }
 0x1cc   : > { %5361 = vmatmul.mubr.msk.f32.gmra.mxu1 %vm1040_vm3, %v6826_v25 }
 0x1cd   : > { %v6987_v41 = vpop.f32.mrf.mxu0  ;;  %5415 = vmatprep.mubr.msk.f32.mxu1 %vm1040_vm3, %v8425_v44  ;;  %v8438_v44 = vld [vmem:[#allocation40_spill] sm:$0xff] }
 0x1ce   : > { %5502 = vmatmul.mubr.msk.f32.gmra.mxu0 %vm1040_vm3, %v6560_v42 }
 0x1cf   : > { %5504 = vmatprep.mubr.msk.f32.mxu0 %vm1040_vm3, %v6588_v51  ;;  %v6993_v4 = vpop.f32.mrf.mxu0  ;;  %v8434_v51 = vld [vmem:[#allocation33_spill] sm:$0xff] }
 0x1d0   : > { %5416 = vmatmul.mubr.msk.f32.vlgmr.msra.gmra.mxu1 %vm1040_vm3, %v8426_v5  ;;  %v8439_v5 = vld [vmem:[#allocation42_spill] sm:$0xff] }
 0x1d1   : > { %v6999_v24 = vpop.f32.mrf.mxu0  ;;  %5418 = vmatprep.mubr.msk.f32.mxu1 %vm1040_vm3, %v8427_v26  ;;  %5514 = vmatpush3.msra.mxu1 %v6851_v2 }
 0x1d2   : > { %5505 = vmatmul.mubr.msk.f32.gmra.mxu0 %vm1040_vm3, %v6585_v11 }
 0x1d3   : > { %5507 = vmatprep.mubr.msk.f32.mxu0 %vm1040_vm3, %v6829_v58  ;;  %v7005_v27 = vpop.f32.mrf.mxu0 }
 0x1d4   : > { %5419 = vmatmul.mubr.msk.f32.gmra.mxu1 %vm1040_vm3, %v8428_v61 }
 0x1d5   : > { %v7012_v63 = vpop.f32.mrf.mxu0  ;;  %5421 = vmatprep.mubr.msk.f32.mxu1 %vm1040_vm3, %v8429_v29  ;;  %v7018_v52 = vpop.f32.mrf.mxu1 }
 0x1d6   : > { %5508 = vmatmul.mubr.msk.f32.gmra.mxu0 %vm1040_vm3, %v6826_v25 }
 0x1d7   : > { %5510 = vmatprep.mubr.msk.f32.mxu0 %vm1040_vm3, %v6065_v36  ;;  %v7020_v62 = vpop.f32.mrf.mxu0  ;;  %v7022_v3 = vpop.f32.mrf.mxu1 }
 0x1d8   : > { %5422 = vmatmul.mubr.msk.f32.gmra.mxu1 %vm1040_vm3, %v8430_v30 }
 0x1d9   : > { %v7028_v0 = vpop.f32.mrf.mxu0  ;;  %5424 = vmatprep.mubr.msk.f32.mxu1 %vm1040_vm3, %v8431_v46  ;;  %v7034_v36 = vpop.f32.mrf.mxu1 }
 0x1da   : > { %5511 = vmatmul.mubr.msk.f32.gmra.mxu0 %vm1040_vm3, %v6061_v35 }
 0x1db   : > { %5565 = vmatprep.mubr.msk.f32.mxu0 %vm1040_vm3, %v8427_v26  ;;  %v7036_v28 = vpop.f32.mrf.mxu0  ;;  %v7038_v57 = vpop.f32.mrf.mxu1 }
 0x1dc   : > { %5425 = vmatmul.mubr.msk.f32.gmra.mxu1 %vm1040_vm3, %v8432_v39 }
 0x1dd   : > { %v7044_v35 = vpop.f32.mrf.mxu0  ;;  %5427 = vmatprep.mubr.msk.f32.mxu1 %vm1040_vm3, %v8433_v32  ;;  %v7050_v42 = vpop.f32.mrf.mxu1 }
 0x1de   : > { %5566 = vmatmul.mubr.msk.f32.vlgmr.msra.gmra.mxu0 %vm1040_vm3, %v8428_v61 }
 0x1df   : > { %5568 = vmatprep.mubr.msk.f32.mxu0 %vm1040_vm3, %v8429_v29  ;;  %v7052_v45 = vpop.f32.mrf.mxu0  ;;  %v7054_v11 = vpop.f32.mrf.mxu1 }
 0x1e0   : > { %5428 = vmatmul.mubr.msk.f32.gmra.mxu1 %vm1040_vm3, %v8434_v51 }
 0x1e1   : > { %5430 = vmatprep.mubr.msk.f32.mxu1 %vm1040_vm3, %v8435_v43  ;;  %v7064_v22 = vpop.f32.mrf.mxu0 }
 0x1e2   : > { %5569 = vmatmul.mubr.msk.f32.gmra.mxu0 %vm1040_vm3, %v8430_v30  ;;  %v7066_v17 = vpop.f32.mrf.mxu1  ;;  %v8440_v30 = vld [vmem:[#allocation45_spill] sm:$0xff] }
 0x1e3   : > { %5571 = vmatprep.mubr.msk.f32.mxu0 %vm1040_vm3, %v8431_v46  ;;  %v7068_v15 = vpop.f32.mrf.mxu0  ;;  %v8441_v46 = vld [vmem:[#allocation46_spill] sm:$0xff] }
 0x1e4   : > { %5431 = vmatmul.mubr.msk.f32.gmra.mxu1 %vm1040_vm3, %v8436_v10  ;;  %v7078_v59 = vpop.f32.mrf.mxu1 }
 0x1e5   : > { %5433 = vmatprep.mubr.msk.f32.mxu1 %vm1040_vm3, %v8437_v40 }
 0x1e6   : > { %5572 = vmatmul.mubr.msk.f32.gmra.mxu0 %vm1040_vm3, %v8432_v39 }
 0x1e7   : > { %5574 = vmatprep.mubr.msk.f32.mxu0 %vm1040_vm3, %v8433_v32  ;;  %v7080_v2 = vpop.f32.mrf.mxu0 }
 0x1e8   : > { %5434 = vmatmul.mubr.msk.f32.gmra.mxu1 %vm1040_vm3, %v8438_v44 }
 0x1e9   : > { %5436 = vmatprep.mubr.msk.f32.mxu1 %vm1040_vm3, %v8439_v5  ;;  %v7090_v26 = vpop.f32.mrf.mxu1  ;;  %v7092_v61 = vpop.f32.mrf.mxu0 }
 0x1ea   : > { %5575 = vmatmul.mubr.msk.f32.gmra.mxu0 %vm1040_vm3, %v8434_v51 }
 0x1eb   : > { %5577 = vmatprep.mubr.msk.f32.mxu0 %vm1040_vm3, %v8435_v43  ;;  %v7094_v29 = vpop.f32.mrf.mxu1 }
 0x1ec   : > { %5437 = vmatmul.mubr.msk.f32.gmra.mxu1 %vm1040_vm3, %v8440_v30 }
 0x1ed   : > { %5439 = vmatprep.mubr.msk.f32.mxu1 %vm1040_vm3, %v8441_v46  ;;  %v7104_v39 = vpop.f32.mrf.mxu1  ;;  %v7106_v32 = vpop.f32.mrf.mxu0 }
 0x1ee   : > { %5578 = vmatmul.mubr.msk.f32.gmra.mxu0 %vm1040_vm3, %v8436_v10  ;;  %v8444_v10 = vld [vmem:[#allocation50_spill] sm:$0xff] }
 0x1ef   : > { %5580 = vmatprep.mubr.msk.f32.mxu0 %vm1040_vm3, %v8437_v40  ;;  %v7108_v51 = vpop.f32.mrf.mxu1  ;;  %v7110_v43 = vpop.f32.mrf.mxu0 }
 0x1f0   : > { %8442 = vst [vmem:[#allocation39_spill] sm:$0xff] %v7108_v51  ;;  %5440 = vmatmul.mubr.msk.f32.gmra.mxu1 %vm1040_vm3, %v8443_v1 }
 0x1f1   : > { %5442 = vmatprep.mubr.msk.f32.mxu1 %vm1040_vm3, %v8444_v10 }
 0x1f2   : > { %5581 = vmatmul.mubr.msk.f32.gmra.mxu0 %vm1040_vm3, %v8438_v44  ;;  %v7120_v40 = vpop.f32.mrf.mxu1  ;;  %v8447_v44 = vld [vmem:[#allocation54_spill] sm:$0xff] }
 0x1f3   : > { %5583 = vmatprep.mubr.msk.f32.mxu0 %vm1040_vm3, %v8439_v5  ;;  %v7122_v47 = vpop.f32.mrf.mxu0 }
 0x1f4   : > { %5443 = vmatmul.mubr.msk.f32.gmra.mxu1 %vm1040_vm3, %v8445_v8  ;;  %v7128_v51 = vpop.f32.mrf.mxu1 }
 0x1f5   : > { %8446 = vst [vmem:[#allocation41_spill] sm:$0xff] %v7128_v51  ;;  %v7130_v50 = vpop.f32.mrf.mxu0  ;;  %5445 = vmatprep.mubr.msk.f32.mxu1 %vm1040_vm3, %v8447_v44  ;;  %v8448_v51 = vld [vmem:[#allocation58_spill] sm:$0xff] }
 0x1f6   : > { %5584 = vmatmul.mubr.msk.f32.gmra.mxu0 %vm1040_vm3, %v8440_v30  ;;  %v7138_v16 = vpop.f32.mrf.mxu1 }
 0x1f7   : > { %5586 = vmatprep.mubr.msk.f32.mxu0 %vm1040_vm3, %v8441_v46 }
 0x1f8   : > { %v7136_v5 = vpop.f32.mrf.mxu0  ;;  %5446 = vmatmul.mubr.msk.f32.gmra.mxu1 %vm1040_vm3, %v6632_v9  ;;  %v7150_v53 = vpop.f32.mrf.mxu1 }
 0x1f9   : > { %5448 = vmatprep.mubr.msk.f32.mxu1 %vm1040_vm3, %v8448_v51  ;;  %8449 = vst [vmem:[#allocation44_spill] sm:$0xff] %v7150_v53 }
 0x1fa   : > { %5587 = vmatmul.mubr.msk.f32.gmra.mxu0 %vm1040_vm3, %v8443_v1  ;;  %v7144_v30 = vpop.f32.mrf.mxu0 }
 0x1fb   : > { %5589 = vmatprep.mubr.msk.f32.mxu0 %vm1040_vm3, %v8444_v10  ;;  %v7152_v46 = vpop.f32.mrf.mxu1 }
 0x1fc   : > { %8450 = vst [vmem:[#allocation15_spill] sm:$0xff] %v7152_v46  ;;  %5449 = vmatmul.mubr.msk.f32.gmra.mxu1 %vm1040_vm3, %v6655_v23 }
 0x1fd   : > { %v7154_v49 = vpop.f32.mrf.mxu0  ;;  %5451 = vmatprep.mubr.msk.f32.mxu1 %vm1040_vm3, %v6662_v56  ;;  %v7164_v1 = vpop.f32.mrf.mxu1 }
 0x1fe   : > { %5590 = vmatmul.mubr.msk.f32.gmra.mxu0 %vm1040_vm3, %v8445_v8  ;;  %8451 = vst [vmem:[#allocation16_spill] sm:$0xff] %v7164_v1 }
 0x1ff   : > { %5592 = vmatprep.mubr.msk.f32.mxu0 %vm1040_vm3, %v8447_v44  ;;  %v7166_v10 = vpop.f32.mrf.mxu0 }
 0x200   : > { %8452 = vst [vmem:[#allocation17_spill] sm:$0xff] %v7166_v10  ;;  %v7168_v53 = vpop.f32.mrf.mxu1  ;;  %5452 = vmatmul.mubr.msk.f32.gmra.mxu1 %vm1040_vm3, %v6672_v60 }
 0x201   : > { %8453 = vst [vmem:[#allocation18_spill] sm:$0xff] %v7168_v53  ;;  %5454 = vmatprep.mubr.msk.f32.mxu1 %vm1040_vm3, %v6679_v37  ;;  %v2557_v53 = vrot.slane %v6826_v25, 2 }
 0x202   : > { %v7170_v46 = vpop.f32.mrf.mxu0  ;;  %5593 = vmatmul.mubr.msk.f32.gmra.mxu0 %vm1040_vm3, %v6632_v9  ;;  %v7180_v8 = vpop.f32.mrf.mxu1  ;;  %v2556_v9 = vrot.slane %v6829_v58, 2 }
 0x203   : > { %5595 = vmatprep.mubr.msk.f32.mxu0 %vm1040_vm3, %v8448_v51  ;;  %8454 = vst [vmem:[#allocation20_spill] sm:$0xff] %v7180_v8 }
 0x204   : > { %v7182_v44 = vpop.f32.mrf.mxu0  ;;  %v7184_v1 = vpop.f32.mrf.mxu1  ;;  %5455 = vmatmul.mubr.msk.f32.gmra.mxu1 %vm1040_vm3, %v6695_v21 }
 0x205   : > { %8455 = vst [vmem:[#allocation23_spill] sm:$0xff] %v7182_v44  ;;  %8456 = vst [vmem:[#allocation24_spill] sm:$0xff] %v7184_v1  ;;  %5457 = vmatprep.mubr.msk.f32.mxu1 %vm1040_vm3, %v6703_v38  ;;  %v2559_v44 = vrot.slane %v6840_v54, 2 }
 0x206   : > { %v7186_v10 = vpop.f32.mrf.mxu0  ;;  %5596 = vmatmul.mubr.msk.f32.gmra.mxu0 %vm1040_vm3, %v6655_v23  ;;  %v7198_v51 = vpop.f32.mrf.mxu1  ;;  %v2558_v23 = vsel %vm1619_vm4, %v2556_v9, %v2557_v53 }
 0x207   : > { %8457 = vst [vmem:[#allocation25_spill] sm:$0xff] %v7186_v10  ;;  %5598 = vmatprep.mubr.msk.f32.mxu0 %vm1040_vm3, %v6662_v56  ;;  %8458 = vst [vmem:[#allocation30_spill] sm:$0xff] %v7198_v51  ;;  %v2560_v25 = vsel %vm1619_vm4, %v2557_v53, %v2559_v44 }
 0x208   : > { %v7200_v8 = vpop.f32.mrf.mxu0  ;;  %v7203_v1 = vpop.f32.mrf.mxu1  ;;  %5458 = vmatmul.mubr.msk.f32.gmra.mxu1 %vm1040_vm3, %v6710_v14 }
 0x209   : > { %5460 = vmatprep.mubr.msk.f32.mxu1 %vm1040_vm3, %v2558_v23 }
 0x20a   : > { %v7205_v10 = vpop.f32.mrf.mxu0  ;;  %5599 = vmatmul.mubr.msk.f32.gmra.mxu0 %vm1040_vm3, %v6672_v60  ;;  %v7215_v56 = vpop.f32.mrf.mxu1 }
 0x20b   : > { %5601 = vmatprep.mubr.msk.f32.mxu0 %vm1040_vm3, %v6679_v37  ;;  %8459 = vst [vmem:[#allocation33_spill] sm:$0xff] %v7215_v56 }
 0x20c   : > { %v7217_v54 = vpop.f32.mrf.mxu0  ;;  %v7220_v58 = vpop.f32.mrf.mxu1  ;;  %5461 = vmatmul.mubr.msk.f32.gmra.mxu1 %vm1040_vm3, %v2560_v25 }
 0x20d   : > { %8460 = vst [vmem:[#allocation34_spill] sm:$0xff] %v7217_v54  ;;  %5515 = vmatprep.mubr.msk.f32.mxu1 %vm1040_vm3, %v6155_v33  ;;  %v8495_v54 = vld [vmem:[#allocation11_spill] sm:$0xff] }
 0x20e   : > { %v7222_v51 = vpop.f32.mrf.mxu0  ;;  %5602 = vmatmul.mubr.msk.f32.gmra.mxu0 %vm1040_vm3, %v6695_v21  ;;  %v7231_v60 = vpop.f32.mrf.mxu1 }
 0x20f   : > { %5604 = vmatprep.mubr.msk.f32.mxu0 %vm1040_vm3, %v6703_v38  ;;  %8461 = vst [vmem:[#allocation37_spill] sm:$0xff] %v7231_v60 }
 0x210   : > { %v7233_v37 = vpop.f32.mrf.mxu0  ;;  %v5217_v53 = vpop.f32.mrf.mxu1  ;;  %5516 = vmatmul.mubr.msk.f32.vlgmr.msra.gmra.mxu1 %vm1040_vm3, %v6158_v34 }
 0x211   : > { %8462 = vst [vmem:[#allocation38_spill] sm:$0xff] %v7233_v37  ;;  %v1466_v21 = vadd.f32 %v5217_v53, %v6967_v19  ;;  %5518 = vmatprep.mubr.msk.f32.mxu1 %vm1040_vm3, %v6204_v7  ;;  %v8491_v37 = vld [vmem:[#allocation26_spill] sm:$0xff] }
 0x212   : > { %v7235_v44 = vpop.f32.mrf.mxu0  ;;  %5605 = vmatmul.mubr.msk.f32.gmra.mxu0 %vm1040_vm3, %v6710_v14  ;;  %v1460_v33 = vpop.f32.mrf.mxu1  ;;  %v8464_v14 = vld [vmem:[#allocation13_spill] sm:$0xff] }
 0x213   : > { %5607 = vmatprep.mubr.msk.f32.mxu0 %vm1040_vm3, %v2558_v23  ;;  %v1461_v9 = vadd.f32 %v1460_v33, %v6977_v20  ;;  %v7249_v60 = vadd.f32 %v7012_v63, %v1466_v21 }
 0x214   : > { %v7245_v38 = vpop.f32.mrf.mxu0  ;;  %v5220_v56 = vpop.f32.mrf.mxu1  ;;  %5519 = vmatmul.mubr.msk.f32.gmra.mxu1 %vm1040_vm3, %v6210_v13 }
 0x215   : > { %8463 = vst [vmem:[#allocation40_spill] sm:$0xff] %v7245_v38  ;;  %v1476_v7 = vadd.f32 %v5220_v56, %v6987_v41  ;;  %5521 = vmatprep.mubr.msk.f32.mxu1 %vm1040_vm3, %v6245_v31  ;;  %v7262_v19 = vadd.f32 %v7020_v62, %v1461_v9  ;;  %v8466_v31 = vld [vmem:[#allocation14_spill] sm:$0xff]  ;;  %v8468_v9 = vld [vmem:[#allocation19_spill] sm:$0xff]  ;;  %v8490_v38 = vld [vmem:[#allocation24_spill] sm:$0xff] }
 0x216   : > { %v7251_v34 = vpop.f32.mrf.mxu0  ;;  %5608 = vmatmul.mubr.msk.f32.gmra.mxu0 %vm1040_vm3, %v2560_v25  ;;  %v1470_v20 = vpop.f32.mrf.mxu1 }
 0x217   : > { %5610 = vmatprep.mubr.msk.f32.mxu0 %vm1040_vm3, %v8464_v14  ;;  %v1471_v23 = vadd.f32 %v1470_v20, %v6993_v4  ;;  %v7268_v13 = vadd.f32 %v7028_v0, %v1476_v7 }
 0x218   : > { %v7264_v63 = vpop.f32.mrf.mxu0  ;;  %v5223_v25 = vpop.f32.mrf.mxu1  ;;  %5522 = vmatmul.mubr.msk.f32.gmra.mxu1 %vm1040_vm3, %v6252_v48 }
 0x219   : > { %8465 = vst [vmem:[#allocation42_spill] sm:$0xff] %v7264_v63  ;;  %v1486_v41 = vadd.f32 %v5223_v25, %v6999_v24  ;;  %5524 = vmatprep.mubr.msk.f32.mxu1 %vm1040_vm3, %v6286_v6  ;;  %v7280_v62 = vadd.f32 %v7036_v28, %v1471_v23  ;;  %v8469_v6 = vld [vmem:[#allocation21_spill] sm:$0xff]  ;;  %v8470_v25 = vld [vmem:[#allocation22_spill] sm:$0xff]  ;;  %v8489_v63 = vld [vmem:[#allocation59_spill] sm:$0xff] }
 0x21a   : > { %v7270_v53 = vpop.f32.mrf.mxu0  ;;  %5611 = vmatmul.mubr.msk.f32.gmra.mxu0 %vm1040_vm3, %v8466_v31  ;;  %v1480_v4 = vpop.f32.mrf.mxu1  ;;  %v8471_v31 = vld [vmem:[#allocation27_spill] sm:$0xff] }
 0x21b   : > { %v1481_v56 = vadd.f32 %v1480_v4, %v7005_v27  ;;  %v7286_v21 = vadd.f32 %v7044_v35, %v1486_v41 }
 0x21c   : > { %v7282_v0 = vpop.f32.mrf.mxu0  ;;  %v5226_v48 = vpop.f32.mrf.mxu1  ;;  %5525 = vmatmul.mubr.msk.f32.gmra.mxu1 %vm1040_vm3, %v8468_v9  ;;  %v8472_v9 = vld [vmem:[#allocation28_spill] sm:$0xff] }
 0x21d   : > { %8467 = vst [vmem:[#allocation45_spill] sm:$0xff] %v7282_v0  ;;  %v1496_v24 = vadd.f32 %v5226_v48, %v7018_v52  ;;  %5527 = vmatprep.mubr.msk.f32.mxu1 %vm1040_vm3, %v8469_v6  ;;  %v7296_v28 = vadd.f32 %v7052_v45, %v1481_v56  ;;  %v8487_v0 = vld [vmem:[#allocation57_spill] sm:$0xff] }
 0x21e   : > { %v7288_v33 = vpop.f32.mrf.mxu0  ;;  %v1490_v7 = vpop.f32.mrf.mxu1 }
 0x21f   : > { %v1491_v27 = vadd.f32 %v1490_v7, %v7022_v3  ;;  %v7302_v35 = vadd.f32 %v7064_v22, %v1496_v24  ;;  %v8473_v24 = vld [vmem:[#allocation31_spill] sm:$0xff] }
 0x220   : > { %v7298_v14 = vpop.f32.mrf.mxu0  ;;  %v5229_v20 = vpop.f32.mrf.mxu1  ;;  %5528 = vmatmul.mubr.msk.f32.gmra.mxu1 %vm1040_vm3, %v8470_v25  ;;  %v8474_v25 = vld [vmem:[#allocation32_spill] sm:$0xff] }
 0x221   : > { %v1506_v52 = vadd.f32 %v5229_v20, %v7034_v36  ;;  %5530 = vmatprep.mubr.msk.f32.mxu1 %vm1040_vm3, %v8471_v31  ;;  %v7312_v45 = vadd.f32 %v7068_v15, %v1491_v27 }
 0x222   : > { %v7304_v23 = vpop.f32.mrf.mxu0  ;;  %v1500_v41 = vpop.f32.mrf.mxu1 }
 0x223   : > { %v1501_v3 = vadd.f32 %v1500_v41, %v7038_v57  ;;  %v7318_v22 = vadd.f32 %v7080_v2, %v1506_v52  ;;  %v8475_v52 = vld [vmem:[#allocation35_spill] sm:$0xff] }
 0x224   : > { %v7314_v4 = vpop.f32.mrf.mxu0  ;;  %v5232_v56 = vpop.f32.mrf.mxu1  ;;  %5531 = vmatmul.mubr.msk.f32.gmra.mxu1 %vm1040_vm3, %v8472_v9  ;;  %v8476_v9 = vld [vmem:[#allocation36_spill] sm:$0xff] }
 0x225   : > { %v1516_v36 = vadd.f32 %v5232_v56, %v7050_v42  ;;  %5533 = vmatprep.mubr.msk.f32.mxu1 %vm1040_vm3, %v8473_v24  ;;  %v7328_v15 = vadd.f32 %v7092_v61, %v1501_v3 }
 0x226   : > { %v7320_v48 = vpop.f32.mrf.mxu0  ;;  %v1510_v6 = vpop.f32.mrf.mxu1 }
 0x227   : > { %v1511_v57 = vadd.f32 %v1510_v6, %v7054_v11  ;;  %v7334_v2 = vadd.f32 %v7106_v32, %v1516_v36 }
 0x228   : > { %v7330_v7 = vpop.f32.mrf.mxu0  ;;  %v5235_v27 = vpop.f32.mrf.mxu1  ;;  %5534 = vmatmul.mubr.msk.f32.gmra.mxu1 %vm1040_vm3, %v8474_v25 }
 0x229   : > { %v1526_v42 = vadd.f32 %v5235_v27, %v7066_v17  ;;  %5536 = vmatprep.mubr.msk.f32.mxu1 %vm1040_vm3, %v8475_v52  ;;  %v7344_v61 = vadd.f32 %v7110_v43, %v1511_v57 }
 0x22a   : > { %v7336_v20 = vpop.f32.mrf.mxu0  ;;  %v1520_v31 = vpop.f32.mrf.mxu1 }
 0x22b   : > { %v1521_v11 = vadd.f32 %v1520_v31, %v7078_v59  ;;  %v7350_v32 = vadd.f32 %v7122_v47, %v1526_v42 }
 0x22c   : > { %v7346_v41 = vpop.f32.mrf.mxu0  ;;  %v5238_v3 = vpop.f32.mrf.mxu1  ;;  %5537 = vmatmul.mubr.msk.f32.gmra.mxu1 %vm1040_vm3, %v8476_v9  ;;  %v8480_v9 = vld [vmem:[#allocation51_spill] sm:$0xff] }
 0x22d   : > { %v1536_v17 = vadd.f32 %v5238_v3, %v7090_v26  ;;  %5539 = vmatprep.mubr.msk.f32.mxu1 %vm1040_vm3, %v8416_v55  ;;  %v7360_v43 = vadd.f32 %v7130_v50, %v1521_v11  ;;  %v8477_v55 = vld [vmem:[#allocation43_spill] sm:$0xff]  ;;  %v8479_v3 = vld [vmem:[#allocation48_spill] sm:$0xff] }
 0x22e   : > { %v7352_v56 = vpop.f32.mrf.mxu0  ;;  %v1530_v36 = vpop.f32.mrf.mxu1 }
 0x22f   : > { %v1531_v47 = vadd.f32 %v1530_v36, %v7094_v29  ;;  %v7366_v59 = vadd.f32 %v7136_v5, %v1536_v17  ;;  %v8481_v36 = vld [vmem:[#allocation25_spill] sm:$0xff] }
 0x230   : > { %v7362_v24 = vpop.f32.mrf.mxu0  ;;  %v5241_v6 = vpop.f32.mrf.mxu1  ;;  %5540 = vmatmul.mubr.msk.f32.gmra.mxu1 %vm1040_vm3, %v8417_v18 }
 0x231   : > { %v1546_v26 = vadd.f32 %v5241_v6, %v7104_v39  ;;  %5542 = vmatprep.mubr.msk.f32.mxu1 %vm1040_vm3, %v8477_v55  ;;  %v7376_v50 = vadd.f32 %v7144_v30, %v1531_v47  ;;  %v8478_v39 = vld [vmem:[#allocation47_spill] sm:$0xff] }
 0x232   : > { %v7368_v57 = vpop.f32.mrf.mxu0  ;;  %v7378_v27 = vpop.f32.mrf.mxu1  ;;  %v8483_v55 = vld [vmem:[#allocation15_spill] sm:$0xff] }
 0x233   : > { %v7383_v5 = vadd.f32 %v7154_v49, %v1546_v26  ;;  %v8482_v26 = vld [vmem:[#allocation52_spill] sm:$0xff] }
 0x234   : > { %v7380_v29 = vpop.f32.mrf.mxu0  ;;  %v5244_v25 = vpop.f32.mrf.mxu1  ;;  %5543 = vmatmul.mubr.msk.f32.gmra.mxu1 %vm1040_vm3, %v8419_v12 }
 0x235   : > { %v1556_v18 = vadd.f32 %v5244_v25, %v7120_v40  ;;  %5545 = vmatprep.mubr.msk.f32.mxu1 %vm1040_vm3, %v8478_v39 }
 0x236   : > { %v7385_v42 = vpop.f32.mrf.mxu0  ;;  %v7392_v30 = vpop.f32.mrf.mxu1 }
 0x237   : > { %v7397_v31 = vadd.f32 %v7170_v46, %v1556_v18  ;;  %v8484_v18 = vld [vmem:[#allocation55_spill] sm:$0xff] }
 0x238   : > { %v7394_v52 = vpop.f32.mrf.mxu0  ;;  %v5247_v49 = vpop.f32.mrf.mxu1  ;;  %5546 = vmatmul.mubr.msk.f32.gmra.mxu1 %vm1040_vm3, %v8479_v3 }
 0x239   : > { %v1566_v12 = vadd.f32 %v5247_v49, %v7138_v16  ;;  %5548 = vmatprep.mubr.msk.f32.mxu1 %vm1040_vm3, %v8480_v9  ;;  %v8485_v9 = vld [vmem:[#allocation56_spill] sm:$0xff] }
 0x23a   : > { %v7399_v11 = vpop.f32.mrf.mxu0  ;;  %v7406_v40 = vpop.f32.mrf.mxu1 }
 0x23b   : > { %v7411_v47 = vadd.f32 %v8481_v36, %v1566_v12  ;;  %v8486_v36 = vld [vmem:[#allocation18_spill] sm:$0xff] }
 0x23c   : > { %v7408_v17 = vpop.f32.mrf.mxu0  ;;  %v5250_v46 = vpop.f32.mrf.mxu1  ;;  %5549 = vmatmul.mubr.msk.f32.gmra.mxu1 %vm1040_vm3, %v8482_v26 }
 0x23d   : > { %v1576_v25 = vadd.f32 %v5250_v46, %v8483_v55  ;;  %5551 = vmatprep.mubr.msk.f32.mxu1 %vm1040_vm3, %v8484_v18 }
 0x23e   : > { %v7413_v6 = vpop.f32.mrf.mxu0  ;;  %v7420_v16 = vpop.f32.mrf.mxu1 }
 0x23f   : > { %v7425_v49 = vadd.f32 %v7205_v10, %v1576_v25 }
 0x240   : > { %v7422_v39 = vpop.f32.mrf.mxu0  ;;  %v5253_v3 = vpop.f32.mrf.mxu1  ;;  %5552 = vmatmul.mubr.msk.f32.gmra.mxu1 %vm1040_vm3, %v8485_v9 }
 0x241   : > { %v1586_v26 = vadd.f32 %v5253_v3, %v8486_v36  ;;  %5554 = vmatprep.mubr.msk.f32.mxu1 %vm1040_vm3, %v8487_v0 }
 0x242   : > { %v7427_v12 = vpop.f32.mrf.mxu0  ;;  %v7434_v46 = vpop.f32.mrf.mxu1 }
 0x243   : > { %v7439_v18 = vadd.f32 %v7222_v51, %v1586_v26 }
 0x244   : > { %v7436_v55 = vpop.f32.mrf.mxu0  ;;  %v5256_v10 = vpop.f32.mrf.mxu1  ;;  %5555 = vmatmul.mubr.msk.f32.gmra.mxu1 %vm1040_vm3, %v8489_v63 }
 0x245   : > { %8488 = vst [vmem:[#allocation46_spill] sm:$0xff] %v7439_v18  ;;  %v1596_v9 = vadd.f32 %v5256_v10, %v8490_v38  ;;  %5557 = vmatprep.mubr.msk.f32.mxu1 %vm1040_vm3, %v8491_v37  ;;  %v8494_v18 = vld [vmem:[#allocation29_spill] sm:$0xff] }
 0x246   : > { %v7441_v25 = vpop.f32.mrf.mxu0  ;;  %v7448_v3 = vpop.f32.mrf.mxu1 }
 0x247   : > { %8492 = vst [vmem:[#allocation49_spill] sm:$0xff] %v7448_v3  ;;  %v7453_v36 = vadd.f32 %v7235_v44, %v1596_v9 }
 0x248   : > { %v7450_v0 = vpop.f32.mrf.mxu0  ;;  %v5259_v51 = vpop.f32.mrf.mxu1  ;;  %5558 = vmatmul.mubr.msk.f32.gmra.mxu1 %vm1040_vm3, %v8494_v18 }
 0x249   : > { %8493 = vst [vmem:[#allocation50_spill] sm:$0xff] %v7453_v36  ;;  %v1606_v63 = vadd.f32 %v5259_v51, %v7203_v1  ;;  %5560 = vmatprep.mubr.msk.f32.mxu1 %vm1040_vm3, %v8495_v54  ;;  %v8499_v36 = vld [vmem:[#allocation12_spill] sm:$0xff] }
 0x24a   : > { %v7455_v26 = vpop.f32.mrf.mxu0  ;;  %v7462_v38 = vpop.f32.mrf.mxu1 }
 0x24b   : > { %8496 = vst [vmem:[#allocation53_spill] sm:$0xff] %v7462_v38  ;;  %v7467_v10 = vadd.f32 %v7251_v34, %v1606_v63 }
 0x24c   : > { %v7464_v37 = vpop.f32.mrf.mxu0  ;;  %v5262_v44 = vpop.f32.mrf.mxu1  ;;  %5561 = vmatmul.mubr.msk.f32.gmra.mxu1 %vm1040_vm3, %v8499_v36 }
 0x24d   : > { %8497 = vst [vmem:[#allocation54_spill] sm:$0xff] %v7467_v10  ;;  %v1616_v18 = vadd.f32 %v5262_v44, %v7220_v58 }
 0x24e   : > { %v7469_v9 = vpop.f32.mrf.mxu0  ;;  %v7474_v3 = vpop.f32.mrf.mxu1 }
 0x24f   : > { %8498 = vst [vmem:[#allocation58_spill] sm:$0xff] %v7469_v9  ;;  %8500 = vst [vmem:[#allocation13_spill] sm:$0xff] %v7474_v3  ;;  %v7479_v54 = vadd.f32 %v7270_v53, %v1616_v18 }
 0x250   : > { %v7476_v1 = vpop.f32.mrf.mxu0  ;;  %v5317_v51 = vpop.f32.mrf.mxu1 }
 0x251   : > { %8501 = vst [vmem:[#allocation14_spill] sm:$0xff] %v7479_v54  ;;  %v2256_v34 = vadd.f32 %v5317_v51, %v7249_v60 }
 0x252   : > { %v7481_v38 = vpop.f32.mrf.mxu0  ;;  %v2096_v63 = vpop.f32.mrf.mxu1 }
 0x253   : > { %v2255_v9 = vadd.f32 %v2096_v63, %v7262_v19  ;;  %v7488_v36 = vadd.f32 %v7288_v33, %v2256_v34 }
 0x254   : > { %v7484_v10 = vpop.f32.mrf.mxu0  ;;  %v5320_v58 = vpop.f32.mrf.mxu1 }
 0x255   : > { %v2258_v3 = vadd.f32 %v5320_v58, %v7268_v13  ;;  %v7494_v53 = vadd.f32 %v7298_v14, %v2255_v9 }
 0x256   : > { %v7490_v44 = vpop.f32.mrf.mxu0  ;;  %v2106_v18 = vpop.f32.mrf.mxu1 }
 0x257   : > { %v2257_v60 = vadd.f32 %v2106_v18, %v7280_v62  ;;  %v7500_v51 = vadd.f32 %v7304_v23, %v2258_v3 }
 0x258   : > { %v7496_v54 = vpop.f32.mrf.mxu0  ;;  %v5323_v19 = vpop.f32.mrf.mxu1 }
 0x259   : > { %v2260_v33 = vadd.f32 %v5323_v19, %v7286_v21  ;;  %v7506_v34 = vadd.f32 %v7314_v4, %v2257_v60 }
 0x25a   : > { %v7502_v63 = vpop.f32.mrf.mxu0  ;;  %v2116_v13 = vpop.f32.mrf.mxu1 }
 0x25b   : > { %v2259_v14 = vadd.f32 %v2116_v13, %v7296_v28  ;;  %v7512_v9 = vadd.f32 %v7320_v48, %v2260_v33 }
 0x25c   : > { %v7508_v58 = vpop.f32.mrf.mxu0  ;;  %v5326_v62 = vpop.f32.mrf.mxu1 }
 0x25d   : > { %v2262_v23 = vadd.f32 %v5326_v62, %v7302_v35  ;;  %v7518_v3 = vadd.f32 %v7330_v7, %v2259_v14 }
 0x25e   : > { %v7514_v18 = vpop.f32.mrf.mxu0  ;;  %v2126_v21 = vpop.f32.mrf.mxu1 }
 0x25f   : > { %v2261_v4 = vadd.f32 %v2126_v21, %v7312_v45  ;;  %v7524_v60 = vadd.f32 %v7336_v20, %v2262_v23 }
 0x260   : > { %v7520_v19 = vpop.f32.mrf.mxu0  ;;  %v5329_v28 = vpop.f32.mrf.mxu1 }
 0x261   : > { %v2264_v48 = vadd.f32 %v5329_v28, %v7318_v22  ;;  %v7530_v33 = vadd.f32 %v7346_v41, %v2261_v4 }
 0x262   : > { %v7526_v13 = vpop.f32.mrf.mxu0  ;;  %v2136_v35 = vpop.f32.mrf.mxu1 }
 0x263   : > { %v2263_v7 = vadd.f32 %v2136_v35, %v7328_v15  ;;  %v7536_v14 = vadd.f32 %v7352_v56, %v2264_v48 }
 0x264   : > { %v7532_v62 = vpop.f32.mrf.mxu0  ;;  %v5332_v45 = vpop.f32.mrf.mxu1 }
 0x265   : > { %v2266_v20 = vadd.f32 %v5332_v45, %v7334_v2  ;;  %v7542_v23 = vadd.f32 %v7362_v24, %v2263_v7 }
 0x266   : > { %v7538_v21 = vpop.f32.mrf.mxu0  ;;  %v2146_v22 = vpop.f32.mrf.mxu1 }
 0x267   : > { %v2265_v41 = vadd.f32 %v2146_v22, %v7344_v61  ;;  %v7548_v4 = vadd.f32 %v7368_v57, %v2266_v20  ;;  %v8504_v57 = vld [vmem:[#allocation39_spill] sm:$0xff] }
 0x268   : > { %v7544_v28 = vpop.f32.mrf.mxu0  ;;  %v5335_v15 = vpop.f32.mrf.mxu1  ;;  %v1541_v20 = vadd.f32 %v7378_v27, %v8504_v57 }
 0x269   : > { %8502 = vst [vmem:[#allocation19_spill] sm:$0xff] %v7548_v4  ;;  %v2268_v56 = vadd.f32 %v5335_v15, %v7350_v32  ;;  %v7554_v48 = vadd.f32 %v7380_v29, %v2265_v41 }
 0x26a   : > { %v7550_v35 = vpop.f32.mrf.mxu0  ;;  %v2156_v2 = vpop.f32.mrf.mxu1 }
 0x26b   : > { %v2267_v24 = vadd.f32 %v2156_v2, %v7360_v43  ;;  %v7560_v7 = vadd.f32 %v7385_v42, %v2268_v56  ;;  %v8506_v2 = vld [vmem:[#allocation41_spill] sm:$0xff] }
 0x26c   : > { %v7556_v45 = vpop.f32.mrf.mxu0  ;;  %v5338_v61 = vpop.f32.mrf.mxu1 }
 0x26d   : > { %8503 = vst [vmem:[#allocation21_spill] sm:$0xff] %v7560_v7  ;;  %v2270_v4 = vadd.f32 %v5338_v61, %v7366_v59  ;;  %v7568_v32 = vadd.f32 %v7394_v52, %v2267_v24  ;;  %v1551_v7 = vadd.f32 %v7392_v30, %v8506_v2  ;;  %v8507_v59 = vld [vmem:[#allocation17_spill] sm:$0xff] }
 0x26e   : > { %v7562_v22 = vpop.f32.mrf.mxu0  ;;  %v2166_v29 = vpop.f32.mrf.mxu1  ;;  %v2007_v61 = vadd.f32 %v8507_v59, %v1541_v20 }
 0x26f   : > { %v2269_v15 = vadd.f32 %v2166_v29, %v7376_v50  ;;  %v7574_v43 = vadd.f32 %v7399_v11, %v2270_v4 }
 0x270   : > { %v7570_v41 = vpop.f32.mrf.mxu0  ;;  %v5341_v42 = vpop.f32.mrf.mxu1 }
 0x271   : > { %8505 = vst [vmem:[#allocation22_spill] sm:$0xff] %v7574_v43  ;;  %v2272_v27 = vadd.f32 %v5341_v42, %v7383_v5  ;;  %v7583_v52 = vadd.f32 %v7408_v17, %v2269_v15  ;;  %v8508_v43 = vld [vmem:[#allocation44_spill] sm:$0xff]  ;;  %v8509_v42 = vld [vmem:[#allocation23_spill] sm:$0xff] }
 0x272   : > { %v7576_v56 = vpop.f32.mrf.mxu0  ;;  %v2176_v24 = vpop.f32.mrf.mxu1  ;;  %v1561_v30 = vadd.f32 %v7406_v40, %v8508_v43  ;;  %v2009_v20 = vadd.f32 %v8509_v42, %v1551_v7 }
 0x273   : > { %v2271_v50 = vadd.f32 %v2176_v24, %v2007_v61  ;;  %v7588_v11 = vadd.f32 %v7413_v6, %v2272_v27  ;;  %v8510_v24 = vld [vmem:[#allocation16_spill] sm:$0xff] }
 0x274   : > { %v7585_v57 = vpop.f32.mrf.mxu0  ;;  %v5344_v4 = vpop.f32.mrf.mxu1  ;;  %v1571_v40 = vadd.f32 %v7420_v16, %v8510_v24  ;;  %v2011_v7 = vadd.f32 %v7200_v8, %v1561_v30 }
 0x275   : > { %v2274_v5 = vadd.f32 %v5344_v4, %v7397_v31  ;;  %v7597_v17 = vadd.f32 %v7422_v39, %v2271_v50 }
 0x276   : > { %v7590_v29 = vpop.f32.mrf.mxu0  ;;  %v2186_v15 = vpop.f32.mrf.mxu1 }
 0x277   : > { %v2273_v59 = vadd.f32 %v2186_v15, %v2009_v20  ;;  %v7602_v6 = vadd.f32 %v7427_v12, %v2274_v5  ;;  %v8512_v20 = vld [vmem:[#allocation20_spill] sm:$0xff]  ;;  %v8513_v15 = vld [vmem:[#allocation34_spill] sm:$0xff] }
 0x278   : > { %v7599_v2 = vpop.f32.mrf.mxu0  ;;  %v5347_v27 = vpop.f32.mrf.mxu1  ;;  %v1581_v16 = vadd.f32 %v7434_v46, %v8512_v20  ;;  %v2013_v8 = vadd.f32 %v8513_v15, %v1571_v40  ;;  %v8518_v20 = vld [vmem:[#allocation46_spill] sm:$0xff] }
 0x279   : > { %v2276_v31 = vadd.f32 %v5347_v27, %v7411_v47  ;;  %v7611_v39 = vadd.f32 %v7436_v55, %v2273_v59 }
 0x27a   : > { %v7604_v61 = vpop.f32.mrf.mxu0  ;;  %v2196_v43 = vpop.f32.mrf.mxu1 }
 0x27b   : > { %v2275_v4 = vadd.f32 %v2196_v43, %v2011_v7  ;;  %v7616_v12 = vadd.f32 %v7441_v25, %v2276_v31  ;;  %v8516_v7 = vld [vmem:[#allocation30_spill] sm:$0xff]  ;;  %v8517_v43 = vld [vmem:[#allocation49_spill] sm:$0xff] }
 0x27c   : > { %v7613_v50 = vpop.f32.mrf.mxu0  ;;  %v5350_v5 = vpop.f32.mrf.mxu1  ;;  %v1591_v46 = vadd.f32 %v8517_v43, %v8516_v7  ;;  %v8525_v43 = vld [vmem:[#allocation50_spill] sm:$0xff] }
 0x27d   : > { %8511 = vst [vmem:[#allocation27_spill] sm:$0xff] %v7616_v12  ;;  %v2278_v47 = vadd.f32 %v5350_v5, %v7425_v49  ;;  %v7625_v55 = vadd.f32 %v7450_v0, %v2275_v4  ;;  %v8519_v5 = vld [vmem:[#allocation38_spill] sm:$0xff]  ;;  %v8524_v12 = vld [vmem:[#allocation53_spill] sm:$0xff] }
 0x27e   : > { %v7618_v42 = vpop.f32.mrf.mxu0  ;;  %v2206_v30 = vpop.f32.mrf.mxu1  ;;  %v2015_v40 = vadd.f32 %v8519_v5, %v1581_v16 }
 0x27f   : > { %8514 = vst [vmem:[#allocation28_spill] sm:$0xff] %v7625_v55  ;;  %v2277_v27 = vadd.f32 %v2206_v30, %v2013_v8  ;;  %v7630_v25 = vadd.f32 %v7455_v26, %v2278_v47  ;;  %v8521_v30 = vld [vmem:[#allocation58_spill] sm:$0xff]  ;;  %v8523_v55 = vld [vmem:[#allocation33_spill] sm:$0xff] }
 0x280   : > { %v7627_v59 = vpop.f32.mrf.mxu0  ;;  %v5353_v24 = vpop.f32.mrf.mxu1  ;;  %v1601_v7 = vadd.f32 %v8524_v12, %v8523_v55  ;;  %v8531_v55 = vld [vmem:[#allocation54_spill] sm:$0xff] }
 0x281   : > { %8515 = vst [vmem:[#allocation31_spill] sm:$0xff] %v7630_v25  ;;  %v2280_v49 = vadd.f32 %v5353_v24, %v8518_v20  ;;  %v7639_v0 = vadd.f32 %v7464_v37, %v2277_v27  ;;  %v8526_v20 = vld [vmem:[#allocation40_spill] sm:$0xff] }
 0x282   : > { %v7632_v31 = vpop.f32.mrf.mxu0  ;;  %v2216_v4 = vpop.f32.mrf.mxu1  ;;  %v2017_v16 = vadd.f32 %v8526_v20, %v1591_v46 }
 0x283   : > { %8520 = vst [vmem:[#allocation32_spill] sm:$0xff] %v7639_v0  ;;  %v2279_v8 = vadd.f32 %v2216_v4, %v2015_v40  ;;  %v7644_v26 = vadd.f32 %v8521_v30, %v2280_v49  ;;  %v8530_v0 = vld [vmem:[#allocation13_spill] sm:$0xff] }
 0x284   : > { %v7641_v15 = vpop.f32.mrf.mxu0  ;;  %v5356_v47 = vpop.f32.mrf.mxu1 }
 0x285   : > { %8522 = vst [vmem:[#allocation35_spill] sm:$0xff] %v7644_v26  ;;  %v2282_v24 = vadd.f32 %v5356_v47, %v8525_v43  ;;  %v7653_v37 = vadd.f32 %v7476_v1, %v2279_v8  ;;  %v8529_v26 = vld [vmem:[#allocation37_spill] sm:$0xff]  ;;  %v8532_v43 = vld [vmem:[#allocation42_spill] sm:$0xff] }
 0x286   : > { %v7646_v25 = vpop.f32.mrf.mxu0  ;;  %v2226_v27 = vpop.f32.mrf.mxu1  ;;  %v1611_v12 = vadd.f32 %v8530_v0, %v8529_v26  ;;  %v2019_v46 = vadd.f32 %v8532_v43, %v1601_v7  ;;  %v8534_v0 = vld [vmem:[#allocation45_spill] sm:$0xff] }
 0x287   : > { %8527 = vst [vmem:[#allocation36_spill] sm:$0xff] %v7653_v37  ;;  %v2281_v40 = vadd.f32 %v2226_v27, %v2017_v16  ;;  %v7658_v49 = vadd.f32 %v7481_v38, %v2282_v24 }
 0x288   : > { %v7655_v5 = vpop.f32.mrf.mxu0  ;;  %v5359_v4 = vpop.f32.mrf.mxu1  ;;  %v2021_v26 = vadd.f32 %v8534_v0, %v1611_v12 }
 0x289   : > { %8528 = vst [vmem:[#allocation43_spill] sm:$0xff] %v7658_v49  ;;  %v2284_v47 = vadd.f32 %v5359_v4, %v8531_v55  ;;  %v7667_v1 = vadd.f32 %v7484_v10, %v2281_v40  ;;  %v8533_v49 = vld [vmem:[#allocation14_spill] sm:$0xff] }
 0x28a   : > { %v7660_v30 = vpop.f32.mrf.mxu0  ;;  %v2236_v8 = vpop.f32.mrf.mxu1 }
 0x28b   : > { %v2283_v16 = vadd.f32 %v2236_v8, %v2019_v46  ;;  %v7672_v38 = vadd.f32 %v7490_v44, %v2284_v47 }
 0x28c   : > { %v7669_v20 = vpop.f32.mrf.mxu0  ;;  %v5362_v24 = vpop.f32.mrf.mxu1 }
 0x28d   : > { %v2286_v37 = vadd.f32 %v5362_v24, %v8533_v49  ;;  %v7679_v4 = vadd.f32 %v7496_v54, %v2283_v16 }
 0x28e   : > { %v7674_v27 = vpop.f32.mrf.mxu0  ;;  %v2246_v7 = vpop.f32.mrf.mxu1 }
 0x28f   : > { %v2285_v40 = vadd.f32 %v2246_v7, %v2021_v26  ;;  %v7684_v55 = vadd.f32 %v7502_v63, %v2286_v37 }
 0x290   : > { %v7681_v10 = vpop.f32.mrf.mxu0  ;;  %v5417_v43 = vpop.f32.mrf.mxu1 }
 0x291   : > { %v2793_v47 = vadd.f32 %v5417_v43, %v7488_v36  ;;  %v7690_v46 = vadd.f32 %v7508_v58, %v2285_v40 }
 0x292   : > { %v7686_v44 = vpop.f32.mrf.mxu0  ;;  %v2633_v49 = vpop.f32.mrf.mxu1 }
 0x293   : > { %v2792_v54 = vadd.f32 %v2633_v49, %v7494_v53  ;;  %v7696_v8 = vadd.f32 %v7514_v18, %v2793_v47 }
 0x294   : > { %v7692_v12 = vpop.f32.mrf.mxu0  ;;  %v5420_v16 = vpop.f32.mrf.mxu1 }
 0x295   : > { %v2795_v63 = vadd.f32 %v5420_v16, %v7500_v51  ;;  %v7702_v37 = vadd.f32 %v7520_v19, %v2792_v54 }
 0x296   : > { %v7698_v24 = vpop.f32.mrf.mxu0  ;;  %v2643_v36 = vpop.f32.mrf.mxu1 }
 0x297   : > { %v2794_v58 = vadd.f32 %v2643_v36, %v7506_v34  ;;  %v7708_v26 = vadd.f32 %v7526_v13, %v2795_v63 }
 0x298   : > { %v7704_v0 = vpop.f32.mrf.mxu0  ;;  %v5423_v53 = vpop.f32.mrf.mxu1 }
 0x299   : > { %v2797_v18 = vadd.f32 %v5423_v53, %v7512_v9  ;;  %v7714_v40 = vadd.f32 %v7532_v62, %v2794_v58 }
 0x29a   : > { %v7710_v7 = vpop.f32.mrf.mxu0  ;;  %v2653_v51 = vpop.f32.mrf.mxu1 }
 0x29b   : > { %v2796_v19 = vadd.f32 %v2653_v51, %v7518_v3  ;;  %v7720_v47 = vadd.f32 %v7538_v21, %v2797_v18  ;;  %v8535_v51 = vld [vmem:[#allocation19_spill] sm:$0xff] }
 0x29c   : > { %v7716_v43 = vpop.f32.mrf.mxu0  ;;  %v5426_v34 = vpop.f32.mrf.mxu1 }
 0x29d   : > { %v2799_v13 = vadd.f32 %v5426_v34, %v7524_v60  ;;  %v7726_v54 = vadd.f32 %v7544_v28, %v2796_v19 }
 0x29e   : > { %v7722_v49 = vpop.f32.mrf.mxu0  ;;  %v2663_v9 = vpop.f32.mrf.mxu1 }
 0x29f   : > { %v2798_v62 = vadd.f32 %v2663_v9, %v7530_v33  ;;  %v7732_v63 = vadd.f32 %v7550_v35, %v2799_v13 }
 0x2a0   : > { %v7728_v16 = vpop.f32.mrf.mxu0  ;;  %v5429_v3 = vpop.f32.mrf.mxu1 }
 0x2a1   : > { %v2801_v21 = vadd.f32 %v5429_v3, %v7536_v14  ;;  %v7738_v58 = vadd.f32 %v7556_v45, %v2798_v62  ;;  %v8536_v62 = vld [vmem:[#allocation21_spill] sm:$0xff] }
 0x2a2   : > { %v7734_v36 = vpop.f32.mrf.mxu0  ;;  %v2673_v60 = vpop.f32.mrf.mxu1 }
 0x2a3   : > { %v2800_v28 = vadd.f32 %v2673_v60, %v7542_v23  ;;  %v7744_v18 = vadd.f32 %v7562_v22, %v2801_v21 }
 0x2a4   : > { %v7740_v53 = vpop.f32.mrf.mxu0  ;;  %v5432_v33 = vpop.f32.mrf.mxu1 }
 0x2a5   : > { %v2803_v35 = vadd.f32 %v5432_v33, %v8535_v51  ;;  %v7748_v19 = vadd.f32 %v7570_v41, %v2800_v28  ;;  %v8537_v33 = vld [vmem:[#allocation22_spill] sm:$0xff] }
 0x2a6   : > { %v7750_v34 = vpop.f32.mrf.mxu0  ;;  %v2683_v14 = vpop.f32.mrf.mxu1 }
 0x2a7   : > { %v2802_v45 = vadd.f32 %v2683_v14, %v7554_v48  ;;  %v7754_v13 = vadd.f32 %v7576_v56, %v2803_v35 }
 0x2a8   : > { %v5435_v9 = vpop.f32.mrf.mxu1  ;;  %v7760_v3 = vpop.f32.mrf.mxu0 }
 0x2a9   : > { %v2805_v23 = vadd.f32 %v5435_v9, %v8536_v62  ;;  %v7758_v22 = vadd.f32 %v7585_v57, %v2802_v45 }
 0x2aa   : > { %v2693_v21 = vpop.f32.mrf.mxu1  ;;  %v7770_v51 = vpop.f32.mrf.mxu0 }
 0x2ab   : > { %v2804_v41 = vadd.f32 %v2693_v21, %v7568_v32  ;;  %v7764_v60 = vadd.f32 %v7590_v29, %v2805_v23 }
 0x2ac   : > { %v5438_v28 = vpop.f32.mrf.mxu1  ;;  %v7780_v9 = vpop.f32.mrf.mxu0 }
 0x2ad   : > { %v2807_v48 = vadd.f32 %v5438_v28, %v8537_v33  ;;  %v7768_v56 = vadd.f32 %v7599_v2, %v2804_v41  ;;  %v8542_v33 = vld [vmem:[#allocation27_spill] sm:$0xff] }
 0x2ae   : > { %v2703_v35 = vpop.f32.mrf.mxu1 }
 0x2af   : > { %v2806_v57 = vadd.f32 %v2703_v35, %v7583_v52  ;;  %v7774_v14 = vadd.f32 %v7604_v61, %v2807_v48  ;;  %v7789_v52 = vld [vmem:[%s8247_s7 + $0x8] sm:$0xff] }
 0x2b0   : > { %v5441_v45 = vpop.f32.mrf.mxu1  ;;  %8539 = vst [vmem:[#allocation48_spill] sm:$0xff] %v7789_v52  ;;  %3752 = vmatprep.mubr.f32.mxu1 %v7789_v52  ;;  %v8550_v52 = vld [vmem:[#allocation43_spill] sm:$0xff] }
 0x2b1   : > { %v2809_v32 = vadd.f32 %v5441_v45, %v7588_v11  ;;  %v7778_v29 = vadd.f32 %v7613_v50, %v2806_v57  ;;  %v7796_v50 = vpop.f32.mrf.mxu0  ;;  %v8544_v57 = vld [vmem:[#allocation28_spill] sm:$0xff] }
 0x2b2   : > { %v2713_v62 = vpop.f32.mrf.mxu1 }
 0x2b3   : > { %v2808_v2 = vadd.f32 %v2713_v62, %v7597_v17  ;;  %v7784_v23 = vadd.f32 %v7618_v42, %v2809_v32 }
 0x2b4   : > { %v5444_v21 = vpop.f32.mrf.mxu1 }
 0x2b5   : > { %8538 = vst [vmem:[#allocation47_spill] sm:$0xff] %v7784_v23  ;;  %v2811_v61 = vadd.f32 %v5444_v21, %v7602_v6  ;;  %v7793_v11 = vadd.f32 %v7627_v59, %v2808_v2  ;;  %v7806_v6 = vpop.f32.mrf.mxu0  ;;  %v8545_v2 = vld [vmem:[#allocation31_spill] sm:$0xff] }
 0x2b6   : > { %v2723_v41 = vpop.f32.mrf.mxu1 }
 0x2b7   : > { %8540 = vst [vmem:[#allocation51_spill] sm:$0xff] %v7793_v11  ;;  %v2810_v17 = vadd.f32 %v2723_v41, %v7611_v39  ;;  %v7800_v42 = vadd.f32 %v7632_v31, %v2811_v61  ;;  %v7816_v21 = vpop.f32.mrf.mxu0  ;;  %v8547_v41 = vld [vmem:[#allocation32_spill] sm:$0xff] }
 0x2b8   : > { %v5447_v28 = vpop.f32.mrf.mxu1 }
 0x2b9   : > { %8541 = vst [vmem:[#allocation25_spill] sm:$0xff] %v7800_v42  ;;  %v2813_v48 = vadd.f32 %v5447_v28, %v8542_v33  ;;  %v7804_v35 = vadd.f32 %v7641_v15, %v2810_v17  ;;  %v8548_v33 = vld [vmem:[#allocation35_spill] sm:$0xff] }
 0x2ba   : > { %v2733_v59 = vpop.f32.mrf.mxu1 }
 0x2bb   : > { %8543 = vst [vmem:[#allocation52_spill] sm:$0xff] %v7804_v35  ;;  %v2812_v45 = vadd.f32 %v2733_v59, %v8544_v57  ;;  %v7810_v32 = vadd.f32 %v7646_v25, %v2813_v48  ;;  %v7826_v48 = vpop.f32.mrf.mxu0 }
 0x2bc   : > { %v5450_v62 = vpop.f32.mrf.mxu1 }
 0x2bd   : > { %v2815_v39 = vadd.f32 %v5450_v62, %v8545_v2  ;;  %v7814_v31 = vadd.f32 %v7655_v5, %v2812_v45  ;;  %v8549_v62 = vld [vmem:[#allocation36_spill] sm:$0xff] }
 0x2be   : > { %v2743_v61 = vpop.f32.mrf.mxu1 }
 0x2bf   : > { %8546 = vst [vmem:[#allocation15_spill] sm:$0xff] %v7814_v31  ;;  %v2814_v15 = vadd.f32 %v2743_v61, %v8547_v41  ;;  %v7820_v17 = vadd.f32 %v7660_v30, %v2815_v39  ;;  %v7836_v39 = vpop.f32.mrf.mxu0 }
 0x2c0   : > { %v5453_v28 = vpop.f32.mrf.mxu1 }
 0x2c1   : > { %v2817_v59 = vadd.f32 %v5453_v28, %v8548_v33  ;;  %v7824_v25 = vadd.f32 %v7669_v20, %v2814_v15 }
 0x2c2   : > { %v2753_v57 = vpop.f32.mrf.mxu1 }
 0x2c3   : > { %v2816_v5 = vadd.f32 %v2753_v57, %v8549_v62  ;;  %v7830_v45 = vadd.f32 %v7674_v27, %v2817_v59  ;;  %v7846_v59 = vpop.f32.mrf.mxu0 }
 0x2c4   : > { %v5456_v2 = vpop.f32.mrf.mxu1 }
 0x2c5   : > { %v2819_v61 = vadd.f32 %v5456_v2, %v8550_v52  ;;  %v7834_v30 = vadd.f32 %v7681_v10, %v2816_v5 }
 0x2c6   : > { %v2763_v41 = vpop.f32.mrf.mxu1 }
 0x2c7   : > { %v2818_v20 = vadd.f32 %v2763_v41, %v7667_v1  ;;  %v7840_v15 = vadd.f32 %v7686_v44, %v2819_v61  ;;  %v7855_v44 = vpop.f32.mrf.mxu0 }
 0x2c8   : > { %v5459_v28 = vpop.f32.mrf.mxu1 }
 0x2c9   : > { %v2821_v33 = vadd.f32 %v5459_v28, %v7672_v38  ;;  %v7844_v27 = vadd.f32 %v7692_v12, %v2818_v20  ;;  %v7858_v12 = vpop.f32.mrf.mxu0 }
 0x2ca   : > { %v2773_v52 = vpop.f32.mrf.mxu1 }
 0x2cb   : > { %v2820_v10 = vadd.f32 %v2773_v52, %v7679_v4  ;;  %v7850_v57 = vadd.f32 %v7698_v24, %v2821_v33  ;;  %v7868_v28 = vpop.f32.mrf.mxu0 }
 0x2cc   : > { %v5462_v62 = vpop.f32.mrf.mxu1  ;;  %8553 = vst [vmem:[#allocation18_spill] sm:$0xff] %v7868_v28 }
 0x2cd   : > { %v7853_v1 = vadd.f32 %v7704_v0, %v2820_v10  ;;  %v2823_v23 = vadd.f32 %v5462_v62, %v7684_v55 }
 0x2ce   : > { %v2783_v5 = vpop.f32.mrf.mxu1 }
 0x2cf   : > { %v3082_v42 = vadd.f32 %v7710_v7, %v2823_v23  ;;  %v7946_v7 = vld [vmem:[%s8244_s4] ss:$0 sm:$0xff] }
 0x2d0   : > { %v5517_v2 = vpop.f32.mrf.mxu1 }
 0x2d1   : > { %v3311_v38 = vadd.f32 %v5517_v2, %v7696_v8  ;;  %v7878_v2 = vpop.f32.mrf.mxu0 }
 0x2d2   : > { %v3151_v61 = vpop.f32.mrf.mxu1  ;;  %8556 = vst [vmem:[#allocation24_spill] sm:$0xff] %v7878_v2 }
 0x2d3   : > { %v7861_v41 = vadd.f32 %v7722_v49, %v3311_v38  ;;  %v3310_v4 = vadd.f32 %v3151_v61, %v7702_v37 }
 0x2d4   : > { %v5520_v24 = vpop.f32.mrf.mxu1 }
 0x2d5   : > { %8551 = vst [vmem:[#allocation55_spill] sm:$0xff] %v7861_v41  ;;  %v7865_v20 = vadd.f32 %v7728_v16, %v3310_v4  ;;  %v3313_v0 = vadd.f32 %v5520_v24, %v7708_v26  ;;  %v7888_v4 = vpop.f32.mrf.mxu0 }
 0x2d6   : > { %v3161_v33 = vpop.f32.mrf.mxu1  ;;  %8559 = vst [vmem:[#allocation11_spill] sm:$0xff] %v7888_v4 }
 0x2d7   : > { %8552 = vst [vmem:[#allocation56_spill] sm:$0xff] %v7865_v20  ;;  %v7871_v52 = vadd.f32 %v7734_v36, %v3313_v0  ;;  %v3312_v8 = vadd.f32 %v3161_v33, %v7714_v40 }
 0x2d8   : > { %v5523_v10 = vpop.f32.mrf.mxu1 }
 0x2d9   : > { %8554 = vst [vmem:[#allocation57_spill] sm:$0xff] %v7871_v52  ;;  %v7875_v49 = vadd.f32 %v7740_v53, %v3312_v8  ;;  %v3315_v37 = vadd.f32 %v5523_v10, %v7720_v47 }
 0x2da   : > { %v3171_v16 = vpop.f32.mrf.mxu1 }
 0x2db   : > { %8555 = vst [vmem:[#allocation59_spill] sm:$0xff] %v7875_v49  ;;  %v7881_v38 = vadd.f32 %v7750_v34, %v3315_v37  ;;  %v3314_v26 = vadd.f32 %v3171_v16, %v7726_v54  ;;  %v7899_v54 = vpop.f32.mrf.mxu0 }
 0x2dc   : > { %v5526_v61 = vpop.f32.mrf.mxu1  ;;  %8562 = vst [vmem:[#allocation41_spill] sm:$0xff] %v7899_v54 }
 0x2dd   : > { %8557 = vst [vmem:[#allocation26_spill] sm:$0xff] %v7881_v38  ;;  %v7885_v36 = vadd.f32 %v7760_v3, %v3314_v26  ;;  %v3317_v40 = vadd.f32 %v5526_v61, %v7732_v63  ;;  %v7903_v8 = vpop.f32.mrf.mxu0 }
 0x2de   : > { %v3181_v53 = vpop.f32.mrf.mxu1  ;;  %8563 = vst [vmem:[#allocation17_spill] sm:$0xff] %v7903_v8 }
 0x2df   : > { %8558 = vst [vmem:[#allocation29_spill] sm:$0xff] %v7885_v36  ;;  %v7891_v24 = vadd.f32 %v7770_v51, %v3317_v40  ;;  %v3316_v47 = vadd.f32 %v3181_v53, %v7738_v58  ;;  %v7905_v37 = vpop.f32.mrf.mxu0 }
 0x2e0   : > { %v7894_v0 = vpop.f32.mrf.mxu1  ;;  %8564 = vst [vmem:[#allocation44_spill] sm:$0xff] %v7905_v37 }
 0x2e1   : > { %8560 = vst [vmem:[#allocation12_spill] sm:$0xff] %v7891_v24  ;;  %v7897_v34 = vadd.f32 %v7780_v9, %v3316_v47  ;;  %v7907_v26 = vpop.f32.mrf.mxu0 }
 0x2e2   : > { %v7901_v33 = vpop.f32.mrf.mxu1  ;;  %8565 = vst [vmem:[#allocation23_spill] sm:$0xff] %v7907_v26 }
 0x2e3   : > { %8561 = vst [vmem:[#allocation39_spill] sm:$0xff] %v7897_v34  ;;  %v7911_v9 = vpop.f32.mrf.mxu0 }
 0x2e4   : > { %v5532_v3 = vpop.f32.mrf.mxu1  ;;  %8567 = vst [vmem:[#allocation20_spill] sm:$0xff] %v7911_v9 }
 0x2e5   : > { %v7917_v47 = vpop.f32.mrf.mxu0 }
 0x2e6   : > { %v3201_v63 = vpop.f32.mrf.mxu1 }
 0x2e7   : > { %v7923_v49 = vpop.f32.mrf.mxu0 }
 0x2e8   : > { %v5535_v10 = vpop.f32.mrf.mxu1 }
 0x2e9   : > { %v5606_v28 = vpop.f32.mrf.mxu0  ;;  %v3323_v9 = vadd.f32 %v5535_v10, %v7764_v60 }
 0x2ea   : > { %v3211_v51 = vpop.f32.mrf.mxu1 }
 0x2eb   : > { %v3540_v11 = vpop.f32.mrf.mxu0 }
 0x2ec   : > { %v5538_v16 = vpop.f32.mrf.mxu1 }
 0x2ed   : > { %v5609_v4 = vpop.f32.mrf.mxu0  ;;  %v3325_v34 = vadd.f32 %v5538_v16, %v7774_v14 }
 0x2ee   : > { %v3221_v58 = vpop.f32.mrf.mxu1 }
 0x2ef   : > { %v3550_v35 = vpop.f32.mrf.mxu0  ;;  %v3324_v24 = vadd.f32 %v3221_v58, %v7778_v29 }
 0x2f0   : > { %v7909_v61 = vpop.f32.mrf.mxu1 }
 0x2f1   : > { %8566 = vst [vmem:[#allocation16_spill] sm:$0xff] %v7909_v61  ;;  %v5612_v26 = vpop.f32.mrf.mxu0  ;;  %v3583_v29 = vadd.f32 %v7858_v12, %v3324_v24 }
 0x2f2   : > { %v7913_v40 = vpop.f32.mrf.mxu1 }
 0x2f3   : > { %8568 = vst [vmem:[#allocation34_spill] sm:$0xff] %v7913_v40 }
 0x2f4   : > { %v7915_v53 = vpop.f32.mrf.mxu1 }
 0x2f5   : > { %8569 = vst [vmem:[#allocation30_spill] sm:$0xff] %v7915_v53 }
 0x2f6   : > { %v7919_v20 = vpop.f32.mrf.mxu1 }
 0x2f7   : > { %8570 = vst [vmem:[#allocation49_spill] sm:$0xff] %v7919_v20  ;;  %v2822_v20 = vadd.f32 %v2783_v5, %v7690_v46  ;;  %v3322_v46 = vadd.f32 %v3211_v51, %v7768_v56  ;;  %v3560_v56 = vpop.f32.mrf.mxu0 }
 0x2f8   : > { %v7921_v41 = vpop.f32.mrf.mxu1 }
 0x2f9   : > { %v3081_v62 = vadd.f32 %v7716_v43, %v2822_v20 }
 0x2fa   : > { %v7925_v2 = vpop.f32.mrf.mxu1 }
 0x2fb   : > { %8571 = vst [vmem:[#allocation46_spill] sm:$0xff] %v7925_v2  ;;  %v3584_v2 = vadd.f32 %v7855_v44, %v3325_v34  ;;  %v3320_v34 = vadd.f32 %v3201_v63, %v7758_v22 }
 0x2fc   : > { %v7927_v52 = vpop.f32.mrf.mxu1 }
 0x2fd   : > { %v3623_v43 = vadd.f32 %v7946_v7, %v3584_v2 }
 0x2fe   : > { %v7929_v36 = vpop.f32.mrf.mxu1 }
 0x2ff   : > { %v3655_v22 = vmax.f32 %v3623_v43, 0.0  ;;  %v8579_v43 = vld [vmem:[#allocation12_spill] sm:$0xff] }
 0x300   : > { %v5553_v54 = vpop.f32.mrf.mxu1 }
 0x302   : > { %v3271_v40 = vpop.f32.mrf.mxu1 }
 0x304   : > { %v5556_v38 = vpop.f32.mrf.mxu1 }
 0x305   : > { %v3337_v60 = vadd.f32 %v5556_v38, %v7840_v15  ;;  %v3581_v15 = vadd.f32 %v7846_v59, %v3322_v46  ;;  %v3622_v38 = vadd.f32 %v7946_v7, %v3583_v29  ;;  %v3334_v59 = vadd.f32 %v3271_v40, %v7834_v30 }
 0x306   : > { %v3281_v61 = vpop.f32.mrf.mxu1 }
 0x308   : > { %v5559_v37 = vpop.f32.mrf.mxu1 }
 0x309   : > { %v3339_v53 = vadd.f32 %v5559_v37, %v7850_v57  ;;  %v3620_v37 = vadd.f32 %v7946_v7, %v3581_v15 }
 0x30a   : > { %v3291_v8 = vpop.f32.mrf.mxu1 }
 0x30b   : > { %v3338_v55 = vadd.f32 %v3291_v8, %v7853_v1  ;;  %v3598_v23 = vadd.f32 %v5609_v4, %v3339_v53  ;;  %v3321_v1 = vadd.f32 %v5532_v3, %v7754_v13  ;;  %v3335_v4 = vadd.f32 %v5553_v54, %v7830_v45 }
 0x30c   : > { %v5562_v31 = vpop.f32.mrf.mxu1  ;;  %v3596_v13 = vadd.f32 %v5606_v28, %v3337_v60  ;;  %v3318_v28 = vadd.f32 %v7901_v33, %v7748_v19  ;;  %v3579_v54 = vadd.f32 %v7826_v48, %v3320_v34  ;;  %v3332_v48 = vadd.f32 %v7929_v36, %v7824_v25  ;;  %v8577_v60 = vld [vmem:[#allocation30_spill] sm:$0xff]  ;;  %v8582_v34 = vld [vmem:[#allocation44_spill] sm:$0xff] }
 0x30d   : > { %v3341_v14 = vadd.f32 %v5562_v31, %v3082_v42  ;;  %v3582_v42 = vadd.f32 %v7836_v39, %v3323_v9  ;;  %v3336_v31 = vadd.f32 %v3281_v61, %v7844_v27  ;;  %v3597_v12 = vadd.f32 %v3550_v35, %v3338_v55  ;;  %v8572_v9 = vld [vmem:[#allocation23_spill] sm:$0xff]  ;;  %v8574_v55 = vld [vmem:[#allocation46_spill] sm:$0xff] }
 0x30e   : > { %v3301_v5 = vpop.f32.mrf.mxu1  ;;  %v3637_v2 = vadd.f32 %v7946_v7, %v3598_v23  ;;  %v3319_v35 = vadd.f32 %v7894_v0, %v7744_v18  ;;  %v3580_v27 = vadd.f32 %v7816_v21, %v3321_v1  ;;  %v3654_v18 = vmax.f32 %v3622_v38, 0.0 }
 0x30f   : > { %v3600_v57 = vadd.f32 %v5612_v26, %v3341_v14  ;;  %v3340_v44 = vadd.f32 %v3301_v5, %v3081_v62  ;;  %v3621_v8 = vadd.f32 %v7946_v7, %v3582_v42  ;;  %v3595_v63 = vadd.f32 %v3540_v11, %v3336_v31  ;;  %v8575_v14 = vld [vmem:[#allocation20_spill] sm:$0xff]  ;;  %v8576_v5 = vld [vmem:[#allocation25_spill] sm:$0xff] }
 0x310   : > { %v3636_v45 = vadd.f32 %v7946_v7, %v3597_v12  ;;  %v3333_v21 = vadd.f32 %v7927_v52, %v7820_v17  ;;  %v3594_v0 = vadd.f32 %v7917_v47, %v3335_v4  ;;  %v3669_v11 = vmax.f32 %v3637_v2, 0.0  ;;  %v8573_v47 = vld [vmem:[#allocation15_spill] sm:$0xff]  ;;  %v8580_v12 = vld [vmem:[#allocation52_spill] sm:$0xff] }
 0x311   : > { %v3639_v20 = vadd.f32 %v7946_v7, %v3600_v57  ;;  %v3599_v24 = vadd.f32 %v3560_v56, %v3340_v44  ;;  %v3635_v30 = vadd.f32 %v7946_v7, %v3596_v13  ;;  %v3578_v51 = vadd.f32 %v7796_v50, %v3319_v35  ;;  %v8578_v57 = vld [vmem:[#allocation17_spill] sm:$0xff]  ;;  %v8583_v13 = vld [vmem:[#allocation39_spill] sm:$0xff]  ;;  %v8585_v35 = vld [vmem:[#allocation16_spill] sm:$0xff] }
 0x312   : > { %v3619_v16 = vadd.f32 %v7946_v7, %v3580_v27  ;;  %v3653_v19 = vmax.f32 %v3621_v8, 0.0  ;;  %v3593_v33 = vadd.f32 %v7923_v49, %v3334_v59  ;;  %v3668_v26 = vmax.f32 %v3636_v45, 0.0  ;;  %v8584_v2 = vld [vmem:[#allocation47_spill] sm:$0xff] }
 0x313   : > { %v3671_v3 = vmax.f32 %v3639_v20, 0.0  ;;  %v3638_v39 = vadd.f32 %v7946_v7, %v3599_v24  ;;  %v3634_v17 = vadd.f32 %v7946_v7, %v3595_v63  ;;  %v3577_v52 = vadd.f32 %v7806_v6, %v3318_v28  ;;  %v8581_v20 = vld [vmem:[#allocation49_spill] sm:$0xff]  ;;  %v8586_v8 = vld [vmem:[#allocation11_spill] sm:$0xff] }
 0x314   : > { %v3618_v58 = vadd.f32 %v7946_v7, %v3579_v54  ;;  %v3652_v61 = vmax.f32 %v3620_v37, 0.0  ;;  %v3331_v50 = vadd.f32 %v7921_v41, %v7810_v32  ;;  %v3592_v40 = vadd.f32 %v8572_v9, %v3333_v21  ;;  %v8588_v54 = vld [vmem:[#allocation51_spill] sm:$0xff]  ;;  %v8589_v37 = vld [vmem:[#allocation34_spill] sm:$0xff]  ;;  %v8590_v21 = vld [vmem:[#allocation41_spill] sm:$0xff] }
 0x315   : > { %v3670_v10 = vmax.f32 %v3638_v39, 0.0  ;;  %4980 = vmatprep.subr.mxu1 %v3671_v3  ;;  %v3667_v53 = vmax.f32 %v3635_v30, 0.0  ;;  %v3633_v25 = vadd.f32 %v7946_v7, %v3594_v0  ;;  %v3617_v49 = vadd.f32 %v7946_v7, %v3578_v51  ;;  %v8591_v51 = vld [vmem:[#allocation29_spill] sm:$0xff] }
 0x316   : > { %4981 = vmatpush3.msra.mxu1 %v3655_v22  ;;  %v3651_v36 = vmax.f32 %v3619_v16, 0.0  ;;  %v3330_v6 = vadd.f32 %v8574_v55, %v8573_v47  ;;  %v3591_v62 = vadd.f32 %v8575_v14, %v3332_v48  ;;  %v3666_v46 = vmax.f32 %v3634_v17, 0.0  ;;  %v8592_v48 = vld [vmem:[#allocation18_spill] sm:$0xff] }
 0x317   : > { %4982 = vmatprep.subr.mxu1 %v3670_v10  ;;  %v3632_v29 = vadd.f32 %v7946_v7, %v3593_v33  ;;  %v3616_v32 = vadd.f32 %v7946_v7, %v3577_v52  ;;  %v3650_v41 = vmax.f32 %v3618_v58, 0.0  ;;  %v3329_v23 = vadd.f32 %v8577_v60, %v8576_v5  ;;  %v8587_v10 = vld [vmem:[#allocation26_spill] sm:$0xff]  ;;  %v8593_v52 = vld [vmem:[#allocation57_spill] sm:$0xff] }
 0x318   : > { %4983 = vmatpush3.msra.mxu1 %v3654_v18  ;;  %v3590_v44 = vadd.f32 %v8578_v57, %v3331_v50  ;;  %v3665_v1 = vmax.f32 %v3633_v25, 0.0  ;;  %v3631_v42 = vadd.f32 %v7946_v7, %v3592_v40  ;;  %v3615_v56 = vadd.f32 %v7946_v7, %v8579_v43  ;;  %v8594_v50 = vld [vmem:[#allocation24_spill] sm:$0xff]  ;;  %v8595_v25 = vld [vmem:[#allocation59_spill] sm:$0xff]  ;;  %v5697_v43 = vld [vmem:[%s5985_s11 + $0x78] sm:$0xff] }
 0x319   : > { %4984 = vmatprep.subr.mxu1 %v3669_v11  ;;  %v3649_v31 = vmax.f32 %v3617_v49, 0.0  ;;  %v3328_v24 = vadd.f32 %v8581_v20, %v8580_v12  ;;  %v3589_v15 = vadd.f32 %v8582_v34, %v3330_v6  ;;  %v3664_v38 = vmax.f32 %v3632_v29, 0.0  ;;  %v8596_v6 = vld [vmem:[#allocation55_spill] sm:$0xff]  ;;  %v8053_v12 = vld [vmem:[%s8247_s7 + $0x28] sm:$0xff]  ;;  %v5699_v20 = vld [vmem:[%s5985_s11 + $0x70] sm:$0xff] }
 0x31a   : > { %4985 = vmatpush3.msra.mxu1 %v3653_v19  ;;  %v3630_v4 = vadd.f32 %v7946_v7, %v3591_v62  ;;  %v3614_v3 = vadd.f32 %v7946_v7, %v8583_v13  ;;  %v3648_v39 = vmax.f32 %v3616_v32, 0.0  ;;  %v3327_v27 = vadd.f32 %v8585_v35, %v8584_v2  ;;  %v8597_v32 = vld [vmem:[#allocation56_spill] sm:$0xff]  ;;  %v5703_v13 = vld [vmem:[%s5985_s11 + $0x60] sm:$0xff]  ;;  %v8079_v2 = vld [vmem:[%s8247_s7 + $0x30] sm:$0xff] }
 0x31b   : > { %4986 = vmatprep.subr.mxu1 %v3668_v26  ;;  %v3588_v22 = vadd.f32 %v8586_v8, %v3329_v23  ;;  %v3663_v59 = vmax.f32 %v3631_v42, 0.0  ;;  %v3629_v63 = vadd.f32 %v7946_v7, %v3590_v44  ;;  %v3613_v45 = vadd.f32 %v7946_v7, %v8587_v10  ;;  %v5696_v42 = vld [vmem:[%s5985_s11 + $0xf8] sm:$0xff]  ;;  %v5701_v34 = vld [vmem:[%s5985_s11 + $0x68] sm:$0xff]  ;;  %v5706_v35 = vld [vmem:[%s5985_s11 + $0xd0] sm:$0xff] }
 0x31c   : > { %4987 = vmatpush3.msra.mxu1 %v3652_v61  ;;  %v3647_v28 = vmax.f32 %v3615_v56, 0.0  ;;  %v3326_v18 = vadd.f32 %v8589_v37, %v8588_v54  ;;  %v3587_v0 = vadd.f32 %v8590_v21, %v3328_v24  ;;  %v3662_v11 = vmax.f32 %v3630_v4, 0.0  ;;  %v8047_v56 = vld [vmem:[%s8247_s7 + $0x10] sm:$0xff]  ;;  %v5700_v24 = vld [vmem:[%s5985_s11 + $0xe8] sm:$0xff]  ;;  %v8069_v4 = vld [vmem:[%s8247_s7 + $0x38] sm:$0xff] }
 0x31d   : > { %4988 = vmatprep.subr.mxu1 %v3667_v53  ;;  %v3628_v30 = vadd.f32 %v7946_v7, %v3589_v15  ;;  %v3612_v16 = vadd.f32 %v7946_v7, %v8591_v51  ;;  %v3646_v19 = vmax.f32 %v3614_v3, 0.0  ;;  %v3586_v33 = vadd.f32 %v8592_v48, %v3327_v27  ;;  %v8063_v15 = vld [vmem:[%s8247_s7 + $0x20] sm:$0xff]  ;;  %v5704_v3 = vld [vmem:[%s5985_s11 + $0xd8] sm:$0xff]  ;;  %v8085_v27 = vld [vmem:[%s8247_s7 + $0x48] sm:$0xff] }
 0x31e   : > { %4989 = vmatpush3.msra.mxu1 %v3651_v36  ;;  %v3661_v26 = vmax.f32 %v3629_v63, 0.0  ;;  %v3627_v17 = vadd.f32 %v7946_v7, %v3588_v22  ;;  %v3611_v58 = vadd.f32 %v7946_v7, %v8593_v52  ;;  %v3645_v61 = vmax.f32 %v3613_v45, 0.0  ;;  %v5707_v8 = vld [vmem:[%s5985_s11 + $0x50] sm:$0xff]  ;;  %v5708_v22 = vld [vmem:[%s5985_s11 + $0xc8] sm:$0xff]  ;;  %v3680_v63 = vld [vmem:[%s8247_s7 + $0x40] sm:$0xff] }
 0x31f   : > { %4990 = vmatprep.subr.mxu1 %v3666_v46  ;;  %v3585_v9 = vadd.f32 %v8594_v50, %v3326_v18  ;;  %v3660_v40 = vmax.f32 %v3628_v30, 0.0  ;;  %v3626_v53 = vadd.f32 %v7946_v7, %v3587_v0  ;;  %v3610_v49 = vadd.f32 %v7946_v7, %v8595_v25  ;;  %v5710_v10 = vld [vmem:[%s5985_s11 + $0xc0] sm:$0xff]  ;;  %v3683_v45 = vld [vmem:[%s8247_s7 + $0x58] sm:$0xff]  ;;  %v3682_v18 = vld [vmem:[%s8247_s7 + $0x50] sm:$0xff] }
 0x320   : > { %4991 = vmatpush3.msra.mxu1 %v3650_v41  ;;  %v3644_v36 = vmax.f32 %v3612_v16, 0.0  ;;  %v3659_v47 = vmax.f32 %v3627_v17, 0.0  ;;  %v3625_v55 = vadd.f32 %v7946_v7, %v3586_v33  ;;  %v3609_v14 = vadd.f32 %v7946_v7, %v8596_v6  ;;  %v5712_v54 = vld [vmem:[%s5985_s11 + $0xb8] sm:$0xff]  ;;  %v5714_v21 = vld [vmem:[%s5985_s11 + $0xb0] sm:$0xff]  ;;  %v3685_v0 = vld [vmem:[%s8247_s7 + $0x68] sm:$0xff] }
 0x321   : > { %4992 = vmatprep.subr.mxu1 %v3665_v1  ;;  %v3643_v62 = vmax.f32 %v3611_v58, 0.0  ;;  %v3658_v46 = vmax.f32 %v3626_v53, 0.0  ;;  %v3624_v29 = vadd.f32 %v7946_v7, %v3585_v9  ;;  %v3608_v41 = vadd.f32 %v7946_v7, %v8597_v32  ;;  %v8033_v1 = vld [vmem:[%s8247_s7] sm:$0xff]  ;;  %v8038_v7 = vld [vmem:[%s8247_s7 + $0x18] sm:$0xff]  ;;  %v5716_v30 = vld [vmem:[%s5985_s11 + $0xa8] sm:$0xff] }
 0x322   : > { %4993 = vmatpush3.msra.mxu1 %v3649_v31  ;;  %v3642_v5 = vmax.f32 %v3610_v49, 0.0  ;;  %v3657_v60 = vmax.f32 %v3625_v55, 0.0  ;;  %v3641_v23 = vmax.f32 %v3609_v14, 0.0  ;;  %v5698_v31 = vld [vmem:[%s5985_s11 + $0xf0] sm:$0xff]  ;;  %v5713_v37 = vld [vmem:[%s5985_s11 + $0x38] sm:$0xff]  ;;  %v5717_v51 = vld [vmem:[%s5985_s11 + $0x28] sm:$0xff] }
 0x323   : > { %4994 = vmatprep.subr.mxu1 %v3664_v38  ;;  %v3656_v57 = vmax.f32 %v3624_v29, 0.0  ;;  %v3640_v44 = vmax.f32 %v3608_v41, 0.0  ;;  %v5702_v38 = vld [vmem:[%s5985_s11 + $0xe0] sm:$0xff]  ;;  %v3687_v48 = vld [vmem:[%s8247_s7 + $0x78] sm:$0xff]  ;;  %v3686_v52 = vld [vmem:[%s8247_s7 + $0x70] sm:$0xff] }
 0x324   : > { %4995 = vmatpush3.msra.mxu1 %v3648_v39  ;;  %v5705_v39 = vld [vmem:[%s5985_s11 + $0x58] sm:$0xff]  ;;  %v3684_v16 = vld [vmem:[%s8247_s7 + $0x60] sm:$0xff]  ;;  %v5722_v58 = vld [vmem:[%s5985_s11 + $0x90] sm:$0xff] }
 0x325   : > { %4996 = vmatprep.subr.mxu1 %v3663_v59  ;;  %v5709_v59 = vld [vmem:[%s5985_s11 + $0x48] sm:$0xff]  ;;  %v5719_v33 = vld [vmem:[%s5985_s11 + $0x20] sm:$0xff]  ;;  %v5721_v17 = vld [vmem:[%s5985_s11 + $0x18] sm:$0xff] }
 0x326   : > { %4997 = vmatpush3.msra.mxu1 %v3647_v28  ;;  %v5711_v28 = vld [vmem:[%s5985_s11 + $0x40] sm:$0xff]  ;;  %v5724_v50 = vld [vmem:[%s5985_s11 + $0x88] sm:$0xff] }
 0x327   : > { %4998 = vmatprep.subr.mxu1 %v3662_v11  ;;  %v5715_v11 = vld [vmem:[%s5985_s11 + $0x30] sm:$0xff]  ;;  %v5725_v9 = vld [vmem:[%s5985_s11 + $0x8] sm:$0xff]  ;;  %v5726_v53 = vld [vmem:[%s5985_s11 + $0x80] sm:$0xff] }
 0x328   : > { %4999 = vmatpush3.msra.mxu1 %v3646_v19  ;;  %v5718_v19 = vld [vmem:[%s5985_s11 + $0xa0] sm:$0xff] }
 0x329   : > { %5000 = vmatprep.subr.mxu1 %v3661_v26  ;;  %v5720_v26 = vld [vmem:[%s5985_s11 + $0x98] sm:$0xff]  ;;  %v5727_v25 = vld [vmem:[%s5985_s11] sm:$0xff] }
 0x32a   : > { %5001 = vmatpush3.msra.mxu1 %v3645_v61  ;;  %v5723_v61 = vld [vmem:[%s5985_s11 + $0x10] sm:$0xff]  ;;  %v3793_v49 = vld [vmem:[%s8245_s5] sm:$0xff]  ;;  %s4212_s11 = sshll.u32 %s8172_s15, 4  ;;  %s8193_s11 = int_to_ptr.vmem [resolvable:$true] %s4212_s11 }
 0x32b   : > { %5002 = vmatprep.subr.mxu1 %v3660_v40  ;;  %v8598_v40 = vld [vmem:[#allocation48_spill] sm:$0xff]  ;;  %5613 = vmatprep.subr.mxu0 %v3793_v49  ;;  %v4035_v32 = vld [vmem:[%s8248_s8] sm:$0xff]  ;;  %s5756_s17 = scalar_lea.vmem %s8193_s11, 1024  ;;  %p5763_p5 = scmp.lt.s32.totalorder %s8193_s11, %s5761_s21 }
 0x32c   : > { %5003 = vmatpush3.msra.mxu1 %v3644_v36  ;;  %5614 = vmatpush3.msra.mxu0 %v3793_v49  ;;  %v4036_v36 = vld [vmem:[%s8248_s8 + $0x8] sm:$0xff]  ;;  %p5757_p11 = scmp.ne.s32.totalorder %s8193_s11, %s5756_s17  ;;  %p5764_p7 = scmp.lt.s32.totalorder %s5762_s24, %s5756_s17 }
 0x32d   : > { %5004 = vmatprep.subr.mxu1 %v3659_v47  ;;  %5627 = vmatprep.subr.mxu0 %v4036_v36 }
 0x32e   : > { %5005 = vmatpush3.msra.mxu1 %v3643_v62  ;;  %p5758_p13 = pnand %p5757_p11, %p8599_p12  ;;  %p5765_p8 = por %p5764_p7, %p5763_p5 }
 0x32f   : > { %5006 = vmatprep.subr.mxu1 %v3658_v46 }
 0x330   : > { %5007 = vmatpush3.msra.mxu1 %v3642_v5  ;;  %p5759_p4 = pneg %p5758_p13 }
 0x331   : > { %5008 = vmatprep.subr.mxu1 %v3657_v60 }
 0x332   : > { %5009 = vmatpush3.msra.mxu1 %v3641_v23  ;;  %p5766_p10 = pnand %p5765_p8, %p5759_p4 }
 0x333   : > { %5010 = vmatprep.subr.mxu1 %v3656_v57 }
 0x334   : > { %5011 = vmatpush3.msra.mxu1 %v3640_v44 }
 0x335   : > { %3753 = vmatmul.mubr.f32.vlgmr.msra.gmra.mxu1 %v8033_v1  ;;  %5045 = vmatprep.subr.mxu1 %v5696_v42 }
 0x336   : > { %5046 = vmatpush3.msra.mxu1 %v5697_v43  ;;  %3757 = vmatprep.mubr.f32.mxu1 %v8038_v7 }
 0x337   : > { %5047 = vmatprep.subr.mxu1 %v5698_v31 }
 0x338   : > { %5048 = vmatpush3.msra.mxu1 %v5699_v20 }
 0x339   : > { %3758 = vmatmul.mubr.f32.gmra.mxu1 %v8047_v56  ;;  %5049 = vmatprep.subr.mxu1 %v5700_v24 }
 0x33a   : > { %5050 = vmatpush3.msra.mxu1 %v5701_v34  ;;  %3762 = vmatprep.mubr.f32.mxu1 %v8053_v12 }
 0x33b   : > { %5051 = vmatprep.subr.mxu1 %v5702_v38 }
 0x33c   : > { %5052 = vmatpush3.msra.mxu1 %v5703_v13 }
 0x33d   : > { %3763 = vmatmul.mubr.f32.gmra.mxu1 %v8063_v15  ;;  %5053 = vmatprep.subr.mxu1 %v5704_v3 }
 0x33e   : > { %5054 = vmatpush3.msra.mxu1 %v5705_v39  ;;  %3767 = vmatprep.mubr.f32.mxu1 %v8069_v4 }
 0x33f   : > { %5055 = vmatprep.subr.mxu1 %v5706_v35 }
 0x340   : > { %5056 = vmatpush3.msra.mxu1 %v5707_v8 }
 0x341   : > { %3768 = vmatmul.mubr.f32.gmra.mxu1 %v8079_v2  ;;  %5057 = vmatprep.subr.mxu1 %v5708_v22 }
 0x342   : > { %5058 = vmatpush3.msra.mxu1 %v5709_v59  ;;  %3772 = vmatprep.mubr.f32.mxu1 %v8085_v27 }
 0x343   : > { %5059 = vmatprep.subr.mxu1 %v5710_v10 }
 0x344   : > { %5060 = vmatpush3.msra.mxu1 %v5711_v28 }
 0x345   : > { %3773 = vmatmul.mubr.f32.gmra.mxu1 %v3680_v63  ;;  %5061 = vmatprep.subr.mxu1 %v5712_v54 }
 0x346   : > { %5062 = vmatpush3.msra.mxu1 %v5713_v37  ;;  %3777 = vmatprep.mubr.f32.mxu1 %v3683_v45 }
 0x347   : > { %5063 = vmatprep.subr.mxu1 %v5714_v21 }
 0x348   : > { %5064 = vmatpush3.msra.mxu1 %v5715_v11 }
 0x349   : > { %3778 = vmatmul.mubr.f32.gmra.mxu1 %v3682_v18  ;;  %5065 = vmatprep.subr.mxu1 %v5716_v30 }
 0x34a   : > { %5066 = vmatpush3.msra.mxu1 %v5717_v51  ;;  %3782 = vmatprep.mubr.f32.mxu1 %v3685_v0 }
 0x34b   : > { %5067 = vmatprep.subr.mxu1 %v5718_v19 }
 0x34c   : > { %5068 = vmatpush3.msra.mxu1 %v5719_v33 }
 0x34d   : > { %3783 = vmatmul.mubr.f32.gmra.mxu1 %v3684_v16  ;;  %5069 = vmatprep.subr.mxu1 %v5720_v26 }
 0x34e   : > { %5070 = vmatpush3.msra.mxu1 %v5721_v17  ;;  %3787 = vmatprep.mubr.f32.mxu1 %v3687_v48 }
 0x34f   : > { %5071 = vmatprep.subr.mxu1 %v5722_v58 }
 0x350   : > { %5072 = vmatpush3.msra.mxu1 %v5723_v61  ;;  %v4624_v61 = vld [vmem:[%s8246_s6] ss:$0 sm:$0xff] }
 0x351   : > { %3788 = vmatmul.mubr.f32.gmra.mxu1 %v3686_v52  ;;  %5073 = vmatprep.subr.mxu1 %v5724_v50 }
 0x352   : > { %5074 = vmatpush3.msra.mxu1 %v5725_v9  ;;  %3994 = vmatprep.mubr.f32.mxu1 %v8598_v40  ;;  %v4633_v9 = vld [vmem:[%s8249_s9] ss:$0 sm:$0xff] }
 0x353   : > { %5075 = vmatprep.subr.mxu1 %v5726_v53 }
 0x354   : > { %5076 = vmatpush3.msra.mxu1 %v5727_v25 }
 0x355   : > { %3995 = vmatmul.mubr.f32.vlgmr.msra.gmra.mxu1 %v8033_v1 }
 0x356   : > { %3999 = vmatprep.mubr.f32.mxu1 %v8038_v7 }
 0x359   : > { %4000 = vmatmul.mubr.f32.gmra.mxu1 %v8047_v56 }
 0x35a   : > { %4004 = vmatprep.mubr.f32.mxu1 %v8053_v12 }
 0x35d   : > { %4005 = vmatmul.mubr.f32.gmra.mxu1 %v8063_v15 }
 0x35e   : > { %4009 = vmatprep.mubr.f32.mxu1 %v8069_v4 }
 0x361   : > { %4010 = vmatmul.mubr.f32.gmra.mxu1 %v8079_v2 }
 0x362   : > { %4014 = vmatprep.mubr.f32.mxu1 %v8085_v27 }
 0x365   : > { %4015 = vmatmul.mubr.f32.gmra.mxu1 %v3680_v63 }
 0x366   : > { %4019 = vmatprep.mubr.f32.mxu1 %v3683_v45 }
 0x369   : > { %4020 = vmatmul.mubr.f32.gmra.mxu1 %v3682_v18 }
 0x36a   : > { %4024 = vmatprep.mubr.f32.mxu1 %v3685_v0 }
 0x36d   : > { %4025 = vmatmul.mubr.f32.gmra.mxu1 %v3684_v16 }
 0x36e   : > { %4029 = vmatprep.mubr.f32.mxu1 %v3687_v48 }
 0x371   : > { %4030 = vmatmul.mubr.f32.gmra.mxu1 %v3686_v52 }
 0x3f5   : > { %v5012_v47 = vpop.f32.mrf.mxu1 }
 0x3f7   : > { %v5013_v55 = vpop.f32.mrf.mxu1 }
 0x3f8   : > { %v5014_v6 = vadd.f32 %v5013_v55, %v5012_v47 }
 0x3f9   : > { %v5015_v14 = vpop.f32.mrf.mxu1 }
 0x3fa   : > { %5615 = vmatprep.mubr.msk.f32.mxu0 %vm1040_vm3, %v5014_v6 }
 0x3fb   : > { %v5016_v62 = vpop.f32.mrf.mxu1 }
 0x3fc   : > { %v5017_v46 = vadd.f32 %v5016_v62, %v5015_v14 }
 0x3fd   : > { %v5018_v29 = vpop.f32.mrf.mxu1 }
 0x3fe   : > { %5616 = vmatmul.mubr.msk.f32.vlgmr.msra.gmra.mxu0 %vm1040_vm3, %v5017_v46 }
 0x3ff   : > { %v5019_v41 = vpop.f32.mrf.mxu1  ;;  %5628 = vmatpush3.msra.mxu0 %v4036_v36 }
 0x400   : > { %v5020_v5 = vadd.f32 %v5019_v41, %v5018_v29  ;;  %5629 = vmatprep.subr.mxu0 %v4035_v32 }
 0x401   : > { %v5021_v60 = vpop.f32.mrf.mxu1  ;;  %5630 = vmatpush3.msra.mxu0 %v4035_v32 }
 0x402   : > { %5618 = vmatprep.mubr.msk.f32.mxu0 %vm1040_vm3, %v5020_v5 }
 0x403   : > { %v5022_v23 = vpop.f32.mrf.mxu1 }
 0x404   : > { %v5023_v57 = vadd.f32 %v5022_v23, %v5021_v60 }
 0x405   : > { %v5024_v44 = vpop.f32.mrf.mxu1 }
 0x406   : > { %5619 = vmatmul.mubr.msk.f32.gmra.mxu0 %vm1040_vm3, %v5023_v57 }
 0x407   : > { %v5025_v1 = vpop.f32.mrf.mxu1 }
 0x408   : > { %v5026_v7 = vadd.f32 %v5025_v1, %v5024_v44 }
 0x409   : > { %v5027_v42 = vpop.f32.mrf.mxu1 }
 0x40a   : > { %5621 = vmatprep.mubr.msk.f32.mxu0 %vm1040_vm3, %v5026_v7 }
 0x40b   : > { %v5028_v43 = vpop.f32.mrf.mxu1 }
 0x40c   : > { %v5029_v56 = vadd.f32 %v5028_v43, %v5027_v42 }
 0x40d   : > { %v5030_v31 = vpop.f32.mrf.mxu1 }
 0x40e   : > { %5622 = vmatmul.mubr.msk.f32.gmra.mxu0 %vm1040_vm3, %v5029_v56 }
 0x40f   : > { %v5031_v12 = vpop.f32.mrf.mxu1 }
 0x410   : > { %v5032_v20 = vadd.f32 %v5031_v12, %v5030_v31 }
 0x411   : > { %v5033_v24 = vpop.f32.mrf.mxu1 }
 0x412   : > { %5624 = vmatprep.mubr.msk.f32.mxu0 %vm1040_vm3, %v5032_v20 }
 0x413   : > { %v5034_v34 = vpop.f32.mrf.mxu1 }
 0x414   : > { %v5035_v15 = vadd.f32 %v5034_v34, %v5033_v24 }
 0x415   : > { %v5077_v38 = vpop.f32.mrf.mxu1 }
 0x416   : > { %5625 = vmatmul.mubr.msk.f32.gmra.mxu0 %vm1040_vm3, %v5035_v15 }
 0x417   : > { %v5078_v4 = vpop.f32.mrf.mxu1 }
 0x418   : > { %v5079_v13 = vadd.f32 %v5078_v4, %v5077_v38 }
 0x419   : > { %v5080_v3 = vpop.f32.mrf.mxu1 }
 0x41a   : > { %5631 = vmatprep.mubr.msk.f32.mxu0 %vm419_vm0, %v5079_v13 }
 0x41b   : > { %v5081_v39 = vpop.f32.mrf.mxu1 }
 0x41c   : > { %v5082_v2 = vadd.f32 %v5081_v39, %v5080_v3 }
 0x41d   : > { %v5083_v35 = vpop.f32.mrf.mxu1 }
 0x41e   : > { %5632 = vmatmul.mubr.msk.f32.vlgmr.msra.gmra.mxu0 %vm419_vm0, %v5082_v2 }
 0x41f   : > { %v5084_v27 = vpop.f32.mrf.mxu1 }
 0x420   : > { %v5085_v8 = vadd.f32 %v5084_v27, %v5083_v35 }
 0x421   : > { %v5086_v22 = vpop.f32.mrf.mxu1 }
 0x422   : > { %5634 = vmatprep.mubr.msk.f32.mxu0 %vm419_vm0, %v5085_v8 }
 0x423   : > { %v5087_v59 = vpop.f32.mrf.mxu1 }
 0x424   : > { %v5088_v63 = vadd.f32 %v5087_v59, %v5086_v22 }
 0x425   : > { %v5089_v10 = vpop.f32.mrf.mxu1 }
 0x426   : > { %5635 = vmatmul.mubr.msk.f32.gmra.mxu0 %vm419_vm0, %v5088_v63 }
 0x427   : > { %v5090_v45 = vpop.f32.mrf.mxu1 }
 0x428   : > { %v5091_v28 = vadd.f32 %v5090_v45, %v5089_v10 }
 0x429   : > { %v5092_v54 = vpop.f32.mrf.mxu1 }
 0x42a   : > { %5637 = vmatprep.mubr.msk.f32.mxu0 %vm419_vm0, %v5091_v28 }
 0x42b   : > { %v5093_v37 = vpop.f32.mrf.mxu1 }
 0x42c   : > { %v5094_v18 = vadd.f32 %v5093_v37, %v5092_v54 }
 0x42d   : > { %v5095_v21 = vpop.f32.mrf.mxu1 }
 0x42e   : > { %5638 = vmatmul.mubr.msk.f32.gmra.mxu0 %vm419_vm0, %v5094_v18 }
 0x42f   : > { %v5096_v0 = vpop.f32.mrf.mxu1 }
 0x430   : > { %v5097_v11 = vadd.f32 %v5096_v0, %v5095_v21 }
 0x431   : > { %v5098_v30 = vpop.f32.mrf.mxu1 }
 0x432   : > { %5640 = vmatprep.mubr.msk.f32.mxu0 %vm419_vm0, %v5097_v11 }
 0x433   : > { %v5099_v51 = vpop.f32.mrf.mxu1 }
 0x434   : > { %v5100_v16 = vadd.f32 %v5099_v51, %v5098_v30 }
 0x436   : > { %5641 = vmatmul.mubr.msk.f32.gmra.mxu0 %vm419_vm0, %v5100_v16 }
 0x4be   : > { %v5617_v19 = vpop.f32.mrf.mxu0 }
 0x4bf   : > { %v3897_v53 = vadd.f32 %v5617_v19, %v4624_v61 }
 0x4c0   : > { %v3891_v48 = vpop.f32.mrf.mxu0 }
 0x4c1   : > { %v3892_v36 = vadd.f32 %v4624_v61, %v3891_v48 }
 0x4c6   : > { %v5620_v33 = vpop.f32.mrf.mxu0 }
 0x4c7   : > { %v3907_v29 = vadd.f32 %v5620_v33, %v4624_v61 }
 0x4c8   : > { %v3901_v26 = vpop.f32.mrf.mxu0 }
 0x4c9   : > { %v3902_v5 = vadd.f32 %v4624_v61, %v3901_v26 }
 0x4ce   : > { %v5623_v17 = vpop.f32.mrf.mxu0 }
 0x4cf   : > { %v3917_v42 = vadd.f32 %v5623_v17, %v4624_v61 }
 0x4d0   : > { %v3911_v52 = vpop.f32.mrf.mxu0 }
 0x4d1   : > { %v3912_v31 = vadd.f32 %v4624_v61, %v3911_v52 }
 0x4d6   : > { %v5626_v58 = vpop.f32.mrf.mxu0 }
 0x4d7   : > { %v3927_v4 = vadd.f32 %v5626_v58, %v4624_v61 }
 0x4d8   : > { %v3921_v50 = vpop.f32.mrf.mxu0 }
 0x4d9   : > { %v3922_v39 = vadd.f32 %v4624_v61, %v3921_v50 }
 0x4de   : > { %v5633_v40 = vpop.f32.mrf.mxu0 }
 0x4df   : > { %v4140_v25 = vadd.f32 %v5633_v40, %v4633_v9 }
 0x4e0   : > { %v4134_v49 = vpop.f32.mrf.mxu0 }
 0x4e1   : > { %v4174_v47 = vadd.f32 %v4140_v25, %v3897_v53  ;;  %v4135_v55 = vadd.f32 %v4633_v9, %v4134_v49 }
 0x4e3   : > { %v4182_v6 = vmax.f32 %v4174_v47, 0.0  ;;  %v4173_v14 = vadd.f32 %v4135_v55, %v3892_v36 }
 0x4e5   : > { %4191 = vst.msk [vmem:[%s8172_s15 + $0x8] sm:$0xff] %vm4189_vm5, %v4182_v6  ;;  %v4181_v62 = vmax.f32 %v4173_v14, 0.0 }
 0x4e6   : > { %v5636_v46 = vpop.f32.mrf.mxu0 }
 0x4e7   : > { %4190 = vst.msk [vmem:[%s8172_s15] sm:$0xff] %vm4189_vm5, %v4181_v62  ;;  %v4150_v32 = vadd.f32 %v5636_v46, %v4633_v9 }
 0x4e8   : > { %v4144_v41 = vpop.f32.mrf.mxu0 }
 0x4e9   : > { %v4176_v60 = vadd.f32 %v4150_v32, %v3907_v29  ;;  %v4145_v23 = vadd.f32 %v4633_v9, %v4144_v41 }
 0x4eb   : > { %v4184_v57 = vmax.f32 %v4176_v60, 0.0  ;;  %v4175_v44 = vadd.f32 %v4145_v23, %v3902_v5 }
 0x4ed   : > { %4193 = vst.msk [vmem:[%s8172_s15 + $0x18] sm:$0xff] %vm4189_vm5, %v4184_v57  ;;  %v4183_v1 = vmax.f32 %v4175_v44, 0.0 }
 0x4ee   : > { %v5639_v7 = vpop.f32.mrf.mxu0 }
 0x4ef   : > { %4192 = vst.msk [vmem:[%s8172_s15 + $0x10] sm:$0xff] %vm4189_vm5, %v4183_v1  ;;  %v4160_v43 = vadd.f32 %v5639_v7, %v4633_v9 }
 0x4f0   : > { %v4154_v56 = vpop.f32.mrf.mxu0 }
 0x4f1   : > { %v4178_v12 = vadd.f32 %v4160_v43, %v3917_v42  ;;  %v4155_v20 = vadd.f32 %v4633_v9, %v4154_v56 }
 0x4f3   : > { %v4186_v24 = vmax.f32 %v4178_v12, 0.0  ;;  %v4177_v34 = vadd.f32 %v4155_v20, %v3912_v31 }
 0x4f5   : > { %4195 = vst.msk [vmem:[%s8172_s15 + $0x28] sm:$0xff] %vm4189_vm5, %v4186_v24  ;;  %v4185_v15 = vmax.f32 %v4177_v34, 0.0 }
 0x4f6   : > { %v5642_v38 = vpop.f32.mrf.mxu0 }
 0x4f7   : > { %4194 = vst.msk [vmem:[%s8172_s15 + $0x20] sm:$0xff] %vm4189_vm5, %v4185_v15  ;;  %v4170_v13 = vadd.f32 %v5642_v38, %v4633_v9 }
 0x4f8   : > { %v4164_v3 = vpop.f32.mrf.mxu0 }
 0x4f9   : > { %v4180_v2 = vadd.f32 %v4170_v13, %v3927_v4  ;;  %v4165_v35 = vadd.f32 %v4633_v9, %v4164_v3 }
 0x4fb   : > { %v4188_v27 = vmax.f32 %v4180_v2, 0.0  ;;  %v4179_v8 = vadd.f32 %v4165_v35, %v3922_v39 }
 0x4fd   : > { %4197 = vst.msk [vmem:[%s8172_s15 + $0x38] sm:$0xff] %vm4189_vm5, %v4188_v27  ;;  %v4187_v22 = vmax.f32 %v4179_v8, 0.0 }
 0x4ff   : > { %4196 = vst.msk [vmem:[%s8172_s15 + $0x30] sm:$0xff] %vm4189_vm5, %v4187_v22 }
 0x500   : > { %5769 = shalt.err (!%p5766_p10)
}
 0x501   : > { %s5770_s27 = scalar_lea.hbm %s8191_s22, 1024  ;;  %s5774_s15 = scalar_lea.hbm %s8250_s10, 2048 }
 0x502   : > { %p5771_p0 = scmp.ne.s32.totalorder %s8191_s22, %s5770_s27  ;;  %p5775_p1 = scmp.lt.s32.totalorder %s8191_s22, %s8250_s10 }
 0x503   : > { %p5776_p3 = scmp.lt.s32.totalorder %s5774_s15, %s5770_s27 }
 0x504   : > { %p5772_p2 = pnand %p5771_p0, %p8599_p12 }
 0x505   : > { %p5777_p6 = por %p5776_p3, %p5775_p1 }
 0x506   : > { %p5773_p9 = pneg %p5772_p2 }
 0x508   : > { %p5778_p11 = pnand %p5777_p6, %p5773_p9 }
 0x50a   : > { %5781 = shalt.err (!%p5778_p11)
}
 0x50b   : > { %s5827_s23 = smov 128   ;;  %s5828_s17 = smov 8  }
 0x50c   : > { %5647 = dma.vmem_to_hbm [thread:$0]  (%p8599_p12), %s8193_s11, 1024, %s8191_s22, %s4199_s12, %s5827_s23, %s5827_s23, %s5828_s17  }
 0x50d PF: > { %s4227_s20 = sand.u32 1, %s5808_s13   ;;  %p8600_p13 = scmp.ne.s32.totalorder %s8350_s26, 0 }
 0x50e   : > { %p8601_p4 = scmp.ge.s32.totalorder %s5820_s16, 2  ;;  %s4228_s21 = scalar_lea.sflag [#allocation4], %s4227_s20 }
 0x510   : > { %p5654_p5 = pnand %p8601_p4, %p8600_p13 }
 0x512   : > { %p5655_p7 = pneg %p5654_p5 }
 0x514   : > { %5803 = dma.done.wait (%p5655_p7), %s4228_s21, 1024  }
 0x515   : > { %5805 = vsyncadd (%p5655_p7), %s4228_s21, 4294966272  ;;  %s8602_s16 = sld [smem:[#allocation9_spill]]  ;;  %s8605_s13 = smov %s5812_s14 }
 0x516   : > { %s8603_s24 = sld [smem:[#allocation8_spill]] }
 0x517   : > { %s8604_s15 = sld [smem:[#allocation10_spill]] }
 0x51b   : > { %p23_p8 = scmp.ge.s32.totalorder %s8602_s16, 4  }
 0x51c   : > { %s8606_s14 = smov %s8603_s24 }
 0x51d   :  { %25 = sbr.rel (!%p23_p8) target bundleno = 5 (0x5), region = 113 }
 0x522   :  { %4233 = vsyncpa [#allocation3], 1 }
 0x523   :  { %4235 = vsyncpa [#allocation3 + $0x1], 1 }
 0x524   :  { %4236 = vsyncpa [#allocation4], 1 }
 0x525   :  { %4238 = vsyncpa [#allocation4 + $0x1], 1 }

</bundles_post_ra>
